<compile_context>
chip_gen: v7x
topology: tpu7x:2x2x1
jax: 0.10.0
libtpu: 0.0.40
codegen_flags: <defaults>
</compile_context>

<pallas_src>
import functools

import jax
import jax.numpy as jnp
from jax.experimental import pallas as pl
from jax.experimental.pallas import tpu as pltpu

EPS = 1e-5


# ----------------------------- fused kernel ---------------------------------
def _dense_block_kernel(x_ref, m_ref, *args, h, w, in_ch, growth, num_block):
    """All bottleneck layers of the DenseBlock, whole (small) batch.

    Layout: activations are (channels, pixels), p = n*H*W + y*W + x on lanes.

    x_ref  : (Cin0, P)        f32   block input features
    m_ref  : (9, P)           f32   per-tap boundary masks (0/1)
    args   : per layer (g1 (C,1), b1 (C,1), w1t (Cmid,C) bf16,
                        g2 (Cmid,1), b2 (Cmid,1), w2r (G, 9*Cmid) bf16),
             then o_ref (Cfinal, P) f32, then patch scratch (9*Cmid, P) bf16.
    The output ref doubles as the VMEM-resident dense-concat buffer: each
    layer reads rows [0, cin) and writes only its new rows [cin, cin+G).
    """
    num_w = 6 * num_block
    w_refs = args[:num_w]
    o_ref = args[num_w]
    patch_ref = args[num_w + 1]

    p = x_ref.shape[1]
    inv_p = 1.0 / p
    cmid = 4 * growth

    # Seed the concat buffer with the block input (written once, stays in VMEM).
    o_ref[0:in_ch, :] = x_ref[...]

    def bn_relu(v, g_ref, b_ref):
        # Training-mode batch stats (biased variance), single pass.
        mean = jnp.sum(v, axis=1, keepdims=True) * inv_p
        msq = jnp.sum(v * v, axis=1, keepdims=True) * inv_p
        var = jnp.maximum(msq - mean * mean, 0.0)
        scale = g_ref[...] * jax.lax.rsqrt(var + EPS)
        shift = b_ref[...] - mean * scale
        return jnp.maximum(v * scale + shift, 0.0)

    cin = in_ch
    for layer in range(num_block):
        g1, b1, w1t, g2, b2, w2r = w_refs[6 * layer: 6 * layer + 6]

        x = o_ref[0:cin, :]                                   # (cin, P) f32

        # ---- BN1 + ReLU + 1x1 conv (bf16 MXU, f32 accumulation) ------------
        t1 = bn_relu(x, g1, b1)
        mid = jnp.dot(w1t[...], t1.astype(jnp.bfloat16),
                      preferred_element_type=jnp.float32)     # (cmid, P) f32

        # ---- BN2 + ReLU ------------------------------------------------------
        t2 = bn_relu(mid, g2, b2)                             # (cmid, P) f32

        # ---- 3x3 conv (padding=1) as ONE im2col matmul ----------------------
        # Each of the 9 taps is a static lane-roll of the flattened pixel axis
        # masked at image/row boundaries (mask precomputed in the wrapper);
        # one tap in flight, cast + stored bf16 into the patch scratch.
        # TODO(synk): on v6e/v7x do roll+mask in bf16 (packed vregs); keep f32
        #   on v5e (no bf16 VPU).
        for ky in range(3):
            for kx in range(3):
                idx = ky * 3 + kx
                d = (ky - 1) * w + (kx - 1)                   # flattened offset
                if d == 0:                                    # center: no shift
                    tap = t2
                else:
                    shifted = pltpu.roll(t2, shift=(-d) % p, axis=1)
                    tap = shifted * m_ref[idx:idx + 1, :]     # zero the border
                patch_ref[idx * cmid:(idx + 1) * cmid, :] = tap.astype(jnp.bfloat16)

        new = jnp.dot(w2r[...], patch_ref[...],
                      preferred_element_type=jnp.float32)     # (G, P) f32

        # ---- dense concat: write ONLY the new G-channel slab ----------------
        # TODO(synk): pad channel offsets to multiples of 8 at production growth
        #   rates so these slab stores are unmasked.
        o_ref[cin:cin + growth, :] = new
        cin += growth


# ------------------------------- wrappers -----------------------------------
def _boundary_masks(n, h, w):
    """(9, P) f32 masks: mask[ky*3+kx, p] = 1 iff the 3x3 tap (ky,kx) of pixel
    p stays inside its image (replaces in-kernel iota / div / mod chains)."""
    p = n * h * w
    pix = jnp.arange(p, dtype=jnp.int32)
    row = (pix // w) % h
    col = pix % w
    taps = []
    for ky in range(3):
        for kx in range(3):
            dy, dx = ky - 1, kx - 1
            valid = ((row + dy >= 0) & (row + dy < h) &
                     (col + dx >= 0) & (col + dx < w))
            taps.append(valid.astype(jnp.float32))
    return jnp.stack(taps, axis=0)


def _vmem_limit_bytes(in_ch, growth, num_block, p):
    """Generation-aware VMEM budget: actual buffer bytes (I/O blocks x2 for
    pipelining + scratch + temporaries) with headroom, clamped to ~3/4 of the
    physical VMEM (~48 MiB on v7x, ~96 MiB on v5e/v6e), never below 32 MiB."""
    f32, bf16 = 4, 2
    cmid = 4 * growth
    cfin = in_ch + num_block * growth
    wbytes = 0
    c = in_ch
    for _ in range(num_block):
        wbytes += (2 * c + 2 * cmid) * f32 + cmid * c * bf16 + growth * 9 * cmid * bf16
        c += growth
    io = in_ch * p * f32 + 9 * p * f32 + wbytes + cfin * p * f32
    scratch = 9 * cmid * p * bf16
    temps = (cfin + 6 * cmid) * p * f32
    est = 2 * io + scratch + 2 * temps
    try:
        phys = getattr(pltpu.get_tpu_info(), "vmem_capacity_bytes", 128 * 2 ** 20)
    except Exception:  # pragma: no cover - CPU/interpret fallback
        phys = 128 * 2 ** 20
    cap = (phys * 3) // 4
    return int(min(cap, max(32 * 2 ** 20, est)))


def dense_block_pallas(x_nchw, layer_params, growth_rate):
    """Full DenseBlock forward, one fused kernel.  NCHW in / NCHW out."""
    N, C, H, W = x_nchw.shape
    P = N * H * W
    num_block = len(layer_params)
    G = growth_rate
    Cmid = 4 * G
    C_final = C + num_block * G

    # NCHW -> channels-major (C, N*H*W): flattened pixels on the 128-lane axis.
    x_cp = jnp.transpose(x_nchw, (1, 0, 2, 3)).reshape(C, P)
    masks = _boundary_masks(N, H, W)                       # (9, P) f32

    flat_inputs = [x_cp, masks]
    in_specs = [pl.BlockSpec((C, P), lambda i: (0, 0)),
                pl.BlockSpec((9, P), lambda i: (0, 0))]
    cin = C
    for (g1, b1, w1, g2, b2, w2) in layer_params:
        # One-time weight layout prep (outside the kernel): transposed 1x1
        # weight and (ky,kx,ci)-flattened 3x3 weight, both bf16 MXU operands.
        w1t = w1.T.astype(jnp.bfloat16)                        # (Cmid, cin)
        w2r = w2.reshape(9 * Cmid, G).T.astype(jnp.bfloat16)   # (G, 9*Cmid)
        flat_inputs += [g1.reshape(cin, 1), b1.reshape(cin, 1), w1t,
                        g2.reshape(Cmid, 1), b2.reshape(Cmid, 1), w2r]
        in_specs += [pl.BlockSpec((cin, 1), lambda i: (0, 0)),
                     pl.BlockSpec((cin, 1), lambda i: (0, 0)),
                     pl.BlockSpec((Cmid, cin), lambda i: (0, 0)),
                     pl.BlockSpec((Cmid, 1), lambda i: (0, 0)),
                     pl.BlockSpec((Cmid, 1), lambda i: (0, 0)),
                     pl.BlockSpec((G, 9 * Cmid), lambda i: (0, 0))]
        cin += G

    kernel = functools.partial(_dense_block_kernel, h=H, w=W,
                               in_ch=C, growth=G, num_block=num_block)
    out = pl.pallas_call(
        kernel,
        out_shape=jax.ShapeDtypeStruct((C_final, P), jnp.float32),
        grid=(1,),
        in_specs=in_specs,
        out_specs=pl.BlockSpec((C_final, P), lambda i: (0, 0)),
        scratch_shapes=[pltpu.VMEM((9 * Cmid, P), jnp.bfloat16)],
        compiler_params=pltpu.CompilerParams(
            dimension_semantics=("arbitrary",),
            vmem_limit_bytes=_vmem_limit_bytes(C, G, num_block, P),
        ),
    )(*flat_inputs)

    return jnp.transpose(out.reshape(C_final, N, H, W), (1, 0, 2, 3))


# ------------------------- pure-JAX reference --------------------------------
def _bottleneck_ref(x, params):
    g1, b1, w1, g2, b2, w2 = params

    def bn_relu(v, g, b):
        m = jnp.mean(v, axis=(0, 1, 2))
        var = jnp.mean((v - m) ** 2, axis=(0, 1, 2))
        return jnp.maximum((v - m) * jax.lax.rsqrt(var + EPS) * g + b, 0.0)

    t1 = bn_relu(x, g1, b1)
    mid = jnp.einsum('nhwc,cd->nhwd', t1, w1)
    t2 = bn_relu(mid, g2, b2)
    out = jax.lax.conv_general_dilated(
        t2, w2, window_strides=(1, 1), padding=((1, 1), (1, 1)),
        dimension_numbers=('NHWC', 'HWIO', 'NHWC'))
    return jnp.concatenate([x, out], axis=-1)


def dense_block_ref(x_nchw, layer_params):
    x = jnp.transpose(x_nchw, (0, 2, 3, 1))
    for params in layer_params:
        x = _bottleneck_ref(x, params)
    return jnp.transpose(x, (0, 3, 1, 2))


# ------------------------- deterministic init --------------------------------
def init_dense_block_params(key, num_block, in_ch, growth_rate):
    """BatchNorm: gamma~1 (perturbed so the affine path is exercised), beta=0.
    Conv weights: deterministic Gaussian."""
    params = []
    c = in_ch
    cmid = 4 * growth_rate
    for _ in range(num_block):
        key, k1, k2, k3, k4 = jax.random.split(key, 5)
        w1 = 0.2 * jax.random.normal(k1, (c, cmid), jnp.float32)
        w2 = 0.1 * jax.random.normal(k2, (3, 3, cmid, growth_rate), jnp.float32)
        g1 = 1.0 + 0.1 * jax.random.normal(k3, (c,), jnp.float32)
        b1 = jnp.zeros((c,), jnp.float32)
        g2 = 1.0 + 0.1 * jax.random.normal(k4, (cmid,), jnp.float32)
        b2 = jnp.zeros((cmid,), jnp.float32)
        params.append((g1, b1, w1, g2, b2, w2))
        c += growth_rate
    return params
    # TODO(synk): running-mean/var momentum updates (a training-time side
    # effect of nn.BatchNorm2d) are not modeled; the forward output does not
    # depend on them.


if __name__ == "__main__":
    num_block, in_ch, growth_rate = 3, 4, 4
    N, H, W = 2, 16, 16

    key = jax.random.PRNGKey(0)
    key, kx = jax.random.split(key)
    x = jax.random.normal(kx, (N, in_ch, H, W), jnp.float32)  # NCHW input

    layer_params = init_dense_block_params(key, num_block, in_ch, growth_rate)

    out = jax.block_until_ready(dense_block_pallas(x, layer_params, growth_rate))

    expected_ch = in_ch + num_block * growth_rate
    assert out.shape == (N, expected_ch, H, W), out.shape

    ref = jax.block_until_ready(dense_block_ref(x, layer_params))
    # bf16 MXU operands (f32 accumulation) vs an all-f32 XLA reference across
    # three chained bottleneck layers -> slightly looser atol than pure f32.
    assert jnp.allclose(out, ref, rtol=2e-2, atol=4e-2), (
        float(jnp.max(jnp.abs(out - ref))))

    print("KERNEL_OK")
</pallas_src>

<mosaic_0001>
module attributes {stable_mosaic.version = 11 : i64} {
  func.func @_dense_block_kernel(%arg0: i32, %arg1: memref<4x512xf32, #tpu.memory_space<vmem>>, %arg2: memref<9x512xf32, #tpu.memory_space<vmem>>, %arg3: memref<4x1xf32, #tpu.memory_space<vmem>>, %arg4: memref<4x1xf32, #tpu.memory_space<vmem>>, %arg5: memref<16x4xbf16, #tpu.memory_space<vmem>>, %arg6: memref<16x1xf32, #tpu.memory_space<vmem>>, %arg7: memref<16x1xf32, #tpu.memory_space<vmem>>, %arg8: memref<4x144xbf16, #tpu.memory_space<vmem>>, %arg9: memref<8x1xf32, #tpu.memory_space<vmem>>, %arg10: memref<8x1xf32, #tpu.memory_space<vmem>>, %arg11: memref<16x8xbf16, #tpu.memory_space<vmem>>, %arg12: memref<16x1xf32, #tpu.memory_space<vmem>>, %arg13: memref<16x1xf32, #tpu.memory_space<vmem>>, %arg14: memref<4x144xbf16, #tpu.memory_space<vmem>>, %arg15: memref<12x1xf32, #tpu.memory_space<vmem>>, %arg16: memref<12x1xf32, #tpu.memory_space<vmem>>, %arg17: memref<16x12xbf16, #tpu.memory_space<vmem>>, %arg18: memref<16x1xf32, #tpu.memory_space<vmem>>, %arg19: memref<16x1xf32, #tpu.memory_space<vmem>>, %arg20: memref<4x144xbf16, #tpu.memory_space<vmem>>, %arg21: memref<16x512xf32, #tpu.memory_space<vmem>>, %arg22: memref<144x512xbf16, #tpu.memory_space<vmem>>) attributes {dimension_semantics = [#tpu.dimension_semantics<arbitrary>], iteration_bounds = array<i64: 1>, scalar_prefetch = 0 : i64, scratch_operands = 1 : i64, tpu.core_type = #tpu.core_type<tc>, window_params = [{pipeline_mode = #tpu.pipeline_mode<synchronous>, transform_indices = @transform_0, window_bounds = array<i64: 4, 512>}, {pipeline_mode = #tpu.pipeline_mode<synchronous>, transform_indices = @transform_1, window_bounds = array<i64: 9, 512>}, {pipeline_mode = #tpu.pipeline_mode<synchronous>, transform_indices = @transform_2, window_bounds = array<i64: 4, 1>}, {pipeline_mode = #tpu.pipeline_mode<synchronous>, transform_indices = @transform_3, window_bounds = array<i64: 4, 1>}, {pipeline_mode = #tpu.pipeline_mode<synchronous>, transform_indices = @transform_4, window_bounds = array<i64: 16, 4>}, {pipeline_mode = #tpu.pipeline_mode<synchronous>, transform_indices = @transform_5, window_bounds = array<i64: 16, 1>}, {pipeline_mode = #tpu.pipeline_mode<synchronous>, transform_indices = @transform_6, window_bounds = array<i64: 16, 1>}, {pipeline_mode = #tpu.pipeline_mode<synchronous>, transform_indices = @transform_7, window_bounds = array<i64: 4, 144>}, {pipeline_mode = #tpu.pipeline_mode<synchronous>, transform_indices = @transform_8, window_bounds = array<i64: 8, 1>}, {pipeline_mode = #tpu.pipeline_mode<synchronous>, transform_indices = @transform_9, window_bounds = array<i64: 8, 1>}, {pipeline_mode = #tpu.pipeline_mode<synchronous>, transform_indices = @transform_10, window_bounds = array<i64: 16, 8>}, {pipeline_mode = #tpu.pipeline_mode<synchronous>, transform_indices = @transform_11, window_bounds = array<i64: 16, 1>}, {pipeline_mode = #tpu.pipeline_mode<synchronous>, transform_indices = @transform_12, window_bounds = array<i64: 16, 1>}, {pipeline_mode = #tpu.pipeline_mode<synchronous>, transform_indices = @transform_13, window_bounds = array<i64: 4, 144>}, {pipeline_mode = #tpu.pipeline_mode<synchronous>, transform_indices = @transform_14, window_bounds = array<i64: 12, 1>}, {pipeline_mode = #tpu.pipeline_mode<synchronous>, transform_indices = @transform_15, window_bounds = array<i64: 12, 1>}, {pipeline_mode = #tpu.pipeline_mode<synchronous>, transform_indices = @transform_16, window_bounds = array<i64: 16, 12>}, {pipeline_mode = #tpu.pipeline_mode<synchronous>, transform_indices = @transform_17, window_bounds = array<i64: 16, 1>}, {pipeline_mode = #tpu.pipeline_mode<synchronous>, transform_indices = @transform_18, window_bounds = array<i64: 16, 1>}, {pipeline_mode = #tpu.pipeline_mode<synchronous>, transform_indices = @transform_19, window_bounds = array<i64: 4, 144>}, {pipeline_mode = #tpu.pipeline_mode<synchronous>, transform_indices = @transform_20, window_bounds = array<i64: 16, 512>}]} {
    %c0 = arith.constant 0 : index
    %c0_0 = arith.constant 0 : index
    %0 = vector.load %arg1[%c0, %c0_0] : memref<4x512xf32, #tpu.memory_space<vmem>>, vector<4x512xf32>
    %c0_1 = arith.constant 0 : index
    %c0_2 = arith.constant 0 : index
    %1 = vector.load %arg21[%c0_1, %c0_2] : memref<16x512xf32, #tpu.memory_space<vmem>>, vector<4x512xf32>
    tpu.vector_store %arg21[%c0_1, %c0_2], %0 {strides = array<i32>} : memref<16x512xf32, #tpu.memory_space<vmem>>, vector<4x512xf32>,
    %c0_3 = arith.constant 0 : index
    %c0_4 = arith.constant 0 : index
    %2 = vector.load %arg21[%c0_3, %c0_4] : memref<16x512xf32, #tpu.memory_space<vmem>>, vector<4x512xf32>
    %cst = arith.constant dense<0.000000e+00> : vector<4xf32>
    %3 = vector.multi_reduction <add>, %2, %cst [1] : vector<4x512xf32> to vector<4xf32>
    %4 = vector.shape_cast %3 : vector<4xf32> to vector<4x1xf32>
    %cst_5 = arith.constant 0.001953125 : f32
    %5 = vector.broadcast %cst_5 : f32 to vector<4x1xf32>
    %6 = arith.mulf %4, %5 : vector<4x1xf32>
    %7 = arith.mulf %2, %2 : vector<4x512xf32>
    %cst_6 = arith.constant dense<0.000000e+00> : vector<4xf32>
    %8 = vector.multi_reduction <add>, %7, %cst_6 [1] : vector<4x512xf32> to vector<4xf32>
    %9 = vector.shape_cast %8 : vector<4xf32> to vector<4x1xf32>
    %cst_7 = arith.constant 0.001953125 : f32
    %10 = vector.broadcast %cst_7 : f32 to vector<4x1xf32>
    %11 = arith.mulf %9, %10 : vector<4x1xf32>
    %12 = arith.mulf %6, %6 : vector<4x1xf32>
    %13 = arith.subf %11, %12 : vector<4x1xf32>
    %cst_8 = arith.constant 0.000000e+00 : f32
    %14 = vector.broadcast %cst_8 : f32 to vector<4x1xf32>
    %15 = arith.maximumf %13, %14 : vector<4x1xf32>
    %c0_9 = arith.constant 0 : index
    %c0_10 = arith.constant 0 : index
    %16 = vector.load %arg3[%c0_9, %c0_10] : memref<4x1xf32, #tpu.memory_space<vmem>>, vector<4x1xf32>
    %cst_11 = arith.constant 9.99999974E-6 : f32
    %17 = vector.broadcast %cst_11 : f32 to vector<4x1xf32>
    %18 = arith.addf %15, %17 : vector<4x1xf32>
    %19 = math.rsqrt %18 : vector<4x1xf32>
    %20 = arith.mulf %16, %19 : vector<4x1xf32>
    %c0_12 = arith.constant 0 : index
    %c0_13 = arith.constant 0 : index
    %21 = vector.load %arg4[%c0_12, %c0_13] : memref<4x1xf32, #tpu.memory_space<vmem>>, vector<4x1xf32>
    %22 = arith.mulf %6, %20 : vector<4x1xf32>
    %23 = arith.subf %21, %22 : vector<4x1xf32>
    %24 = vector.broadcast %20 : vector<4x1xf32> to vector<4x512xf32>
    %25 = arith.mulf %2, %24 : vector<4x512xf32>
    %26 = vector.broadcast %23 : vector<4x1xf32> to vector<4x512xf32>
    %27 = arith.addf %25, %26 : vector<4x512xf32>
    %cst_14 = arith.constant 0.000000e+00 : f32
    %28 = vector.broadcast %cst_14 : f32 to vector<4x512xf32>
    %29 = arith.maximumf %27, %28 : vector<4x512xf32>
    %c0_15 = arith.constant 0 : index
    %c0_16 = arith.constant 0 : index
    %30 = vector.load %arg5[%c0_15, %c0_16] : memref<16x4xbf16, #tpu.memory_space<vmem>>, vector<16x4xbf16>
    %31 = arith.truncf %29 : vector<4x512xf32> to vector<4x512xbf16>
    %cst_17 = arith.constant dense<0.000000e+00> : vector<16x512xf32>
    %32 = tpu.matmul %30, %31, %cst_17 {dimension_numbers = #tpu.dot_dimension_numbers<[1], [0], [0], [1], [0, 0, 1, 1], [], []>} : vector<16x4xbf16>, vector<4x512xbf16>, vector<16x512xf32> -> vector<16x512xf32>
    %cst_18 = arith.constant dense<0.000000e+00> : vector<16xf32>
    %33 = vector.multi_reduction <add>, %32, %cst_18 [1] : vector<16x512xf32> to vector<16xf32>
    %34 = vector.shape_cast %33 : vector<16xf32> to vector<16x1xf32>
    %cst_19 = arith.constant 0.001953125 : f32
    %35 = vector.broadcast %cst_19 : f32 to vector<16x1xf32>
    %36 = arith.mulf %34, %35 : vector<16x1xf32>
    %37 = arith.mulf %32, %32 : vector<16x512xf32>
    %cst_20 = arith.constant dense<0.000000e+00> : vector<16xf32>
    %38 = vector.multi_reduction <add>, %37, %cst_20 [1] : vector<16x512xf32> to vector<16xf32>
    %39 = vector.shape_cast %38 : vector<16xf32> to vector<16x1xf32>
    %cst_21 = arith.constant 0.001953125 : f32
    %40 = vector.broadcast %cst_21 : f32 to vector<16x1xf32>
    %41 = arith.mulf %39, %40 : vector<16x1xf32>
    %42 = arith.mulf %36, %36 : vector<16x1xf32>
    %43 = arith.subf %41, %42 : vector<16x1xf32>
    %cst_22 = arith.constant 0.000000e+00 : f32
    %44 = vector.broadcast %cst_22 : f32 to vector<16x1xf32>
    %45 = arith.maximumf %43, %44 : vector<16x1xf32>
    %c0_23 = arith.constant 0 : index
    %c0_24 = arith.constant 0 : index
    %46 = vector.load %arg6[%c0_23, %c0_24] : memref<16x1xf32, #tpu.memory_space<vmem>>, vector<16x1xf32>
    %cst_25 = arith.constant 9.99999974E-6 : f32
    %47 = vector.broadcast %cst_25 : f32 to vector<16x1xf32>
    %48 = arith.addf %45, %47 : vector<16x1xf32>
    %49 = math.rsqrt %48 : vector<16x1xf32>
    %50 = arith.mulf %46, %49 : vector<16x1xf32>
    %c0_26 = arith.constant 0 : index
    %c0_27 = arith.constant 0 : index
    %51 = vector.load %arg7[%c0_26, %c0_27] : memref<16x1xf32, #tpu.memory_space<vmem>>, vector<16x1xf32>
    %52 = arith.mulf %36, %50 : vector<16x1xf32>
    %53 = arith.subf %51, %52 : vector<16x1xf32>
    %54 = vector.broadcast %50 : vector<16x1xf32> to vector<16x512xf32>
    %55 = arith.mulf %32, %54 : vector<16x512xf32>
    %56 = vector.broadcast %53 : vector<16x1xf32> to vector<16x512xf32>
    %57 = arith.addf %55, %56 : vector<16x512xf32>
    %cst_28 = arith.constant 0.000000e+00 : f32
    %58 = vector.broadcast %cst_28 : f32 to vector<16x512xf32>
    %59 = arith.maximumf %57, %58 : vector<16x512xf32>
    %c17_i32 = arith.constant 17 : i32
    %60 = tpu.dynamic_rotate %59 by %c17_i32 dim 1 : vector<16x512xf32>, i32 -> vector<16x512xf32>
    %c0_29 = arith.constant 0 : index
    %c0_30 = arith.constant 0 : index
    %61 = vector.load %arg2[%c0_29, %c0_30] : memref<9x512xf32, #tpu.memory_space<vmem>>, vector<1x512xf32>
    %62 = vector.broadcast %61 : vector<1x512xf32> to vector<16x512xf32>
    %63 = arith.mulf %60, %62 : vector<16x512xf32>
    %64 = arith.truncf %63 : vector<16x512xf32> to vector<16x512xbf16>
    %c0_31 = arith.constant 0 : index
    %c0_32 = arith.constant 0 : index
    %65 = vector.load %arg22[%c0_31, %c0_32] : memref<144x512xbf16, #tpu.memory_space<vmem>>, vector<16x512xbf16>
    tpu.vector_store %arg22[%c0_31, %c0_32], %64 {strides = array<i32>} : memref<144x512xbf16, #tpu.memory_space<vmem>>, vector<16x512xbf16>,
    %c16_i32 = arith.constant 16 : i32
    %66 = tpu.dynamic_rotate %59 by %c16_i32 dim 1 : vector<16x512xf32>, i32 -> vector<16x512xf32>
    %c1 = arith.constant 1 : index
    %c0_33 = arith.constant 0 : index
    %67 = vector.load %arg2[%c1, %c0_33] : memref<9x512xf32, #tpu.memory_space<vmem>>, vector<1x512xf32>
    %68 = vector.broadcast %67 : vector<1x512xf32> to vector<16x512xf32>
    %69 = arith.mulf %66, %68 : vector<16x512xf32>
    %70 = arith.truncf %69 : vector<16x512xf32> to vector<16x512xbf16>
    %c16 = arith.constant 16 : index
    %c0_34 = arith.constant 0 : index
    %71 = vector.load %arg22[%c16, %c0_34] : memref<144x512xbf16, #tpu.memory_space<vmem>>, vector<16x512xbf16>
    tpu.vector_store %arg22[%c16, %c0_34], %70 {strides = array<i32>} : memref<144x512xbf16, #tpu.memory_space<vmem>>, vector<16x512xbf16>,
    %c15_i32 = arith.constant 15 : i32
    %72 = tpu.dynamic_rotate %59 by %c15_i32 dim 1 : vector<16x512xf32>, i32 -> vector<16x512xf32>
    %c2 = arith.constant 2 : index
    %c0_35 = arith.constant 0 : index
    %73 = vector.load %arg2[%c2, %c0_35] : memref<9x512xf32, #tpu.memory_space<vmem>>, vector<1x512xf32>
    %74 = vector.broadcast %73 : vector<1x512xf32> to vector<16x512xf32>
    %75 = arith.mulf %72, %74 : vector<16x512xf32>
    %76 = arith.truncf %75 : vector<16x512xf32> to vector<16x512xbf16>
    %c32 = arith.constant 32 : index
    %c0_36 = arith.constant 0 : index
    %77 = vector.load %arg22[%c32, %c0_36] : memref<144x512xbf16, #tpu.memory_space<vmem>>, vector<16x512xbf16>
    tpu.vector_store %arg22[%c32, %c0_36], %76 {strides = array<i32>} : memref<144x512xbf16, #tpu.memory_space<vmem>>, vector<16x512xbf16>,
    %c1_i32 = arith.constant 1 : i32
    %78 = tpu.dynamic_rotate %59 by %c1_i32 dim 1 : vector<16x512xf32>, i32 -> vector<16x512xf32>
    %c3 = arith.constant 3 : index
    %c0_37 = arith.constant 0 : index
    %79 = vector.load %arg2[%c3, %c0_37] : memref<9x512xf32, #tpu.memory_space<vmem>>, vector<1x512xf32>
    %80 = vector.broadcast %79 : vector<1x512xf32> to vector<16x512xf32>
    %81 = arith.mulf %78, %80 : vector<16x512xf32>
    %82 = arith.truncf %81 : vector<16x512xf32> to vector<16x512xbf16>
    %c48 = arith.constant 48 : index
    %c0_38 = arith.constant 0 : index
    %83 = vector.load %arg22[%c48, %c0_38] : memref<144x512xbf16, #tpu.memory_space<vmem>>, vector<16x512xbf16>
    tpu.vector_store %arg22[%c48, %c0_38], %82 {strides = array<i32>} : memref<144x512xbf16, #tpu.memory_space<vmem>>, vector<16x512xbf16>,
    %84 = arith.truncf %59 : vector<16x512xf32> to vector<16x512xbf16>
    %c64 = arith.constant 64 : index
    %c0_39 = arith.constant 0 : index
    %85 = vector.load %arg22[%c64, %c0_39] : memref<144x512xbf16, #tpu.memory_space<vmem>>, vector<16x512xbf16>
    tpu.vector_store %arg22[%c64, %c0_39], %84 {strides = array<i32>} : memref<144x512xbf16, #tpu.memory_space<vmem>>, vector<16x512xbf16>,
    %c511_i32 = arith.constant 511 : i32
    %86 = tpu.dynamic_rotate %59 by %c511_i32 dim 1 : vector<16x512xf32>, i32 -> vector<16x512xf32>
    %c5 = arith.constant 5 : index
    %c0_40 = arith.constant 0 : index
    %87 = vector.load %arg2[%c5, %c0_40] : memref<9x512xf32, #tpu.memory_space<vmem>>, vector<1x512xf32>
    %88 = vector.broadcast %87 : vector<1x512xf32> to vector<16x512xf32>
    %89 = arith.mulf %86, %88 : vector<16x512xf32>
    %90 = arith.truncf %89 : vector<16x512xf32> to vector<16x512xbf16>
    %c80 = arith.constant 80 : index
    %c0_41 = arith.constant 0 : index
    %91 = vector.load %arg22[%c80, %c0_41] : memref<144x512xbf16, #tpu.memory_space<vmem>>, vector<16x512xbf16>
    tpu.vector_store %arg22[%c80, %c0_41], %90 {strides = array<i32>} : memref<144x512xbf16, #tpu.memory_space<vmem>>, vector<16x512xbf16>,
    %c497_i32 = arith.constant 497 : i32
    %92 = tpu.dynamic_rotate %59 by %c497_i32 dim 1 : vector<16x512xf32>, i32 -> vector<16x512xf32>
    %c6 = arith.constant 6 : index
    %c0_42 = arith.constant 0 : index
    %93 = vector.load %arg2[%c6, %c0_42] : memref<9x512xf32, #tpu.memory_space<vmem>>, vector<1x512xf32>
    %94 = vector.broadcast %93 : vector<1x512xf32> to vector<16x512xf32>
    %95 = arith.mulf %92, %94 : vector<16x512xf32>
    %96 = arith.truncf %95 : vector<16x512xf32> to vector<16x512xbf16>
    %c96 = arith.constant 96 : index
    %c0_43 = arith.constant 0 : index
    %97 = vector.load %arg22[%c96, %c0_43] : memref<144x512xbf16, #tpu.memory_space<vmem>>, vector<16x512xbf16>
    tpu.vector_store %arg22[%c96, %c0_43], %96 {strides = array<i32>} : memref<144x512xbf16, #tpu.memory_space<vmem>>, vector<16x512xbf16>,
    %c496_i32 = arith.constant 496 : i32
    %98 = tpu.dynamic_rotate %59 by %c496_i32 dim 1 : vector<16x512xf32>, i32 -> vector<16x512xf32>
    %c7 = arith.constant 7 : index
    %c0_44 = arith.constant 0 : index
    %99 = vector.load %arg2[%c7, %c0_44] : memref<9x512xf32, #tpu.memory_space<vmem>>, vector<1x512xf32>
    %100 = vector.broadcast %99 : vector<1x512xf32> to vector<16x512xf32>
    %101 = arith.mulf %98, %100 : vector<16x512xf32>
    %102 = arith.truncf %101 : vector<16x512xf32> to vector<16x512xbf16>
    %c112 = arith.constant 112 : index
    %c0_45 = arith.constant 0 : index
    %103 = vector.load %arg22[%c112, %c0_45] : memref<144x512xbf16, #tpu.memory_space<vmem>>, vector<16x512xbf16>
    tpu.vector_store %arg22[%c112, %c0_45], %102 {strides = array<i32>} : memref<144x512xbf16, #tpu.memory_space<vmem>>, vector<16x512xbf16>,
    %c495_i32 = arith.constant 495 : i32
    %104 = tpu.dynamic_rotate %59 by %c495_i32 dim 1 : vector<16x512xf32>, i32 -> vector<16x512xf32>
    %c8 = arith.constant 8 : index
    %c0_46 = arith.constant 0 : index
    %105 = vector.load %arg2[%c8, %c0_46] : memref<9x512xf32, #tpu.memory_space<vmem>>, vector<1x512xf32>
    %106 = vector.broadcast %105 : vector<1x512xf32> to vector<16x512xf32>
    %107 = arith.mulf %104, %106 : vector<16x512xf32>
    %108 = arith.truncf %107 : vector<16x512xf32> to vector<16x512xbf16>
    %c128 = arith.constant 128 : index
    %c0_47 = arith.constant 0 : index
    %109 = vector.load %arg22[%c128, %c0_47] : memref<144x512xbf16, #tpu.memory_space<vmem>>, vector<16x512xbf16>
    tpu.vector_store %arg22[%c128, %c0_47], %108 {strides = array<i32>} : memref<144x512xbf16, #tpu.memory_space<vmem>>, vector<16x512xbf16>,
    %c0_48 = arith.constant 0 : index
    %c0_49 = arith.constant 0 : index
    %110 = vector.load %arg8[%c0_48, %c0_49] : memref<4x144xbf16, #tpu.memory_space<vmem>>, vector<4x144xbf16>
    %c0_50 = arith.constant 0 : index
    %c0_51 = arith.constant 0 : index
    %111 = vector.load %arg22[%c0_50, %c0_51] : memref<144x512xbf16, #tpu.memory_space<vmem>>, vector<144x512xbf16>
    %cst_52 = arith.constant dense<0.000000e+00> : vector<4x512xf32>
    %112 = tpu.matmul %110, %111, %cst_52 {dimension_numbers = #tpu.dot_dimension_numbers<[1], [0], [0], [1], [0, 0, 1, 1], [], []>} : vector<4x144xbf16>, vector<144x512xbf16>, vector<4x512xf32> -> vector<4x512xf32>
    %c4 = arith.constant 4 : index
    %c0_53 = arith.constant 0 : index
    %113 = vector.load %arg21[%c4, %c0_53] : memref<16x512xf32, #tpu.memory_space<vmem>>, vector<4x512xf32>
    tpu.vector_store %arg21[%c4, %c0_53], %112 {strides = array<i32>} : memref<16x512xf32, #tpu.memory_space<vmem>>, vector<4x512xf32>,
    %c0_54 = arith.constant 0 : index
    %c0_55 = arith.constant 0 : index
    %114 = vector.load %arg21[%c0_54, %c0_55] : memref<16x512xf32, #tpu.memory_space<vmem>>, vector<8x512xf32>
    %cst_56 = arith.constant dense<0.000000e+00> : vector<8xf32>
    %115 = vector.multi_reduction <add>, %114, %cst_56 [1] : vector<8x512xf32> to vector<8xf32>
    %116 = vector.shape_cast %115 : vector<8xf32> to vector<8x1xf32>
    %cst_57 = arith.constant 0.001953125 : f32
    %117 = vector.broadcast %cst_57 : f32 to vector<8x1xf32>
    %118 = arith.mulf %116, %117 : vector<8x1xf32>
    %119 = arith.mulf %114, %114 : vector<8x512xf32>
    %cst_58 = arith.constant dense<0.000000e+00> : vector<8xf32>
    %120 = vector.multi_reduction <add>, %119, %cst_58 [1] : vector<8x512xf32> to vector<8xf32>
    %121 = vector.shape_cast %120 : vector<8xf32> to vector<8x1xf32>
    %cst_59 = arith.constant 0.001953125 : f32
    %122 = vector.broadcast %cst_59 : f32 to vector<8x1xf32>
    %123 = arith.mulf %121, %122 : vector<8x1xf32>
    %124 = arith.mulf %118, %118 : vector<8x1xf32>
    %125 = arith.subf %123, %124 : vector<8x1xf32>
    %cst_60 = arith.constant 0.000000e+00 : f32
    %126 = vector.broadcast %cst_60 : f32 to vector<8x1xf32>
    %127 = arith.maximumf %125, %126 : vector<8x1xf32>
    %c0_61 = arith.constant 0 : index
    %c0_62 = arith.constant 0 : index
    %128 = vector.load %arg9[%c0_61, %c0_62] : memref<8x1xf32, #tpu.memory_space<vmem>>, vector<8x1xf32>
    %cst_63 = arith.constant 9.99999974E-6 : f32
    %129 = vector.broadcast %cst_63 : f32 to vector<8x1xf32>
    %130 = arith.addf %127, %129 : vector<8x1xf32>
    %131 = math.rsqrt %130 : vector<8x1xf32>
    %132 = arith.mulf %128, %131 : vector<8x1xf32>
    %c0_64 = arith.constant 0 : index
    %c0_65 = arith.constant 0 : index
    %133 = vector.load %arg10[%c0_64, %c0_65] : memref<8x1xf32, #tpu.memory_space<vmem>>, vector<8x1xf32>
    %134 = arith.mulf %118, %132 : vector<8x1xf32>
    %135 = arith.subf %133, %134 : vector<8x1xf32>
    %136 = vector.broadcast %132 : vector<8x1xf32> to vector<8x512xf32>
    %137 = arith.mulf %114, %136 : vector<8x512xf32>
    %138 = vector.broadcast %135 : vector<8x1xf32> to vector<8x512xf32>
    %139 = arith.addf %137, %138 : vector<8x512xf32>
    %cst_66 = arith.constant 0.000000e+00 : f32
    %140 = vector.broadcast %cst_66 : f32 to vector<8x512xf32>
    %141 = arith.maximumf %139, %140 : vector<8x512xf32>
    %c0_67 = arith.constant 0 : index
    %c0_68 = arith.constant 0 : index
    %142 = vector.load %arg11[%c0_67, %c0_68] : memref<16x8xbf16, #tpu.memory_space<vmem>>, vector<16x8xbf16>
    %143 = arith.truncf %141 : vector<8x512xf32> to vector<8x512xbf16>
    %cst_69 = arith.constant dense<0.000000e+00> : vector<16x512xf32>
    %144 = tpu.matmul %142, %143, %cst_69 {dimension_numbers = #tpu.dot_dimension_numbers<[1], [0], [0], [1], [0, 0, 1, 1], [], []>} : vector<16x8xbf16>, vector<8x512xbf16>, vector<16x512xf32> -> vector<16x512xf32>
    %cst_70 = arith.constant dense<0.000000e+00> : vector<16xf32>
    %145 = vector.multi_reduction <add>, %144, %cst_70 [1] : vector<16x512xf32> to vector<16xf32>
    %146 = vector.shape_cast %145 : vector<16xf32> to vector<16x1xf32>
    %cst_71 = arith.constant 0.001953125 : f32
    %147 = vector.broadcast %cst_71 : f32 to vector<16x1xf32>
    %148 = arith.mulf %146, %147 : vector<16x1xf32>
    %149 = arith.mulf %144, %144 : vector<16x512xf32>
    %cst_72 = arith.constant dense<0.000000e+00> : vector<16xf32>
    %150 = vector.multi_reduction <add>, %149, %cst_72 [1] : vector<16x512xf32> to vector<16xf32>
    %151 = vector.shape_cast %150 : vector<16xf32> to vector<16x1xf32>
    %cst_73 = arith.constant 0.001953125 : f32
    %152 = vector.broadcast %cst_73 : f32 to vector<16x1xf32>
    %153 = arith.mulf %151, %152 : vector<16x1xf32>
    %154 = arith.mulf %148, %148 : vector<16x1xf32>
    %155 = arith.subf %153, %154 : vector<16x1xf32>
    %cst_74 = arith.constant 0.000000e+00 : f32
    %156 = vector.broadcast %cst_74 : f32 to vector<16x1xf32>
    %157 = arith.maximumf %155, %156 : vector<16x1xf32>
    %c0_75 = arith.constant 0 : index
    %c0_76 = arith.constant 0 : index
    %158 = vector.load %arg12[%c0_75, %c0_76] : memref<16x1xf32, #tpu.memory_space<vmem>>, vector<16x1xf32>
    %cst_77 = arith.constant 9.99999974E-6 : f32
    %159 = vector.broadcast %cst_77 : f32 to vector<16x1xf32>
    %160 = arith.addf %157, %159 : vector<16x1xf32>
    %161 = math.rsqrt %160 : vector<16x1xf32>
    %162 = arith.mulf %158, %161 : vector<16x1xf32>
    %c0_78 = arith.constant 0 : index
    %c0_79 = arith.constant 0 : index
    %163 = vector.load %arg13[%c0_78, %c0_79] : memref<16x1xf32, #tpu.memory_space<vmem>>, vector<16x1xf32>
    %164 = arith.mulf %148, %162 : vector<16x1xf32>
    %165 = arith.subf %163, %164 : vector<16x1xf32>
    %166 = vector.broadcast %162 : vector<16x1xf32> to vector<16x512xf32>
    %167 = arith.mulf %144, %166 : vector<16x512xf32>
    %168 = vector.broadcast %165 : vector<16x1xf32> to vector<16x512xf32>
    %169 = arith.addf %167, %168 : vector<16x512xf32>
    %cst_80 = arith.constant 0.000000e+00 : f32
    %170 = vector.broadcast %cst_80 : f32 to vector<16x512xf32>
    %171 = arith.maximumf %169, %170 : vector<16x512xf32>
    %c17_i32_81 = arith.constant 17 : i32
    %172 = tpu.dynamic_rotate %171 by %c17_i32_81 dim 1 : vector<16x512xf32>, i32 -> vector<16x512xf32>
    %c0_82 = arith.constant 0 : index
    %c0_83 = arith.constant 0 : index
    %173 = vector.load %arg2[%c0_82, %c0_83] : memref<9x512xf32, #tpu.memory_space<vmem>>, vector<1x512xf32>
    %174 = vector.broadcast %173 : vector<1x512xf32> to vector<16x512xf32>
    %175 = arith.mulf %172, %174 : vector<16x512xf32>
    %176 = arith.truncf %175 : vector<16x512xf32> to vector<16x512xbf16>
    %c0_84 = arith.constant 0 : index
    %c0_85 = arith.constant 0 : index
    %177 = vector.load %arg22[%c0_84, %c0_85] : memref<144x512xbf16, #tpu.memory_space<vmem>>, vector<16x512xbf16>
    tpu.vector_store %arg22[%c0_84, %c0_85], %176 {strides = array<i32>} : memref<144x512xbf16, #tpu.memory_space<vmem>>, vector<16x512xbf16>,
    %c16_i32_86 = arith.constant 16 : i32
    %178 = tpu.dynamic_rotate %171 by %c16_i32_86 dim 1 : vector<16x512xf32>, i32 -> vector<16x512xf32>
    %c1_87 = arith.constant 1 : index
    %c0_88 = arith.constant 0 : index
    %179 = vector.load %arg2[%c1_87, %c0_88] : memref<9x512xf32, #tpu.memory_space<vmem>>, vector<1x512xf32>
    %180 = vector.broadcast %179 : vector<1x512xf32> to vector<16x512xf32>
    %181 = arith.mulf %178, %180 : vector<16x512xf32>
    %182 = arith.truncf %181 : vector<16x512xf32> to vector<16x512xbf16>
    %c16_89 = arith.constant 16 : index
    %c0_90 = arith.constant 0 : index
    %183 = vector.load %arg22[%c16_89, %c0_90] : memref<144x512xbf16, #tpu.memory_space<vmem>>, vector<16x512xbf16>
    tpu.vector_store %arg22[%c16_89, %c0_90], %182 {strides = array<i32>} : memref<144x512xbf16, #tpu.memory_space<vmem>>, vector<16x512xbf16>,
    %c15_i32_91 = arith.constant 15 : i32
    %184 = tpu.dynamic_rotate %171 by %c15_i32_91 dim 1 : vector<16x512xf32>, i32 -> vector<16x512xf32>
    %c2_92 = arith.constant 2 : index
    %c0_93 = arith.constant 0 : index
    %185 = vector.load %arg2[%c2_92, %c0_93] : memref<9x512xf32, #tpu.memory_space<vmem>>, vector<1x512xf32>
    %186 = vector.broadcast %185 : vector<1x512xf32> to vector<16x512xf32>
    %187 = arith.mulf %184, %186 : vector<16x512xf32>
    %188 = arith.truncf %187 : vector<16x512xf32> to vector<16x512xbf16>
    %c32_94 = arith.constant 32 : index
    %c0_95 = arith.constant 0 : index
    %189 = vector.load %arg22[%c32_94, %c0_95] : memref<144x512xbf16, #tpu.memory_space<vmem>>, vector<16x512xbf16>
    tpu.vector_store %arg22[%c32_94, %c0_95], %188 {strides = array<i32>} : memref<144x512xbf16, #tpu.memory_space<vmem>>, vector<16x512xbf16>,
    %c1_i32_96 = arith.constant 1 : i32
    %190 = tpu.dynamic_rotate %171 by %c1_i32_96 dim 1 : vector<16x512xf32>, i32 -> vector<16x512xf32>
    %c3_97 = arith.constant 3 : index
    %c0_98 = arith.constant 0 : index
    %191 = vector.load %arg2[%c3_97, %c0_98] : memref<9x512xf32, #tpu.memory_space<vmem>>, vector<1x512xf32>
    %192 = vector.broadcast %191 : vector<1x512xf32> to vector<16x512xf32>
    %193 = arith.mulf %190, %192 : vector<16x512xf32>
    %194 = arith.truncf %193 : vector<16x512xf32> to vector<16x512xbf16>
    %c48_99 = arith.constant 48 : index
    %c0_100 = arith.constant 0 : index
    %195 = vector.load %arg22[%c48_99, %c0_100] : memref<144x512xbf16, #tpu.memory_space<vmem>>, vector<16x512xbf16>
    tpu.vector_store %arg22[%c48_99, %c0_100], %194 {strides = array<i32>} : memref<144x512xbf16, #tpu.memory_space<vmem>>, vector<16x512xbf16>,
    %196 = arith.truncf %171 : vector<16x512xf32> to vector<16x512xbf16>
    %c64_101 = arith.constant 64 : index
    %c0_102 = arith.constant 0 : index
    %197 = vector.load %arg22[%c64_101, %c0_102] : memref<144x512xbf16, #tpu.memory_space<vmem>>, vector<16x512xbf16>
    tpu.vector_store %arg22[%c64_101, %c0_102], %196 {strides = array<i32>} : memref<144x512xbf16, #tpu.memory_space<vmem>>, vector<16x512xbf16>,
    %c511_i32_103 = arith.constant 511 : i32
    %198 = tpu.dynamic_rotate %171 by %c511_i32_103 dim 1 : vector<16x512xf32>, i32 -> vector<16x512xf32>
    %c5_104 = arith.constant 5 : index
    %c0_105 = arith.constant 0 : index
    %199 = vector.load %arg2[%c5_104, %c0_105] : memref<9x512xf32, #tpu.memory_space<vmem>>, vector<1x512xf32>
    %200 = vector.broadcast %199 : vector<1x512xf32> to vector<16x512xf32>
    %201 = arith.mulf %198, %200 : vector<16x512xf32>
    %202 = arith.truncf %201 : vector<16x512xf32> to vector<16x512xbf16>
    %c80_106 = arith.constant 80 : index
    %c0_107 = arith.constant 0 : index
    %203 = vector.load %arg22[%c80_106, %c0_107] : memref<144x512xbf16, #tpu.memory_space<vmem>>, vector<16x512xbf16>
    tpu.vector_store %arg22[%c80_106, %c0_107], %202 {strides = array<i32>} : memref<144x512xbf16, #tpu.memory_space<vmem>>, vector<16x512xbf16>,
    %c497_i32_108 = arith.constant 497 : i32
    %204 = tpu.dynamic_rotate %171 by %c497_i32_108 dim 1 : vector<16x512xf32>, i32 -> vector<16x512xf32>
    %c6_109 = arith.constant 6 : index
    %c0_110 = arith.constant 0 : index
    %205 = vector.load %arg2[%c6_109, %c0_110] : memref<9x512xf32, #tpu.memory_space<vmem>>, vector<1x512xf32>
    %206 = vector.broadcast %205 : vector<1x512xf32> to vector<16x512xf32>
    %207 = arith.mulf %204, %206 : vector<16x512xf32>
    %208 = arith.truncf %207 : vector<16x512xf32> to vector<16x512xbf16>
    %c96_111 = arith.constant 96 : index
    %c0_112 = arith.constant 0 : index
    %209 = vector.load %arg22[%c96_111, %c0_112] : memref<144x512xbf16, #tpu.memory_space<vmem>>, vector<16x512xbf16>
    tpu.vector_store %arg22[%c96_111, %c0_112], %208 {strides = array<i32>} : memref<144x512xbf16, #tpu.memory_space<vmem>>, vector<16x512xbf16>,
    %c496_i32_113 = arith.constant 496 : i32
    %210 = tpu.dynamic_rotate %171 by %c496_i32_113 dim 1 : vector<16x512xf32>, i32 -> vector<16x512xf32>
    %c7_114 = arith.constant 7 : index
    %c0_115 = arith.constant 0 : index
    %211 = vector.load %arg2[%c7_114, %c0_115] : memref<9x512xf32, #tpu.memory_space<vmem>>, vector<1x512xf32>
    %212 = vector.broadcast %211 : vector<1x512xf32> to vector<16x512xf32>
    %213 = arith.mulf %210, %212 : vector<16x512xf32>
    %214 = arith.truncf %213 : vector<16x512xf32> to vector<16x512xbf16>
    %c112_116 = arith.constant 112 : index
    %c0_117 = arith.constant 0 : index
    %215 = vector.load %arg22[%c112_116, %c0_117] : memref<144x512xbf16, #tpu.memory_space<vmem>>, vector<16x512xbf16>
    tpu.vector_store %arg22[%c112_116, %c0_117], %214 {strides = array<i32>} : memref<144x512xbf16, #tpu.memory_space<vmem>>, vector<16x512xbf16>,
    %c495_i32_118 = arith.constant 495 : i32
    %216 = tpu.dynamic_rotate %171 by %c495_i32_118 dim 1 : vector<16x512xf32>, i32 -> vector<16x512xf32>
    %c8_119 = arith.constant 8 : index
    %c0_120 = arith.constant 0 : index
    %217 = vector.load %arg2[%c8_119, %c0_120] : memref<9x512xf32, #tpu.memory_space<vmem>>, vector<1x512xf32>
    %218 = vector.broadcast %217 : vector<1x512xf32> to vector<16x512xf32>
    %219 = arith.mulf %216, %218 : vector<16x512xf32>
    %220 = arith.truncf %219 : vector<16x512xf32> to vector<16x512xbf16>
    %c128_121 = arith.constant 128 : index
    %c0_122 = arith.constant 0 : index
    %221 = vector.load %arg22[%c128_121, %c0_122] : memref<144x512xbf16, #tpu.memory_space<vmem>>, vector<16x512xbf16>
    tpu.vector_store %arg22[%c128_121, %c0_122], %220 {strides = array<i32>} : memref<144x512xbf16, #tpu.memory_space<vmem>>, vector<16x512xbf16>,
    %c0_123 = arith.constant 0 : index
    %c0_124 = arith.constant 0 : index
    %222 = vector.load %arg14[%c0_123, %c0_124] : memref<4x144xbf16, #tpu.memory_space<vmem>>, vector<4x144xbf16>
    %c0_125 = arith.constant 0 : index
    %c0_126 = arith.constant 0 : index
    %223 = vector.load %arg22[%c0_125, %c0_126] : memref<144x512xbf16, #tpu.memory_space<vmem>>, vector<144x512xbf16>
    %cst_127 = arith.constant dense<0.000000e+00> : vector<4x512xf32>
    %224 = tpu.matmul %222, %223, %cst_127 {dimension_numbers = #tpu.dot_dimension_numbers<[1], [0], [0], [1], [0, 0, 1, 1], [], []>} : vector<4x144xbf16>, vector<144x512xbf16>, vector<4x512xf32> -> vector<4x512xf32>
    %c8_128 = arith.constant 8 : index
    %c0_129 = arith.constant 0 : index
    %225 = vector.load %arg21[%c8_128, %c0_129] : memref<16x512xf32, #tpu.memory_space<vmem>>, vector<4x512xf32>
    tpu.vector_store %arg21[%c8_128, %c0_129], %224 {strides = array<i32>} : memref<16x512xf32, #tpu.memory_space<vmem>>, vector<4x512xf32>,
    %c0_130 = arith.constant 0 : index
    %c0_131 = arith.constant 0 : index
    %226 = vector.load %arg21[%c0_130, %c0_131] : memref<16x512xf32, #tpu.memory_space<vmem>>, vector<12x512xf32>
    %cst_132 = arith.constant dense<0.000000e+00> : vector<12xf32>
    %227 = vector.multi_reduction <add>, %226, %cst_132 [1] : vector<12x512xf32> to vector<12xf32>
    %228 = vector.shape_cast %227 : vector<12xf32> to vector<12x1xf32>
    %cst_133 = arith.constant 0.001953125 : f32
    %229 = vector.broadcast %cst_133 : f32 to vector<12x1xf32>
    %230 = arith.mulf %228, %229 : vector<12x1xf32>
    %231 = arith.mulf %226, %226 : vector<12x512xf32>
    %cst_134 = arith.constant dense<0.000000e+00> : vector<12xf32>
    %232 = vector.multi_reduction <add>, %231, %cst_134 [1] : vector<12x512xf32> to vector<12xf32>
    %233 = vector.shape_cast %232 : vector<12xf32> to vector<12x1xf32>
    %cst_135 = arith.constant 0.001953125 : f32
    %234 = vector.broadcast %cst_135 : f32 to vector<12x1xf32>
    %235 = arith.mulf %233, %234 : vector<12x1xf32>
    %236 = arith.mulf %230, %230 : vector<12x1xf32>
    %237 = arith.subf %235, %236 : vector<12x1xf32>
    %cst_136 = arith.constant 0.000000e+00 : f32
    %238 = vector.broadcast %cst_136 : f32 to vector<12x1xf32>
    %239 = arith.maximumf %237, %238 : vector<12x1xf32>
    %c0_137 = arith.constant 0 : index
    %c0_138 = arith.constant 0 : index
    %240 = vector.load %arg15[%c0_137, %c0_138] : memref<12x1xf32, #tpu.memory_space<vmem>>, vector<12x1xf32>
    %cst_139 = arith.constant 9.99999974E-6 : f32
    %241 = vector.broadcast %cst_139 : f32 to vector<12x1xf32>
    %242 = arith.addf %239, %241 : vector<12x1xf32>
    %243 = math.rsqrt %242 : vector<12x1xf32>
    %244 = arith.mulf %240, %243 : vector<12x1xf32>
    %c0_140 = arith.constant 0 : index
    %c0_141 = arith.constant 0 : index
    %245 = vector.load %arg16[%c0_140, %c0_141] : memref<12x1xf32, #tpu.memory_space<vmem>>, vector<12x1xf32>
    %246 = arith.mulf %230, %244 : vector<12x1xf32>
    %247 = arith.subf %245, %246 : vector<12x1xf32>
    %248 = vector.broadcast %244 : vector<12x1xf32> to vector<12x512xf32>
    %249 = arith.mulf %226, %248 : vector<12x512xf32>
    %250 = vector.broadcast %247 : vector<12x1xf32> to vector<12x512xf32>
    %251 = arith.addf %249, %250 : vector<12x512xf32>
    %cst_142 = arith.constant 0.000000e+00 : f32
    %252 = vector.broadcast %cst_142 : f32 to vector<12x512xf32>
    %253 = arith.maximumf %251, %252 : vector<12x512xf32>
    %c0_143 = arith.constant 0 : index
    %c0_144 = arith.constant 0 : index
    %254 = vector.load %arg17[%c0_143, %c0_144] : memref<16x12xbf16, #tpu.memory_space<vmem>>, vector<16x12xbf16>
    %255 = arith.truncf %253 : vector<12x512xf32> to vector<12x512xbf16>
    %cst_145 = arith.constant dense<0.000000e+00> : vector<16x512xf32>
    %256 = tpu.matmul %254, %255, %cst_145 {dimension_numbers = #tpu.dot_dimension_numbers<[1], [0], [0], [1], [0, 0, 1, 1], [], []>} : vector<16x12xbf16>, vector<12x512xbf16>, vector<16x512xf32> -> vector<16x512xf32>
    %cst_146 = arith.constant dense<0.000000e+00> : vector<16xf32>
    %257 = vector.multi_reduction <add>, %256, %cst_146 [1] : vector<16x512xf32> to vector<16xf32>
    %258 = vector.shape_cast %257 : vector<16xf32> to vector<16x1xf32>
    %cst_147 = arith.constant 0.001953125 : f32
    %259 = vector.broadcast %cst_147 : f32 to vector<16x1xf32>
    %260 = arith.mulf %258, %259 : vector<16x1xf32>
    %261 = arith.mulf %256, %256 : vector<16x512xf32>
    %cst_148 = arith.constant dense<0.000000e+00> : vector<16xf32>
    %262 = vector.multi_reduction <add>, %261, %cst_148 [1] : vector<16x512xf32> to vector<16xf32>
    %263 = vector.shape_cast %262 : vector<16xf32> to vector<16x1xf32>
    %cst_149 = arith.constant 0.001953125 : f32
    %264 = vector.broadcast %cst_149 : f32 to vector<16x1xf32>
    %265 = arith.mulf %263, %264 : vector<16x1xf32>
    %266 = arith.mulf %260, %260 : vector<16x1xf32>
    %267 = arith.subf %265, %266 : vector<16x1xf32>
    %cst_150 = arith.constant 0.000000e+00 : f32
    %268 = vector.broadcast %cst_150 : f32 to vector<16x1xf32>
    %269 = arith.maximumf %267, %268 : vector<16x1xf32>
    %c0_151 = arith.constant 0 : index
    %c0_152 = arith.constant 0 : index
    %270 = vector.load %arg18[%c0_151, %c0_152] : memref<16x1xf32, #tpu.memory_space<vmem>>, vector<16x1xf32>
    %cst_153 = arith.constant 9.99999974E-6 : f32
    %271 = vector.broadcast %cst_153 : f32 to vector<16x1xf32>
    %272 = arith.addf %269, %271 : vector<16x1xf32>
    %273 = math.rsqrt %272 : vector<16x1xf32>
    %274 = arith.mulf %270, %273 : vector<16x1xf32>
    %c0_154 = arith.constant 0 : index
    %c0_155 = arith.constant 0 : index
    %275 = vector.load %arg19[%c0_154, %c0_155] : memref<16x1xf32, #tpu.memory_space<vmem>>, vector<16x1xf32>
    %276 = arith.mulf %260, %274 : vector<16x1xf32>
    %277 = arith.subf %275, %276 : vector<16x1xf32>
    %278 = vector.broadcast %274 : vector<16x1xf32> to vector<16x512xf32>
    %279 = arith.mulf %256, %278 : vector<16x512xf32>
    %280 = vector.broadcast %277 : vector<16x1xf32> to vector<16x512xf32>
    %281 = arith.addf %279, %280 : vector<16x512xf32>
    %cst_156 = arith.constant 0.000000e+00 : f32
    %282 = vector.broadcast %cst_156 : f32 to vector<16x512xf32>
    %283 = arith.maximumf %281, %282 : vector<16x512xf32>
    %c17_i32_157 = arith.constant 17 : i32
    %284 = tpu.dynamic_rotate %283 by %c17_i32_157 dim 1 : vector<16x512xf32>, i32 -> vector<16x512xf32>
    %c0_158 = arith.constant 0 : index
    %c0_159 = arith.constant 0 : index
    %285 = vector.load %arg2[%c0_158, %c0_159] : memref<9x512xf32, #tpu.memory_space<vmem>>, vector<1x512xf32>
    %286 = vector.broadcast %285 : vector<1x512xf32> to vector<16x512xf32>
    %287 = arith.mulf %284, %286 : vector<16x512xf32>
    %288 = arith.truncf %287 : vector<16x512xf32> to vector<16x512xbf16>
    %c0_160 = arith.constant 0 : index
    %c0_161 = arith.constant 0 : index
    %289 = vector.load %arg22[%c0_160, %c0_161] : memref<144x512xbf16, #tpu.memory_space<vmem>>, vector<16x512xbf16>
    tpu.vector_store %arg22[%c0_160, %c0_161], %288 {strides = array<i32>} : memref<144x512xbf16, #tpu.memory_space<vmem>>, vector<16x512xbf16>,
    %c16_i32_162 = arith.constant 16 : i32
    %290 = tpu.dynamic_rotate %283 by %c16_i32_162 dim 1 : vector<16x512xf32>, i32 -> vector<16x512xf32>
    %c1_163 = arith.constant 1 : index
    %c0_164 = arith.constant 0 : index
    %291 = vector.load %arg2[%c1_163, %c0_164] : memref<9x512xf32, #tpu.memory_space<vmem>>, vector<1x512xf32>
    %292 = vector.broadcast %291 : vector<1x512xf32> to vector<16x512xf32>
    %293 = arith.mulf %290, %292 : vector<16x512xf32>
    %294 = arith.truncf %293 : vector<16x512xf32> to vector<16x512xbf16>
    %c16_165 = arith.constant 16 : index
    %c0_166 = arith.constant 0 : index
    %295 = vector.load %arg22[%c16_165, %c0_166] : memref<144x512xbf16, #tpu.memory_space<vmem>>, vector<16x512xbf16>
    tpu.vector_store %arg22[%c16_165, %c0_166], %294 {strides = array<i32>} : memref<144x512xbf16, #tpu.memory_space<vmem>>, vector<16x512xbf16>,
    %c15_i32_167 = arith.constant 15 : i32
    %296 = tpu.dynamic_rotate %283 by %c15_i32_167 dim 1 : vector<16x512xf32>, i32 -> vector<16x512xf32>
    %c2_168 = arith.constant 2 : index
    %c0_169 = arith.constant 0 : index
    %297 = vector.load %arg2[%c2_168, %c0_169] : memref<9x512xf32, #tpu.memory_space<vmem>>, vector<1x512xf32>
    %298 = vector.broadcast %297 : vector<1x512xf32> to vector<16x512xf32>
    %299 = arith.mulf %296, %298 : vector<16x512xf32>
    %300 = arith.truncf %299 : vector<16x512xf32> to vector<16x512xbf16>
    %c32_170 = arith.constant 32 : index
    %c0_171 = arith.constant 0 : index
    %301 = vector.load %arg22[%c32_170, %c0_171] : memref<144x512xbf16, #tpu.memory_space<vmem>>, vector<16x512xbf16>
    tpu.vector_store %arg22[%c32_170, %c0_171], %300 {strides = array<i32>} : memref<144x512xbf16, #tpu.memory_space<vmem>>, vector<16x512xbf16>,
    %c1_i32_172 = arith.constant 1 : i32
    %302 = tpu.dynamic_rotate %283 by %c1_i32_172 dim 1 : vector<16x512xf32>, i32 -> vector<16x512xf32>
    %c3_173 = arith.constant 3 : index
    %c0_174 = arith.constant 0 : index
    %303 = vector.load %arg2[%c3_173, %c0_174] : memref<9x512xf32, #tpu.memory_space<vmem>>, vector<1x512xf32>
    %304 = vector.broadcast %303 : vector<1x512xf32> to vector<16x512xf32>
    %305 = arith.mulf %302, %304 : vector<16x512xf32>
    %306 = arith.truncf %305 : vector<16x512xf32> to vector<16x512xbf16>
    %c48_175 = arith.constant 48 : index
    %c0_176 = arith.constant 0 : index
    %307 = vector.load %arg22[%c48_175, %c0_176] : memref<144x512xbf16, #tpu.memory_space<vmem>>, vector<16x512xbf16>
    tpu.vector_store %arg22[%c48_175, %c0_176], %306 {strides = array<i32>} : memref<144x512xbf16, #tpu.memory_space<vmem>>, vector<16x512xbf16>,
    %308 = arith.truncf %283 : vector<16x512xf32> to vector<16x512xbf16>
    %c64_177 = arith.constant 64 : index
    %c0_178 = arith.constant 0 : index
    %309 = vector.load %arg22[%c64_177, %c0_178] : memref<144x512xbf16, #tpu.memory_space<vmem>>, vector<16x512xbf16>
    tpu.vector_store %arg22[%c64_177, %c0_178], %308 {strides = array<i32>} : memref<144x512xbf16, #tpu.memory_space<vmem>>, vector<16x512xbf16>,
    %c511_i32_179 = arith.constant 511 : i32
    %310 = tpu.dynamic_rotate %283 by %c511_i32_179 dim 1 : vector<16x512xf32>, i32 -> vector<16x512xf32>
    %c5_180 = arith.constant 5 : index
    %c0_181 = arith.constant 0 : index
    %311 = vector.load %arg2[%c5_180, %c0_181] : memref<9x512xf32, #tpu.memory_space<vmem>>, vector<1x512xf32>
    %312 = vector.broadcast %311 : vector<1x512xf32> to vector<16x512xf32>
    %313 = arith.mulf %310, %312 : vector<16x512xf32>
    %314 = arith.truncf %313 : vector<16x512xf32> to vector<16x512xbf16>
    %c80_182 = arith.constant 80 : index
    %c0_183 = arith.constant 0 : index
    %315 = vector.load %arg22[%c80_182, %c0_183] : memref<144x512xbf16, #tpu.memory_space<vmem>>, vector<16x512xbf16>
    tpu.vector_store %arg22[%c80_182, %c0_183], %314 {strides = array<i32>} : memref<144x512xbf16, #tpu.memory_space<vmem>>, vector<16x512xbf16>,
    %c497_i32_184 = arith.constant 497 : i32
    %316 = tpu.dynamic_rotate %283 by %c497_i32_184 dim 1 : vector<16x512xf32>, i32 -> vector<16x512xf32>
    %c6_185 = arith.constant 6 : index
    %c0_186 = arith.constant 0 : index
    %317 = vector.load %arg2[%c6_185, %c0_186] : memref<9x512xf32, #tpu.memory_space<vmem>>, vector<1x512xf32>
    %318 = vector.broadcast %317 : vector<1x512xf32> to vector<16x512xf32>
    %319 = arith.mulf %316, %318 : vector<16x512xf32>
    %320 = arith.truncf %319 : vector<16x512xf32> to vector<16x512xbf16>
    %c96_187 = arith.constant 96 : index
    %c0_188 = arith.constant 0 : index
    %321 = vector.load %arg22[%c96_187, %c0_188] : memref<144x512xbf16, #tpu.memory_space<vmem>>, vector<16x512xbf16>
    tpu.vector_store %arg22[%c96_187, %c0_188], %320 {strides = array<i32>} : memref<144x512xbf16, #tpu.memory_space<vmem>>, vector<16x512xbf16>,
    %c496_i32_189 = arith.constant 496 : i32
    %322 = tpu.dynamic_rotate %283 by %c496_i32_189 dim 1 : vector<16x512xf32>, i32 -> vector<16x512xf32>
    %c7_190 = arith.constant 7 : index
    %c0_191 = arith.constant 0 : index
    %323 = vector.load %arg2[%c7_190, %c0_191] : memref<9x512xf32, #tpu.memory_space<vmem>>, vector<1x512xf32>
    %324 = vector.broadcast %323 : vector<1x512xf32> to vector<16x512xf32>
    %325 = arith.mulf %322, %324 : vector<16x512xf32>
    %326 = arith.truncf %325 : vector<16x512xf32> to vector<16x512xbf16>
    %c112_192 = arith.constant 112 : index
    %c0_193 = arith.constant 0 : index
    %327 = vector.load %arg22[%c112_192, %c0_193] : memref<144x512xbf16, #tpu.memory_space<vmem>>, vector<16x512xbf16>
    tpu.vector_store %arg22[%c112_192, %c0_193], %326 {strides = array<i32>} : memref<144x512xbf16, #tpu.memory_space<vmem>>, vector<16x512xbf16>,
    %c495_i32_194 = arith.constant 495 : i32
    %328 = tpu.dynamic_rotate %283 by %c495_i32_194 dim 1 : vector<16x512xf32>, i32 -> vector<16x512xf32>
    %c8_195 = arith.constant 8 : index
    %c0_196 = arith.constant 0 : index
    %329 = vector.load %arg2[%c8_195, %c0_196] : memref<9x512xf32, #tpu.memory_space<vmem>>, vector<1x512xf32>
    %330 = vector.broadcast %329 : vector<1x512xf32> to vector<16x512xf32>
    %331 = arith.mulf %328, %330 : vector<16x512xf32>
    %332 = arith.truncf %331 : vector<16x512xf32> to vector<16x512xbf16>
    %c128_197 = arith.constant 128 : index
    %c0_198 = arith.constant 0 : index
    %333 = vector.load %arg22[%c128_197, %c0_198] : memref<144x512xbf16, #tpu.memory_space<vmem>>, vector<16x512xbf16>
    tpu.vector_store %arg22[%c128_197, %c0_198], %332 {strides = array<i32>} : memref<144x512xbf16, #tpu.memory_space<vmem>>, vector<16x512xbf16>,
    %c0_199 = arith.constant 0 : index
    %c0_200 = arith.constant 0 : index
    %334 = vector.load %arg20[%c0_199, %c0_200] : memref<4x144xbf16, #tpu.memory_space<vmem>>, vector<4x144xbf16>
    %c0_201 = arith.constant 0 : index
    %c0_202 = arith.constant 0 : index
    %335 = vector.load %arg22[%c0_201, %c0_202] : memref<144x512xbf16, #tpu.memory_space<vmem>>, vector<144x512xbf16>
    %cst_203 = arith.constant dense<0.000000e+00> : vector<4x512xf32>
    %336 = tpu.matmul %334, %335, %cst_203 {dimension_numbers = #tpu.dot_dimension_numbers<[1], [0], [0], [1], [0, 0, 1, 1], [], []>} : vector<4x144xbf16>, vector<144x512xbf16>, vector<4x512xf32> -> vector<4x512xf32>
    %c12 = arith.constant 12 : index
    %c0_204 = arith.constant 0 : index
    %337 = vector.load %arg21[%c12, %c0_204] : memref<16x512xf32, #tpu.memory_space<vmem>>, vector<4x512xf32>
    tpu.vector_store %arg21[%c12, %c0_204], %336 {strides = array<i32>} : memref<16x512xf32, #tpu.memory_space<vmem>>, vector<4x512xf32>,
    return
  }
  func.func @transform_0(%arg0: i32) -> (i32, i32) {
    %c0_i32 = arith.constant 0 : i32
    %c0_i32_0 = arith.constant 0 : i32
    %c0_i32_1 = arith.constant 0 : i32
    return %c0_i32, %c0_i32_0 : i32, i32
  }
  func.func @transform_1(%arg0: i32) -> (i32, i32) {
    %c0_i32 = arith.constant 0 : i32
    %c0_i32_0 = arith.constant 0 : i32
    %c0_i32_1 = arith.constant 0 : i32
    return %c0_i32, %c0_i32_0 : i32, i32
  }
  func.func @transform_2(%arg0: i32) -> (i32, i32) {
    %c0_i32 = arith.constant 0 : i32
    %c0_i32_0 = arith.constant 0 : i32
    %c0_i32_1 = arith.constant 0 : i32
    return %c0_i32, %c0_i32_0 : i32, i32
  }
  func.func @transform_3(%arg0: i32) -> (i32, i32) {
    %c0_i32 = arith.constant 0 : i32
    %c0_i32_0 = arith.constant 0 : i32
    %c0_i32_1 = arith.constant 0 : i32
    return %c0_i32, %c0_i32_0 : i32, i32
  }
  func.func @transform_4(%arg0: i32) -> (i32, i32) {
    %c0_i32 = arith.constant 0 : i32
    %c0_i32_0 = arith.constant 0 : i32
    %c0_i32_1 = arith.constant 0 : i32
    return %c0_i32, %c0_i32_0 : i32, i32
  }
  func.func @transform_5(%arg0: i32) -> (i32, i32) {
    %c0_i32 = arith.constant 0 : i32
    %c0_i32_0 = arith.constant 0 : i32
    %c0_i32_1 = arith.constant 0 : i32
    return %c0_i32, %c0_i32_0 : i32, i32
  }
  func.func @transform_6(%arg0: i32) -> (i32, i32) {
    %c0_i32 = arith.constant 0 : i32
    %c0_i32_0 = arith.constant 0 : i32
    %c0_i32_1 = arith.constant 0 : i32
    return %c0_i32, %c0_i32_0 : i32, i32
  }
  func.func @transform_7(%arg0: i32) -> (i32, i32) {
    %c0_i32 = arith.constant 0 : i32
    %c0_i32_0 = arith.constant 0 : i32
    %c0_i32_1 = arith.constant 0 : i32
    return %c0_i32, %c0_i32_0 : i32, i32
  }
  func.func @transform_8(%arg0: i32) -> (i32, i32) {
    %c0_i32 = arith.constant 0 : i32
    %c0_i32_0 = arith.constant 0 : i32
    %c0_i32_1 = arith.constant 0 : i32
    return %c0_i32, %c0_i32_0 : i32, i32
  }
  func.func @transform_9(%arg0: i32) -> (i32, i32) {
    %c0_i32 = arith.constant 0 : i32
    %c0_i32_0 = arith.constant 0 : i32
    %c0_i32_1 = arith.constant 0 : i32
    return %c0_i32, %c0_i32_0 : i32, i32
  }
  func.func @transform_10(%arg0: i32) -> (i32, i32) {
    %c0_i32 = arith.constant 0 : i32
    %c0_i32_0 = arith.constant 0 : i32
    %c0_i32_1 = arith.constant 0 : i32
    return %c0_i32, %c0_i32_0 : i32, i32
  }
  func.func @transform_11(%arg0: i32) -> (i32, i32) {
    %c0_i32 = arith.constant 0 : i32
    %c0_i32_0 = arith.constant 0 : i32
    %c0_i32_1 = arith.constant 0 : i32
    return %c0_i32, %c0_i32_0 : i32, i32
  }
  func.func @transform_12(%arg0: i32) -> (i32, i32) {
    %c0_i32 = arith.constant 0 : i32
    %c0_i32_0 = arith.constant 0 : i32
    %c0_i32_1 = arith.constant 0 : i32
    return %c0_i32, %c0_i32_0 : i32, i32
  }
  func.func @transform_13(%arg0: i32) -> (i32, i32) {
    %c0_i32 = arith.constant 0 : i32
    %c0_i32_0 = arith.constant 0 : i32
    %c0_i32_1 = arith.constant 0 : i32
    return %c0_i32, %c0_i32_0 : i32, i32
  }
  func.func @transform_14(%arg0: i32) -> (i32, i32) {
    %c0_i32 = arith.constant 0 : i32
    %c0_i32_0 = arith.constant 0 : i32
    %c0_i32_1 = arith.constant 0 : i32
    return %c0_i32, %c0_i32_0 : i32, i32
  }
  func.func @transform_15(%arg0: i32) -> (i32, i32) {
    %c0_i32 = arith.constant 0 : i32
    %c0_i32_0 = arith.constant 0 : i32
    %c0_i32_1 = arith.constant 0 : i32
    return %c0_i32, %c0_i32_0 : i32, i32
  }
  func.func @transform_16(%arg0: i32) -> (i32, i32) {
    %c0_i32 = arith.constant 0 : i32
    %c0_i32_0 = arith.constant 0 : i32
    %c0_i32_1 = arith.constant 0 : i32
    return %c0_i32, %c0_i32_0 : i32, i32
  }
  func.func @transform_17(%arg0: i32) -> (i32, i32) {
    %c0_i32 = arith.constant 0 : i32
    %c0_i32_0 = arith.constant 0 : i32
    %c0_i32_1 = arith.constant 0 : i32
    return %c0_i32, %c0_i32_0 : i32, i32
  }
  func.func @transform_18(%arg0: i32) -> (i32, i32) {
    %c0_i32 = arith.constant 0 : i32
    %c0_i32_0 = arith.constant 0 : i32
    %c0_i32_1 = arith.constant 0 : i32
    return %c0_i32, %c0_i32_0 : i32, i32
  }
  func.func @transform_19(%arg0: i32) -> (i32, i32) {
    %c0_i32 = arith.constant 0 : i32
    %c0_i32_0 = arith.constant 0 : i32
    %c0_i32_1 = arith.constant 0 : i32
    return %c0_i32, %c0_i32_0 : i32, i32
  }
  func.func @transform_20(%arg0: i32) -> (i32, i32) {
    %c0_i32 = arith.constant 0 : i32
    %c0_i32_0 = arith.constant 0 : i32
    %c0_i32_1 = arith.constant 0 : i32
    return %c0_i32, %c0_i32_0 : i32, i32
  }
}

</mosaic_0001>

<bundles_post_ra>
// kernel: tpu_custom_call.1
= control target key start
LH: loop header
LB: loop body
LE: loop exit
PB: predicated region body
PF: predicated region fallthrough
CT: control target
= control target key end

     0   :  { %s4459_s0 = inlined_call_operand.vmem [shape: f32[4,512], index: 0, kind: input, shape index: {}]   ;;  %s4460_s1 = inlined_call_operand.vmem [shape: f32[9,512], index: 1, kind: input, shape index: {}]   ;;  %s4461_s2 = inlined_call_operand.vmem [shape: f32[4,1], index: 2, kind: input, shape index: {}]   ;;  %s4462_s3 = inlined_call_operand.vmem [shape: f32[4,1], index: 3, kind: input, shape index: {}]   ;;  %s4463_s4 = inlined_call_operand.vmem [shape: bf16[16,4], index: 4, kind: input, shape index: {}]   ;;  %s4464_s5 = inlined_call_operand.vmem [shape: f32[16,1], index: 5, kind: input, shape index: {}]   ;;  %s4465_s6 = inlined_call_operand.vmem [shape: f32[16,1], index: 6, kind: input, shape index: {}]   ;;  %s4466_s7 = inlined_call_operand.vmem [shape: bf16[4,144], index: 7, kind: input, shape index: {}]   ;;  %s4467_s8 = inlined_call_operand.vmem [shape: f32[8,1], index: 8, kind: input, shape index: {}]   ;;  %s4468_s9 = inlined_call_operand.vmem [shape: f32[8,1], index: 9, kind: input, shape index: {}]   ;;  %s4469_s10 = inlined_call_operand.vmem [shape: bf16[16,8], index: 10, kind: input, shape index: {}]   ;;  %s4470_s11 = inlined_call_operand.vmem [shape: f32[16,1], index: 11, kind: input, shape index: {}]   ;;  %s4471_s12 = inlined_call_operand.vmem [shape: f32[16,1], index: 12, kind: input, shape index: {}]   ;;  %s4472_s13 = inlined_call_operand.vmem [shape: bf16[4,144], index: 13, kind: input, shape index: {}]   ;;  %s4473_s14 = inlined_call_operand.vmem [shape: f32[12,1], index: 14, kind: input, shape index: {}]   ;;  %s4474_s15 = inlined_call_operand.vmem [shape: f32[12,1], index: 15, kind: input, shape index: {}]   ;;  %s4475_s16 = inlined_call_operand.vmem [shape: bf16[16,12], index: 16, kind: input, shape index: {}]   ;;  %s4476_s17 = inlined_call_operand.vmem [shape: f32[16,1], index: 17, kind: input, shape index: {}]   ;;  %s4477_s18 = inlined_call_operand.vmem [shape: f32[16,1], index: 18, kind: input, shape index: {}]   ;;  %s4478_s19 = inlined_call_operand.vmem [shape: bf16[4,144], index: 19, kind: input, shape index: {}]   ;;  %s4479_s20 = inlined_call_operand.hbm [shape: f32[16,512], index: 20, kind: output, shape index: {}]  }
   0x1   :  { %4482 = sst [smem:[#allocation6_spill]] %s4459_s0 }
   0x2   :  { %4483 = sst [smem:[#allocation7_spill]] %s4460_s1 }
   0x3   :  { %4484 = sst [smem:[#allocation8_spill]] %s4461_s2 }
   0x4   :  { %4485 = sst [smem:[#allocation9_spill]] %s4462_s3 }
   0x5   :  { %4486 = sst [smem:[#allocation10_spill]] %s4463_s4 }
   0x6   :  { %s4487_s23 = sld [smem:[#allocation6_spill]] }
   0xc   :  { %v67_v0 = vld [vmem:[%s4487_s23] sm:$0xff]  ;;  %v68_v1 = vld [vmem:[%s4487_s23 + $0x8] sm:$0xff] }
   0xd   :  { %v71_v2 = vcombine.high %v67_v0, %v67_v0  ;;  %v72_v3 = vcombine.high %v68_v1, %v68_v1  ;;  %75 = vst [vmem:[#allocation3] sm:$0xf] %v67_v0  ;;  %77 = vst [vmem:[#allocation3 + $0x10] sm:$0xf] %v68_v1 }
   0xe   :  { %25 = vsyncpa [#allocation4], 0  ;;  %vm83_vm0 = vcmask 1043456   ;;  %v3023_v26 = vmov 0   ;;  %s4488_s26 = sld [smem:[#allocation8_spill]]  ;;  %s4489_s4 = sld [smem:[#allocation9_spill]] }
   0xf   :  { %76 = vst [vmem:[#allocation3 + $0x8] sm:$0xf] %v71_v2  ;;  %78 = vst [vmem:[#allocation3 + $0x18] sm:$0xf] %v72_v3  ;;  %2968 = vset.pattern.permute.xlu1 %v3023_v26  ;;  %200 = vmatprep.mubr.bf16.mxu0 %v3023_v26  ;;  %vm155_vm1 = vcmask 1041408   ;;  %s4490_s0 = sld [smem:[#allocation10_spill]] }
  0x10   :  { %243 = vmatprep.mubr.bf16.mxu1 %v3023_v26  ;;  %2969 = vset.pattern.permute.xlu0 %v3023_v26  ;;  %vm151_vm2 = vcmask 31744   ;;  %s3027_s27 = smov 1   ;;  %s3028_s28 = smov 127   ;;  %vm918_vm3 = vcmask 130048   ;;  %vm1083_vm12 = vcmask 64512   ;;  %vm2048_vm13 = vcmask 1045504  }
  0x11   :  { %s3030_s29 = smov 112   ;;  %s3031_s30 = smov 111   ;;  %vm2044_vm14 = vcmask 97280  }
  0x12   :  { %s4491_s23 = sld [smem:[#allocation7_spill]] }
  0x14   :  { %v79_v4 = vld [vmem:[#allocation3] sm:$0xf]  ;;  %v81_v5 = vld [vmem:[#allocation3 + $0x10] sm:$0xf] }
  0x15   :  { %v84_v6 = vsel %vm83_vm0, %v79_v4, 0.0  ;;  %v94_v7 = vmul.f32 %v79_v4, %v79_v4  ;;  %v96_v8 = vmul.f32 %v81_v5, %v81_v5  ;;  %v87_v12 = vsel %vm83_vm0, %v81_v5, 0.0  ;;  %v111_v35 = vld [vmem:[%s4488_s26] sm:$0xf]  ;;  %s3026_s26 = smov 15  }
  0x16   :  { %v80_v9 = vld [vmem:[#allocation3 + $0x8] sm:$0xf]  ;;  %v82_v10 = vld [vmem:[#allocation3 + $0x18] sm:$0xf]  ;;  %v115_v38 = vld [vmem:[%s4489_s4] sm:$0xf] }
  0x17   :  { %v85_v11 = vsel %vm83_vm0, %v80_v9, 0.0  ;;  %v95_v13 = vmul.f32 %v80_v9, %v80_v9  ;;  %v97_v14 = vmul.f32 %v82_v10, %v82_v10  ;;  %v98_v16 = vsel %vm83_vm0, %v94_v7, 0.0  ;;  %v2972_v61 = vld [vmem:[%s4490_s0] sm:$0xff]   ;;  %s3029_s4 = smov 113  }
  0x18   :  { %v86_v15 = vadd.f32 %v85_v11, %v84_v6  ;;  %v89_v17 = vsel %vm83_vm0, %v82_v10, 0.0  ;;  %v101_v19 = vsel %vm83_vm0, %v96_v8, 0.0 }
  0x19   :  { %v99_v18 = vsel %vm83_vm0, %v95_v13, 0.0  ;;  %v103_v22 = vsel %vm83_vm0, %v97_v14, 0.0 }
  0x1a   :  { %v88_v20 = vadd.f32 %v87_v12, %v86_v15  ;;  %v100_v21 = vadd.f32 %v99_v18, %v98_v16 }
  0x1c   :  { %v90_v23 = vadd.f32 %v89_v17, %v88_v20  ;;  %v102_v24 = vadd.f32 %v101_v19, %v100_v21 }
  0x1e   :  { %91 = vadd.xlane.f32.xlu0 %v90_v23  ;;  %v104_v25 = vadd.f32 %v103_v22, %v102_v24 }
  0x22   :  { %105 = vadd.xlane.f32.xlu0 %v104_v25 }
  0xab   :  { %v92_v27 = vpop.xlane.xlu0 %91 }
  0xac   :  { %v93_v28 = vmul.f32 0.001953125, %v92_v27 }
  0xae   :  { %v108_v30 = vmul.f32 %v93_v28, %v93_v28 }
  0xaf   :  { %v106_v29 = vpop.xlane.xlu0 %105 }
  0xb0   :  { %v107_v31 = vmul.f32 0.001953125, %v106_v29 }
  0xb2   :  { %v109_v32 = vsub.f32 %v107_v31, %v108_v30 }
  0xb4   :  { %v110_v33 = vmax.f32 %v109_v32, 0.0 }
  0xb6   :  { %v112_v34 = vadd.f32 1e-05, %v110_v33 }
  0xb8   :  { %2975 = vrsqrt.f32 %v112_v34 }
  0xc2   :  { %v2976_v36 = vpop.eup %2975 }
  0xc3   :  { %v114_v37 = vmul.f32 %v2976_v36, %v111_v35 }
  0xc5   :  { %120 = vperm.xlu1 %2968, %v114_v37   ;;  %v116_v39 = vmul.f32 %v114_v37, %v93_v28 }
  0xc7   :  { %v117_v40 = vsub.f32 %v115_v38, %v116_v39 }
  0xc9   :  { %129 = vperm.xlu1 %2968, %v117_v40  }
 0x144   :  { %v121_v41 = vpop.permute.xlu1 %120 }
 0x145   :  { %v124_v42 = vmul.f32 %v121_v41, %v80_v9  ;;  %v126_v43 = vmul.f32 %v121_v41, %v82_v10  ;;  %v123_v44 = vmul.f32 %v121_v41, %v79_v4  ;;  %v125_v45 = vmul.f32 %v121_v41, %v81_v5 }
 0x148   :  { %v130_v46 = vpop.permute.xlu1 %129 }
 0x149   :  { %v133_v47 = vadd.f32 %v130_v46, %v124_v42  ;;  %v135_v48 = vadd.f32 %v130_v46, %v126_v43  ;;  %v132_v49 = vadd.f32 %v130_v46, %v123_v44  ;;  %v134_v50 = vadd.f32 %v130_v46, %v125_v45  ;;  %v292_v43 = vld [vmem:[%s4464_s5] sm:$0xff]  ;;  %v293_v46 = vld [vmem:[%s4464_s5 + $0x8] sm:$0xff]  ;;  %s3024_s5 = smov 17  }
 0x14b   :  { %v137_v51 = vmax.f32 %v133_v47, 0.0  ;;  %v139_v52 = vmax.f32 %v135_v48, 0.0  ;;  %v136_v53 = vmax.f32 %v132_v49, 0.0  ;;  %v138_v54 = vmax.f32 %v134_v50, 0.0  ;;  %v300_v50 = vld [vmem:[%s4465_s6] sm:$0xff] }
 0x14d   :  { %v143_v55 = vpack.c.bf16 %v137_v51, %v137_v51  ;;  %v145_v56 = vpack.c.bf16 %v139_v52, %v139_v52  ;;  %v142_v57 = vpack.c.bf16 %v136_v53, %v136_v53  ;;  %v144_v58 = vpack.c.bf16 %v138_v54, %v138_v54  ;;  %v301_v51 = vld [vmem:[%s4465_s6 + $0x8] sm:$0xff]  ;;  %s3025_s6 = smov 16  }
 0x14f   :  { %2912 = vmatprep.subr.msk.bf16.mxu0 %vm155_vm1, %v143_v55  ;;  %2914 = vmatprep.subr.msk.bf16.mxu1 %vm155_vm1, %v145_v56  ;;  %v157_v59 = vsel %vm155_vm1, %v142_v57, 0  ;;  %v163_v60 = vsel %vm155_vm1, %v144_v58, 0 }
 0x150   :  { %169 = vmatpush1.bf16.msra.mxu0 %v157_v59  ;;  %212 = vmatpush1.bf16.msra.mxu1 %v163_v60 }
 0x153   :  { %2913 = vmatmul.mubr.msk.bf16.vlgmr.msra.gmra.mrb[0].mxu0 %vm151_vm2, %v2972_v61  ;;  %2915 = vmatmul.mubr.msk.bf16.vlgmr.msra.gmra.mrb[0].mxu1 %vm151_vm2, %v2972_v61 }
 0x226   :  { %v3167_v62 = vpop.f32.mrb[0].mxu0  ;;  %v3169_v63 = vpop.f32.mrb[0].mxu1 }
 0x227   :  { %v266_v0 = vmul.f32 %v3167_v62, %v3167_v62  ;;  %v3173_v1 = vpop.f32.mrb[1].mxu0  ;;  %v3175_v2 = vpop.f32.mrb[1].mxu1  ;;  %v268_v3 = vmul.f32 %v3169_v63, %v3169_v63 }
 0x228   :  { %v254_v4 = vadd.f32 %v3173_v1, %v3167_v62  ;;  %v267_v5 = vmul.f32 %v3173_v1, %v3173_v1  ;;  %v206_v6 = vpop.f32.mrb[2].mxu0  ;;  %v3183_v7 = vpop.f32.mrb[2].mxu1  ;;  %v269_v16 = vmul.f32 %v3175_v2, %v3175_v2 }
 0x229   :  { %v270_v8 = vmul.f32 %v206_v6, %v206_v6  ;;  %v3185_v9 = vpop.f32.mrb[3].mxu0  ;;  %v3187_v10 = vpop.f32.mrb[3].mxu1  ;;  %v272_v15 = vmul.f32 %v3183_v7, %v3183_v7 }
 0x22a   :  { %v259_v11 = vadd.f32 %v3185_v9, %v206_v6  ;;  %v271_v12 = vmul.f32 %v3185_v9, %v3185_v9  ;;  %v255_v13 = vadd.f32 %v254_v4, %v3169_v63  ;;  %v274_v14 = vadd.f32 %v267_v5, %v266_v0 }
 0x22b   :  { %v273_v23 = vmul.f32 %v3187_v10, %v3187_v10 }
 0x22c   :  { %v256_v17 = vadd.f32 %v255_v13, %v3175_v2  ;;  %v260_v18 = vadd.f32 %v259_v11, %v3183_v7  ;;  %v275_v19 = vadd.f32 %v274_v14, %v268_v3  ;;  %v279_v20 = vadd.f32 %v271_v12, %v270_v8 }
 0x22e   :  { %257 = vadd.xlane.f32.xlu0 %v256_v17  ;;  %v261_v21 = vadd.f32 %v260_v18, %v3187_v10  ;;  %v276_v22 = vadd.f32 %v275_v19, %v269_v16  ;;  %v280_v24 = vadd.f32 %v279_v20, %v272_v15 }
 0x230   :  { %262 = vadd.xlane.f32.xlu1 %v261_v21  ;;  %v281_v25 = vadd.f32 %v280_v24, %v273_v23  ;;  %v3358_v23 = vld.sshfl [vmem:[%s4466_s7] sm:$0x33 pattern:$0x76325410] }
 0x231   :  { %v377_v24 = vld [vmem:[%s4491_s23] ss:$8 sm:$0xf] }
 0x232   :  { %277 = vadd.xlane.f32.xlu0 %v276_v22 }
 0x236   :  { %282 = vadd.xlane.f32.xlu0 %v281_v25  ;;  %v916_v25 = vcombine.high %v3358_v23, %v3358_v23 }
 0x238   :  { %2924 = vmatprep.mubr.msk.bf16.mxu0 %vm918_vm3, %v916_v25  ;;  %2925 = vmatprep.mubr.msk.bf16.mxu1 %vm918_vm3, %v916_v25 }
 0x2bb   :  { %v258_v27 = vpop.xlane.xlu0 %257 }
 0x2bc   :  { %v264_v28 = vmul.f32 0.001953125, %v258_v27 }
 0x2bd   :  { %v263_v29 = vpop.xlane.xlu1 %262 }
 0x2be   :  { %v286_v31 = vmul.f32 %v264_v28, %v264_v28  ;;  %v265_v32 = vmul.f32 0.001953125, %v263_v29 }
 0x2bf   :  { %v278_v30 = vpop.xlane.xlu0 %277 }
 0x2c0   :  { %v284_v33 = vmul.f32 0.001953125, %v278_v30  ;;  %v287_v36 = vmul.f32 %v265_v32, %v265_v32 }
 0x2c2   :  { %v288_v34 = vsub.f32 %v284_v33, %v286_v31 }
 0x2c3   :  { %v283_v35 = vpop.xlane.xlu0 %282 }
 0x2c4   :  { %v290_v37 = vmax.f32 %v288_v34, 0.0  ;;  %v285_v38 = vmul.f32 0.001953125, %v283_v35 }
 0x2c6   :  { %v294_v39 = vadd.f32 1e-05, %v290_v37  ;;  %v289_v40 = vsub.f32 %v285_v38, %v287_v36 }
 0x2c8   :  { %2977 = vrsqrt.f32 %v294_v39  ;;  %v291_v41 = vmax.f32 %v289_v40, 0.0 }
 0x2ca   :  { %v295_v42 = vadd.f32 1e-05, %v291_v41 }
 0x2cc   :  { %2979 = vrsqrt.f32 %v295_v42 }
 0x2d2   :  { %v2978_v44 = vpop.eup %2977 }
 0x2d3   :  { %v298_v45 = vmul.f32 %v2978_v44, %v292_v43 }
 0x2d5   :  { %308 = vperm.xlu0 %2969, %v298_v45   ;;  %v302_v49 = vmul.f32 %v298_v45, %v264_v28 }
 0x2d6   :  { %v2980_v47 = vpop.eup %2979 }
 0x2d7   :  { %v299_v48 = vmul.f32 %v2980_v47, %v293_v46  ;;  %v304_v53 = vsub.f32 %v300_v50, %v302_v49 }
 0x2d9   :  { %313 = vperm.xlu1 %2968, %v299_v48   ;;  %v303_v52 = vmul.f32 %v299_v48, %v265_v32 }
 0x2db   :  { %v305_v54 = vsub.f32 %v301_v51, %v303_v52 }
 0x2dd   :  { %326 = vperm.xlu1 %2968, %v304_v53   ;;  %331 = vperm.xlu0 %2969, %v305_v54  }
 0x354   :  { %v309_v55 = vpop.permute.xlu0 %308 }
 0x355   :  { %v316_v57 = vmul.f32 %v309_v55, %v3167_v62  ;;  %v317_v61 = vmul.f32 %v309_v55, %v3173_v1  ;;  %v319_v13 = vmul.f32 %v309_v55, %v3175_v2  ;;  %v318_v15 = vmul.f32 %v309_v55, %v3169_v63 }
 0x358   :  { %v314_v56 = vpop.permute.xlu1 %313 }
 0x359   :  { %v320_v58 = vmul.f32 %v314_v56, %v206_v6  ;;  %v321_v3 = vmul.f32 %v314_v56, %v3185_v9  ;;  %v323_v62 = vmul.f32 %v314_v56, %v3187_v10  ;;  %v322_v2 = vmul.f32 %v314_v56, %v3183_v7 }
 0x35a   :  { %v366_v7 = vlaneseq }
 0x35c   :  { %v327_v59 = vpop.permute.xlu1 %326  ;;  %v332_v60 = vpop.permute.xlu0 %331  ;;  %v380_v20 = vshrl.u32 %v366_v7, 7  ;;  %v3351_v21 = vand.u32 127, %v366_v7 }
 0x35d   :  { %v334_v0 = vadd.f32 %v327_v59, %v316_v57  ;;  %v338_v4 = vadd.f32 %v332_v60, %v320_v58  ;;  %v335_v5 = vadd.f32 %v327_v59, %v317_v61  ;;  %v339_v11 = vadd.f32 %v332_v60, %v321_v3 }
 0x35e   :  { %v337_v1 = vadd.f32 %v327_v59, %v319_v13  ;;  %v341_v9 = vadd.f32 %v332_v60, %v323_v62  ;;  %v336_v10 = vadd.f32 %v327_v59, %v318_v15  ;;  %v340_v17 = vadd.f32 %v332_v60, %v322_v2  ;;  %v2916_v60 = vld [vmem:[%s4491_s23 + $0x1] ss:$8 sm:$0xf] }
 0x35f   :  { %v3217_v8 = vmax.f32 %v334_v0, 0.0  ;;  %v3219_v12 = vmax.f32 %v338_v4, 0.0  ;;  %v3227_v6 = vmax.f32 %v335_v5, 0.0  ;;  %v3229_v14 = vmax.f32 %v339_v11, 0.0 }
 0x360   :  { %v3237_v16 = vmax.f32 %v337_v1, 0.0  ;;  %v3239_v18 = vmax.f32 %v341_v9, 0.0  ;;  %v3245_v63 = vmax.f32 %v336_v10, 0.0  ;;  %v3247_v19 = vmax.f32 %v340_v17, 0.0 }
 0x361   :  { %350 = vrot.lane.b32.xlu1 %v3217_v8, %s3024_s5  ;;  %352 = vrot.lane.b32.xlu0 %v3219_v12, %s3024_s5  ;;  %v3353_v22 = vsub.s32 1, %v380_v20  ;;  %v3367_v29 = vsub.s32 0, %v380_v20  ;;  %vm368_vm4 = vcmp.lt.s32.totalorder %v3351_v21, 17  ;;  %v3384_v37 = vsub.s32 2, %v380_v20 }
 0x362   :  { %v3386_v38 = vsub.s32 3, %v380_v20  ;;  %vm431_vm5 = vcmp.lt.s32.totalorder %v3351_v21, 16  ;;  %vm495_vm6 = vcmp.lt.s32.totalorder %v3351_v21, 15  ;;  %vm559_vm7 = vcmp.lt.s32.totalorder %v3351_v21, 1 }
 0x363   :  { %v386_v30 = vrot.slane %v377_v24, %v3353_v22  ;;  %v382_v34 = vrot.slane %v377_v24, %v3367_v29  ;;  %v390_v46 = vrot.slane %v377_v24, %v3384_v37  ;;  %v450_v5 = vrot.slane %v2916_v60, %v3353_v22 }
 0x364   :  { %v394_v47 = vrot.slane %v377_v24, %v3386_v38  ;;  %v446_v15 = vrot.slane %v2916_v60, %v3367_v29  ;;  %vm631_vm8 = vcmp.lt.s32.totalorder %v3351_v21, 127  ;;  %vm695_vm9 = vcmp.lt.s32.totalorder %v3351_v21, 113 }
 0x365   :  { %354 = vrot.lane.b32.xlu1 %v3227_v6, %s3024_s5  ;;  %356 = vrot.lane.b32.xlu0 %v3229_v14, %s3024_s5  ;;  %vm759_vm10 = vcmp.lt.s32.totalorder %v3351_v21, 112  ;;  %vm823_vm11 = vcmp.lt.s32.totalorder %v3351_v21, 111 }
 0x369   :  { %362 = vrot.lane.b32.xlu1 %v3237_v16, %s3024_s5  ;;  %364 = vrot.lane.b32.xlu0 %v3239_v18, %s3024_s5 }
 0x36d   :  { %358 = vrot.lane.b32.xlu1 %v3245_v63, %s3024_s5  ;;  %360 = vrot.lane.b32.xlu0 %v3247_v19, %s3024_s5 }
 0x371   :  { %415 = vrot.lane.b32.xlu1 %v3217_v8, %s3025_s6  ;;  %417 = vrot.lane.b32.xlu0 %v3219_v12, %s3025_s6 }
 0x375   :  { %419 = vrot.lane.b32.xlu1 %v3227_v6, %s3025_s6  ;;  %421 = vrot.lane.b32.xlu0 %v3229_v14, %s3025_s6 }
 0x379   :  { %427 = vrot.lane.b32.xlu1 %v3237_v16, %s3025_s6  ;;  %429 = vrot.lane.b32.xlu0 %v3239_v18, %s3025_s6 }
 0x37d   :  { %423 = vrot.lane.b32.xlu1 %v3245_v63, %s3025_s6  ;;  %425 = vrot.lane.b32.xlu0 %v3247_v19, %s3025_s6 }
 0x381   :  { %479 = vrot.lane.b32.xlu1 %v3217_v8, %s3026_s26  ;;  %481 = vrot.lane.b32.xlu0 %v3219_v12, %s3026_s26 }
 0x385   :  { %483 = vrot.lane.b32.xlu1 %v3227_v6, %s3026_s26  ;;  %485 = vrot.lane.b32.xlu0 %v3229_v14, %s3026_s26 }
 0x389   :  { %491 = vrot.lane.b32.xlu1 %v3237_v16, %s3026_s26  ;;  %493 = vrot.lane.b32.xlu0 %v3239_v18, %s3026_s26 }
 0x38d   :  { %487 = vrot.lane.b32.xlu1 %v3245_v63, %s3026_s26  ;;  %489 = vrot.lane.b32.xlu0 %v3247_v19, %s3026_s26 }
 0x391   :  { %543 = vrot.lane.b32.xlu1 %v3217_v8, %s3027_s27  ;;  %545 = vrot.lane.b32.xlu0 %v3219_v12, %s3027_s27 }
 0x395   :  { %547 = vrot.lane.b32.xlu1 %v3227_v6, %s3027_s27  ;;  %549 = vrot.lane.b32.xlu0 %v3229_v14, %s3027_s27 }
 0x399   :  { %555 = vrot.lane.b32.xlu1 %v3237_v16, %s3027_s27  ;;  %557 = vrot.lane.b32.xlu0 %v3239_v18, %s3027_s27 }
 0x39d   :  { %551 = vrot.lane.b32.xlu1 %v3245_v63, %s3027_s27  ;;  %553 = vrot.lane.b32.xlu0 %v3247_v19, %s3027_s27 }
 0x3a1   :  { %619 = vrot.lane.b32.xlu1 %v3227_v6, %s3028_s28  ;;  %621 = vrot.lane.b32.xlu0 %v3229_v14, %s3028_s28 }
 0x3a5   :  { %623 = vrot.lane.b32.xlu1 %v3245_v63, %s3028_s28  ;;  %625 = vrot.lane.b32.xlu0 %v3247_v19, %s3028_s28 }
 0x3a9   :  { %615 = vrot.lane.b32.xlu1 %v3217_v8, %s3028_s28  ;;  %617 = vrot.lane.b32.xlu0 %v3219_v12, %s3028_s28 }
 0x3ad   :  { %627 = vrot.lane.b32.xlu1 %v3237_v16, %s3028_s28  ;;  %629 = vrot.lane.b32.xlu0 %v3239_v18, %s3028_s28 }
 0x3b1   :  { %683 = vrot.lane.b32.xlu1 %v3227_v6, %s3029_s4  ;;  %685 = vrot.lane.b32.xlu0 %v3229_v14, %s3029_s4 }
 0x3b5   :  { %687 = vrot.lane.b32.xlu1 %v3245_v63, %s3029_s4  ;;  %689 = vrot.lane.b32.xlu0 %v3247_v19, %s3029_s4 }
 0x3b9   :  { %679 = vrot.lane.b32.xlu1 %v3217_v8, %s3029_s4  ;;  %681 = vrot.lane.b32.xlu0 %v3219_v12, %s3029_s4 }
 0x3bd   :  { %691 = vrot.lane.b32.xlu1 %v3237_v16, %s3029_s4  ;;  %693 = vrot.lane.b32.xlu0 %v3239_v18, %s3029_s4 }
 0x3c1   :  { %747 = vrot.lane.b32.xlu1 %v3227_v6, %s3030_s29  ;;  %749 = vrot.lane.b32.xlu0 %v3229_v14, %s3030_s29 }
 0x3c5   :  { %751 = vrot.lane.b32.xlu1 %v3245_v63, %s3030_s29  ;;  %753 = vrot.lane.b32.xlu0 %v3247_v19, %s3030_s29 }
 0x3c9   :  { %743 = vrot.lane.b32.xlu1 %v3217_v8, %s3030_s29  ;;  %745 = vrot.lane.b32.xlu0 %v3219_v12, %s3030_s29 }
 0x3cd   :  { %755 = vrot.lane.b32.xlu1 %v3237_v16, %s3030_s29  ;;  %757 = vrot.lane.b32.xlu0 %v3239_v18, %s3030_s29 }
 0x3d1   :  { %811 = vrot.lane.b32.xlu1 %v3227_v6, %s3031_s30  ;;  %813 = vrot.lane.b32.xlu0 %v3229_v14, %s3031_s30 }
 0x3d3   :  { %v351_v27 = vpop.permute.xlu1 %350  ;;  %v353_v28 = vpop.permute.xlu0 %352 }
 0x3d5   :  { %815 = vrot.lane.b32.xlu1 %v3245_v63, %s3031_s30  ;;  %817 = vrot.lane.b32.xlu0 %v3247_v19, %s3031_s30 }
 0x3d7   :  { %v355_v31 = vpop.permute.xlu1 %354  ;;  %v357_v33 = vpop.permute.xlu0 %356 }
 0x3d8   :  { %v373_v32 = vsel %vm368_vm4, %v351_v27, %v355_v31  ;;  %v374_v36 = vsel %vm368_vm4, %v353_v28, %v357_v33 }
 0x3d9   :  { %v400_v35 = vmul.f32 %v386_v30, %v373_v32  ;;  %807 = vrot.lane.b32.xlu1 %v3217_v8, %s3031_s30  ;;  %v404_v39 = vmul.f32 %v386_v30, %v374_v36  ;;  %809 = vrot.lane.b32.xlu0 %v3219_v12, %s3031_s30 }
 0x3db   :  { %v363_v40 = vpop.permute.xlu1 %362  ;;  %v365_v42 = vpop.permute.xlu0 %364  ;;  %v408_v43 = vpack.c.bf16 %v404_v39, %v400_v35 }
 0x3dc   :  { %v375_v41 = vsel %vm368_vm4, %v363_v40, %v351_v27  ;;  %v376_v45 = vsel %vm368_vm4, %v365_v42, %v353_v28  ;;  %v454_v27 = vrot.slane %v2916_v60, %v3384_v37  ;;  %v458_v28 = vrot.slane %v2916_v60, %v3386_v38 }
 0x3dd   :  { %v399_v44 = vmul.f32 %v382_v34, %v375_v41  ;;  %819 = vrot.lane.b32.xlu1 %v3237_v16, %s3031_s30  ;;  %v403_v48 = vmul.f32 %v382_v34, %v376_v45  ;;  %821 = vrot.lane.b32.xlu0 %v3239_v18, %s3031_s30 }
 0x3de   :  { %922 = vmatprep.subr.bf16.mxu0 %v408_v43 }
 0x3df   :  { %v359_v49 = vpop.permute.xlu1 %358  ;;  %v407_v50 = vpack.c.bf16 %v403_v48, %v399_v44  ;;  %v361_v53 = vpop.permute.xlu0 %360  ;;  %v2917_v44 = vld [vmem:[%s4491_s23 + $0x2] ss:$8 sm:$0xf] }
 0x3e0   :  { %v369_v51 = vsel %vm368_vm4, %v359_v49, %v363_v40  ;;  %v371_v52 = vsel %vm368_vm4, %v355_v31, %v359_v49  ;;  %v370_v56 = vsel %vm368_vm4, %v361_v53, %v365_v42  ;;  %v372_v57 = vsel %vm368_vm4, %v357_v33, %v361_v53 }
 0x3e1   :  { %v401_v54 = vmul.f32 %v390_v46, %v371_v52  ;;  %v402_v55 = vmul.f32 %v394_v47, %v369_v51  ;;  %v405_v58 = vmul.f32 %v390_v46, %v372_v57  ;;  %v406_v59 = vmul.f32 %v394_v47, %v370_v56  ;;  %923 = vmatpush1.bf16.msra.mxu0 %v407_v50 }
 0x3e2   :  { %v514_v49 = vrot.slane %v2917_v44, %v3353_v22 }
 0x3e3   :  { %v416_v61 = vpop.permute.xlu1 %415  ;;  %v409_v0 = vpack.c.bf16 %v405_v58, %v401_v54  ;;  %v418_v3 = vpop.permute.xlu0 %417  ;;  %v410_v4 = vpack.c.bf16 %v406_v59, %v402_v55  ;;  %v510_v55 = vrot.slane %v2917_v44, %v3367_v29 }
 0x3e5   :  { %963 = vmatprep.subr.bf16.mxu1 %v410_v4  ;;  %v522_v4 = vrot.slane %v2917_v44, %v3386_v38 }
 0x3e6   :  { %964 = vmatpush1.bf16.msra.mxu1 %v409_v0 }
 0x3e7   :  { %v420_v11 = vpop.permute.xlu1 %419  ;;  %v422_v62 = vpop.permute.xlu0 %421 }
 0x3e8   :  { %v436_v13 = vsel %vm431_vm5, %v416_v61, %v420_v11  ;;  %v437_v9 = vsel %vm431_vm5, %v418_v3, %v422_v62 }
 0x3e9   :  { %v464_v1 = vmul.f32 %v450_v5, %v436_v13  ;;  %v468_v2 = vmul.f32 %v450_v5, %v437_v9 }
 0x3eb   :  { %v428_v10 = vpop.permute.xlu1 %427  ;;  %v430_v7 = vpop.permute.xlu0 %429  ;;  %v472_v20 = vpack.c.bf16 %v468_v2, %v464_v1 }
 0x3ec   :  { %v438_v17 = vsel %vm431_vm5, %v428_v10, %v416_v61  ;;  %v439_v25 = vsel %vm431_vm5, %v430_v7, %v418_v3  ;;  %v518_v3 = vrot.slane %v2917_v44, %v3384_v37 }
 0x3ed   :  { %v463_v24 = vmul.f32 %v446_v15, %v438_v17  ;;  %v467_v30 = vmul.f32 %v446_v15, %v439_v25  ;;  %924 = vmatprep.subr.bf16.mxu0 %v472_v20 }
 0x3ef   :  { %v424_v31 = vpop.permute.xlu1 %423  ;;  %v471_v32 = vpack.c.bf16 %v467_v30, %v463_v24  ;;  %v426_v35 = vpop.permute.xlu0 %425  ;;  %v2918_v24 = vld [vmem:[%s4491_s23 + $0x3] ss:$8 sm:$0xf] }
 0x3f0   :  { %v432_v33 = vsel %vm431_vm5, %v424_v31, %v428_v10  ;;  %v434_v34 = vsel %vm431_vm5, %v420_v11, %v424_v31  ;;  %v433_v40 = vsel %vm431_vm5, %v426_v35, %v430_v7  ;;  %v435_v41 = vsel %vm431_vm5, %v422_v62, %v426_v35 }
 0x3f1   :  { %v465_v36 = vmul.f32 %v454_v27, %v434_v34  ;;  %v466_v39 = vmul.f32 %v458_v28, %v432_v33  ;;  %v469_v42 = vmul.f32 %v454_v27, %v435_v41  ;;  %v470_v43 = vmul.f32 %v458_v28, %v433_v40  ;;  %925 = vmatpush1.bf16.msra.mxu0 %v471_v32 }
 0x3f2   :  { %v578_v31 = vrot.slane %v2918_v24, %v3353_v22 }
 0x3f3   :  { %v480_v45 = vpop.permute.xlu1 %479  ;;  %v473_v46 = vpack.c.bf16 %v469_v42, %v465_v36  ;;  %v482_v47 = vpop.permute.xlu0 %481  ;;  %v474_v48 = vpack.c.bf16 %v470_v43, %v466_v39  ;;  %v574_v39 = vrot.slane %v2918_v24, %v3367_v29 }
 0x3f5   :  { %965 = vmatprep.subr.bf16.mxu1 %v474_v48  ;;  %v586_v48 = vrot.slane %v2918_v24, %v3386_v38 }
 0x3f6   :  { %966 = vmatpush1.bf16.msra.mxu1 %v473_v46 }
 0x3f7   :  { %v484_v50 = vpop.permute.xlu1 %483  ;;  %v486_v52 = vpop.permute.xlu0 %485 }
 0x3f8   :  { %v500_v51 = vsel %vm495_vm6, %v480_v45, %v484_v50  ;;  %v501_v54 = vsel %vm495_vm6, %v482_v47, %v486_v52 }
 0x3f9   :  { %v528_v53 = vmul.f32 %v514_v49, %v500_v51  ;;  %v532_v56 = vmul.f32 %v514_v49, %v501_v54 }
 0x3fb   :  { %v492_v57 = vpop.permute.xlu1 %491  ;;  %v494_v59 = vpop.permute.xlu0 %493  ;;  %v536_v60 = vpack.c.bf16 %v532_v56, %v528_v53 }
 0x3fc   :  { %v502_v58 = vsel %vm495_vm6, %v492_v57, %v480_v45  ;;  %v503_v0 = vsel %vm495_vm6, %v494_v59, %v482_v47  ;;  %v582_v47 = vrot.slane %v2918_v24, %v3384_v37 }
 0x3fd   :  { %v527_v61 = vmul.f32 %v510_v55, %v502_v58  ;;  %v531_v5 = vmul.f32 %v510_v55, %v503_v0  ;;  %926 = vmatprep.subr.bf16.mxu0 %v536_v60  ;;  %v608_v55 = vpack.c.bf16 %v3229_v14, %v3227_v6  ;;  %v2919_v0 = vld [vmem:[%s4491_s23 + $0x5] ss:$8 sm:$0xf]  ;;  %v607_v6 = vpack.c.bf16 %v3219_v12, %v3217_v8 }
 0x3fe   :  { %v609_v12 = vpack.c.bf16 %v3247_v19, %v3245_v63 }
 0x3ff   :  { %v488_v11 = vpop.permute.xlu1 %487  ;;  %v535_v13 = vpack.c.bf16 %v531_v5, %v527_v61  ;;  %v490_v9 = vpop.permute.xlu0 %489 }
 0x400   :  { %v496_v62 = vsel %vm495_vm6, %v488_v11, %v492_v57  ;;  %v498_v1 = vsel %vm495_vm6, %v484_v50, %v488_v11  ;;  %v497_v10 = vsel %vm495_vm6, %v490_v9, %v494_v59  ;;  %v499_v17 = vsel %vm495_vm6, %v486_v52, %v490_v9 }
 0x401   :  { %v529_v15 = vmul.f32 %v518_v3, %v498_v1  ;;  %v530_v2 = vmul.f32 %v522_v4, %v496_v62  ;;  %v533_v7 = vmul.f32 %v518_v3, %v499_v17  ;;  %v534_v20 = vmul.f32 %v522_v4, %v497_v10  ;;  %927 = vmatpush1.bf16.msra.mxu0 %v535_v13 }
 0x402   :  { %v650_v11 = vrot.slane %v2919_v0, %v3353_v22  ;;  %v610_v13 = vpack.c.bf16 %v3239_v18, %v3237_v16 }
 0x403   :  { %v544_v25 = vpop.permute.xlu1 %543  ;;  %v537_v27 = vpack.c.bf16 %v533_v7, %v529_v15  ;;  %v546_v28 = vpop.permute.xlu0 %545  ;;  %v538_v30 = vpack.c.bf16 %v534_v20, %v530_v2  ;;  %v646_v2 = vrot.slane %v2919_v0, %v3367_v29 }
 0x405   :  { %967 = vmatprep.subr.bf16.mxu1 %v538_v30 }
 0x406   :  { %968 = vmatpush1.bf16.msra.mxu1 %v537_v27  ;;  %v658_v27 = vrot.slane %v2919_v0, %v3386_v38 }
 0x407   :  { %v548_v32 = vpop.permute.xlu1 %547  ;;  %v550_v34 = vpop.permute.xlu0 %549 }
 0x408   :  { %v564_v33 = vsel %vm559_vm7, %v544_v25, %v548_v32  ;;  %v565_v36 = vsel %vm559_vm7, %v546_v28, %v550_v34 }
 0x409   :  { %v592_v35 = vmul.f32 %v578_v31, %v564_v33  ;;  %v596_v40 = vmul.f32 %v578_v31, %v565_v36 }
 0x40b   :  { %v556_v41 = vpop.permute.xlu1 %555  ;;  %v558_v43 = vpop.permute.xlu0 %557  ;;  %v600_v44 = vpack.c.bf16 %v596_v40, %v592_v35 }
 0x40c   :  { %v566_v42 = vsel %vm559_vm7, %v556_v41, %v544_v25  ;;  %v567_v46 = vsel %vm559_vm7, %v558_v43, %v546_v28  ;;  %v654_v25 = vrot.slane %v2919_v0, %v3384_v37 }
 0x40d   :  { %v591_v45 = vmul.f32 %v574_v39, %v566_v42  ;;  %v595_v49 = vmul.f32 %v574_v39, %v567_v46  ;;  %928 = vmatprep.subr.bf16.mxu0 %v600_v44 }
 0x40f   :  { %v552_v50 = vpop.permute.xlu1 %551  ;;  %v599_v51 = vpack.c.bf16 %v595_v49, %v591_v45  ;;  %v554_v54 = vpop.permute.xlu0 %553 }
 0x410   :  { %v560_v52 = vsel %vm559_vm7, %v552_v50, %v556_v41  ;;  %v562_v53 = vsel %vm559_vm7, %v548_v32, %v552_v50  ;;  %v561_v58 = vsel %vm559_vm7, %v554_v54, %v558_v43  ;;  %v563_v59 = vsel %vm559_vm7, %v550_v34, %v554_v54  ;;  %v2920_v41 = vld [vmem:[%s4491_s23 + $0x6] ss:$8 sm:$0xf] }
 0x411   :  { %v593_v56 = vmul.f32 %v582_v47, %v562_v53  ;;  %v594_v57 = vmul.f32 %v586_v48, %v560_v52  ;;  %v597_v60 = vmul.f32 %v582_v47, %v563_v59  ;;  %v598_v61 = vmul.f32 %v586_v48, %v561_v58  ;;  %929 = vmatpush1.bf16.msra.mxu0 %v599_v51 }
 0x412   :  { %930 = vmatprep.subr.bf16.mxu0 %v608_v55  ;;  %v714_v46 = vrot.slane %v2920_v41, %v3353_v22  ;;  %v710_v52 = vrot.slane %v2920_v41, %v3367_v29 }
 0x413   :  { %v620_v3 = vpop.permute.xlu1 %619  ;;  %v601_v4 = vpack.c.bf16 %v597_v60, %v593_v56  ;;  %v622_v5 = vpop.permute.xlu0 %621  ;;  %v602_v14 = vpack.c.bf16 %v598_v61, %v594_v57  ;;  %v718_v60 = vrot.slane %v2920_v41, %v3384_v37  ;;  %v722_v61 = vrot.slane %v2920_v41, %v3386_v38 }
 0x415   :  { %931 = vmatpush1.bf16.msra.mxu0 %v607_v6  ;;  %969 = vmatprep.subr.bf16.mxu1 %v602_v14 }
 0x416   :  { %970 = vmatpush1.bf16.msra.mxu1 %v601_v4 }
 0x417   :  { %v624_v62 = vpop.permute.xlu1 %623  ;;  %971 = vmatprep.subr.bf16.mxu1 %v610_v13  ;;  %v626_v9 = vpop.permute.xlu0 %625 }
 0x418   :  { %v634_v1 = vsel %vm631_vm8, %v620_v3, %v624_v62  ;;  %v635_v8 = vsel %vm631_vm8, %v622_v5, %v626_v9 }
 0x419   :  { %v664_v15 = vmul.f32 %v650_v11, %v634_v1  ;;  %v668_v10 = vmul.f32 %v650_v11, %v635_v8  ;;  %v2921_v8 = vld [vmem:[%s4491_s23 + $0x7] ss:$8 sm:$0xf] }
 0x41a   :  { %972 = vmatpush1.bf16.msra.mxu1 %v609_v12 }
 0x41b   :  { %v616_v17 = vpop.permute.xlu1 %615  ;;  %v618_v18 = vpop.permute.xlu0 %617  ;;  %v672_v7 = vpack.c.bf16 %v668_v10, %v664_v15 }
 0x41c   :  { %v636_v16 = vsel %vm631_vm8, %v616_v17, %v620_v3  ;;  %v637_v24 = vsel %vm631_vm8, %v618_v18, %v622_v5 }
 0x41d   :  { %v663_v20 = vmul.f32 %v646_v2, %v636_v16  ;;  %v667_v28 = vmul.f32 %v646_v2, %v637_v24  ;;  %932 = vmatprep.subr.bf16.mxu0 %v672_v7  ;;  %v778_v16 = vrot.slane %v2921_v8, %v3353_v22 }
 0x41f   :  { %v628_v63 = vpop.permute.xlu1 %627  ;;  %v671_v19 = vpack.c.bf16 %v667_v28, %v663_v20  ;;  %v630_v32 = vpop.permute.xlu0 %629 }
 0x420   :  { %v632_v30 = vsel %vm631_vm8, %v624_v62, %v628_v63  ;;  %v638_v31 = vsel %vm631_vm8, %v628_v63, %v616_v17  ;;  %v633_v35 = vsel %vm631_vm8, %v626_v9, %v630_v32  ;;  %v639_v36 = vsel %vm631_vm8, %v630_v32, %v618_v18 }
 0x421   :  { %v665_v33 = vmul.f32 %v654_v25, %v632_v30  ;;  %v666_v34 = vmul.f32 %v658_v27, %v638_v31  ;;  %v669_v39 = vmul.f32 %v654_v25, %v633_v35  ;;  %v670_v40 = vmul.f32 %v658_v27, %v639_v36  ;;  %933 = vmatpush1.bf16.msra.mxu0 %v671_v19 }
 0x422   :  { %v774_v27 = vrot.slane %v2921_v8, %v3367_v29  ;;  %v786_v35 = vrot.slane %v2921_v8, %v3386_v38 }
 0x423   :  { %v684_v42 = vpop.permute.xlu1 %683  ;;  %v673_v43 = vpack.c.bf16 %v669_v39, %v665_v33  ;;  %v686_v44 = vpop.permute.xlu0 %685  ;;  %v674_v45 = vpack.c.bf16 %v670_v40, %v666_v34  ;;  %v782_v34 = vrot.slane %v2921_v8, %v3384_v37 }
 0x425   :  { %973 = vmatprep.subr.bf16.mxu1 %v674_v45 }
 0x426   :  { %974 = vmatpush1.bf16.msra.mxu1 %v673_v43 }
 0x427   :  { %v688_v47 = vpop.permute.xlu1 %687  ;;  %v690_v49 = vpop.permute.xlu0 %689 }
 0x428   :  { %v698_v48 = vsel %vm695_vm9, %v684_v42, %v688_v47  ;;  %v699_v51 = vsel %vm695_vm9, %v686_v44, %v690_v49 }
 0x429   :  { %v728_v50 = vmul.f32 %v714_v46, %v698_v48  ;;  %v732_v53 = vmul.f32 %v714_v46, %v699_v51 }
 0x42b   :  { %v680_v54 = vpop.permute.xlu1 %679  ;;  %v682_v56 = vpop.permute.xlu0 %681  ;;  %v736_v57 = vpack.c.bf16 %v732_v53, %v728_v50  ;;  %v2922_v50 = vld [vmem:[%s4491_s23 + $0x20] ss:$8 sm:$0xf] }
 0x42c   :  { %v700_v55 = vsel %vm695_vm9, %v680_v54, %v684_v42  ;;  %v701_v59 = vsel %vm695_vm9, %v682_v56, %v686_v44 }
 0x42d   :  { %v727_v58 = vmul.f32 %v710_v52, %v700_v55  ;;  %v731_v0 = vmul.f32 %v710_v52, %v701_v59  ;;  %934 = vmatprep.subr.bf16.mxu0 %v736_v57  ;;  %v842_v55 = vrot.slane %v2922_v50, %v3353_v22 }
 0x42f   :  { %v692_v3 = vpop.permute.xlu1 %691  ;;  %v735_v4 = vpack.c.bf16 %v731_v0, %v727_v58  ;;  %v694_v14 = vpop.permute.xlu0 %693 }
 0x430   :  { %v696_v5 = vsel %vm695_vm9, %v688_v47, %v692_v3  ;;  %v702_v6 = vsel %vm695_vm9, %v692_v3, %v680_v54  ;;  %v697_v62 = vsel %vm695_vm9, %v690_v49, %v694_v14  ;;  %v703_v1 = vsel %vm695_vm9, %v694_v14, %v682_v56 }
 0x431   :  { %v729_v11 = vmul.f32 %v718_v60, %v696_v5  ;;  %v730_v13 = vmul.f32 %v722_v61, %v702_v6  ;;  %v733_v9 = vmul.f32 %v718_v60, %v697_v62  ;;  %v734_v15 = vmul.f32 %v722_v61, %v703_v1  ;;  %935 = vmatpush1.bf16.msra.mxu0 %v735_v4 }
 0x432   :  { %v838_v61 = vrot.slane %v2922_v50, %v3367_v29  ;;  %v850_v62 = vrot.slane %v2922_v50, %v3386_v38 }
 0x433   :  { %v748_v12 = vpop.permute.xlu1 %747  ;;  %v737_v2 = vpack.c.bf16 %v733_v9, %v729_v11  ;;  %v750_v10 = vpop.permute.xlu0 %749  ;;  %v738_v17 = vpack.c.bf16 %v734_v15, %v730_v13  ;;  %v846_v13 = vrot.slane %v2922_v50, %v3384_v37 }
 0x435   :  { %975 = vmatprep.subr.bf16.mxu1 %v738_v17 }
 0x436   :  { %976 = vmatpush1.bf16.msra.mxu1 %v737_v2 }
 0x437   :  { %v752_v18 = vpop.permute.xlu1 %751  ;;  %v754_v20 = vpop.permute.xlu0 %753 }
 0x438   :  { %v762_v7 = vsel %vm759_vm10, %v748_v12, %v752_v18  ;;  %v763_v25 = vsel %vm759_vm10, %v750_v10, %v754_v20 }
 0x439   :  { %v792_v24 = vmul.f32 %v778_v16, %v762_v7  ;;  %v796_v28 = vmul.f32 %v778_v16, %v763_v25 }
 0x43b   :  { %v744_v63 = vpop.permute.xlu1 %743  ;;  %v746_v30 = vpop.permute.xlu0 %745  ;;  %v800_v31 = vpack.c.bf16 %v796_v28, %v792_v24 }
 0x43c   :  { %v764_v19 = vsel %vm759_vm10, %v744_v63, %v748_v12  ;;  %v765_v33 = vsel %vm759_vm10, %v746_v30, %v750_v10 }
 0x43d   :  { %v791_v32 = vmul.f32 %v774_v27, %v764_v19  ;;  %v795_v36 = vmul.f32 %v774_v27, %v765_v33  ;;  %936 = vmatprep.subr.bf16.mxu0 %v800_v31 }
 0x43f   :  { %v756_v39 = vpop.permute.xlu1 %755  ;;  %v799_v40 = vpack.c.bf16 %v795_v36, %v791_v32  ;;  %v758_v43 = vpop.permute.xlu0 %757 }
 0x440   :  { %v760_v41 = vsel %vm759_vm10, %v752_v18, %v756_v39  ;;  %v766_v42 = vsel %vm759_vm10, %v756_v39, %v744_v63  ;;  %v761_v46 = vsel %vm759_vm10, %v754_v20, %v758_v43  ;;  %v767_v47 = vsel %vm759_vm10, %v758_v43, %v746_v30 }
 0x441   :  { %v793_v44 = vmul.f32 %v782_v34, %v760_v41  ;;  %v794_v45 = vmul.f32 %v786_v35, %v766_v42  ;;  %v797_v48 = vmul.f32 %v782_v34, %v761_v46  ;;  %v798_v49 = vmul.f32 %v786_v35, %v767_v47  ;;  %937 = vmatpush1.bf16.msra.mxu0 %v799_v40 }
 0x443   :  { %v812_v51 = vpop.permute.xlu1 %811  ;;  %v801_v52 = vpack.c.bf16 %v797_v48, %v793_v44  ;;  %v814_v53 = vpop.permute.xlu0 %813  ;;  %v802_v54 = vpack.c.bf16 %v798_v49, %v794_v45 }
 0x445   :  { %977 = vmatprep.subr.bf16.mxu1 %v802_v54 }
 0x446   :  { %978 = vmatpush1.bf16.msra.mxu1 %v801_v52 }
 0x447   :  { %v816_v56 = vpop.permute.xlu1 %815  ;;  %v818_v58 = vpop.permute.xlu0 %817 }
 0x448   :  { %v826_v57 = vsel %vm823_vm11, %v812_v51, %v816_v56  ;;  %v827_v60 = vsel %vm823_vm11, %v814_v53, %v818_v58 }
 0x449   :  { %v856_v59 = vmul.f32 %v842_v55, %v826_v57  ;;  %v860_v0 = vmul.f32 %v842_v55, %v827_v60 }
 0x44b   :  { %v808_v3 = vpop.permute.xlu1 %807  ;;  %v810_v5 = vpop.permute.xlu0 %809  ;;  %v864_v6 = vpack.c.bf16 %v860_v0, %v856_v59 }
 0x44c   :  { %v828_v4 = vsel %vm823_vm11, %v808_v3, %v812_v51  ;;  %v829_v11 = vsel %vm823_vm11, %v810_v5, %v814_v53 }
 0x44d   :  { %v855_v14 = vmul.f32 %v838_v61, %v828_v4  ;;  %v859_v1 = vmul.f32 %v838_v61, %v829_v11  ;;  %938 = vmatprep.subr.bf16.mxu0 %v864_v6  ;;  %v1043_v61 = vld [vmem:[%s4467_s8] sm:$0xff] }
 0x44e   :  { %v1047_v4 = vld [vmem:[%s4468_s9] sm:$0xff] }
 0x44f   :  { %v820_v9 = vpop.permute.xlu1 %819  ;;  %v863_v15 = vpack.c.bf16 %v859_v1, %v855_v14  ;;  %v822_v2 = vpop.permute.xlu0 %821 }
 0x450   :  { %v824_v8 = vsel %vm823_vm11, %v816_v56, %v820_v9  ;;  %v830_v12 = vsel %vm823_vm11, %v820_v9, %v808_v3  ;;  %v825_v16 = vsel %vm823_vm11, %v818_v58, %v822_v2  ;;  %v831_v18 = vsel %vm823_vm11, %v822_v2, %v810_v5 }
 0x451   :  { %v857_v10 = vmul.f32 %v846_v13, %v824_v8  ;;  %v858_v17 = vmul.f32 %v850_v62, %v830_v12  ;;  %v861_v7 = vmul.f32 %v846_v13, %v825_v16  ;;  %v862_v20 = vmul.f32 %v850_v62, %v831_v18  ;;  %939 = vmatpush1.bf16.msra.mxu0 %v863_v15 }
 0x453   :  { %v865_v24 = vpack.c.bf16 %v861_v7, %v857_v10  ;;  %v866_v25 = vpack.c.bf16 %v862_v20, %v858_v17 }
 0x454   :  { %955 = vmatmul.mubr.bf16.vlgmr.msra.gmra.mrb[4].mxu0 %v3358_v23 }
 0x455   :  { %979 = vmatprep.subr.bf16.mxu1 %v866_v25  ;;  %1131 = vmatprep.mubr.bf16.mxu0 %v3023_v26 }
 0x456   :  { %980 = vmatpush1.bf16.msra.mxu1 %v865_v24 }
 0x459   :  { %996 = vmatmul.mubr.bf16.vlgmr.msra.gmra.mrb[4].mxu1 %v3358_v23 }
 0x45a   :  { %1174 = vmatprep.mubr.bf16.mxu1 %v3023_v26 }
 0x527   :  { %v956_v27 = vpop.f32.mrb[4].mxu0 }
 0x528   :  { %v1008_v28 = vrot.slane %v956_v27, 4  ;;  %v958_v63 = vpop.f32.mrb[5].mxu0 }
 0x529   :  { %v1009_v19 = vrot.slane %v958_v63, 4  ;;  %v960_v30 = vpop.f32.mrb[6].mxu0  ;;  %v2973_v63 = vld [vmem:[%s4469_s10] sm:$0xff]  }
 0x52a   :  { %1016 = vst [vmem:[#allocation3] sm:$0xf0] %v1008_v28  ;;  %v961_v31 = vpop.f32.mrb[7].mxu0 }
 0x52b   :  { %1017 = vst [vmem:[#allocation3 + $0x8] sm:$0xf0] %v1009_v19 }
 0x52c   :  { %v997_v32 = vpop.f32.mrb[4].mxu1 }
 0x52d   :  { %v1010_v33 = vrot.slane %v997_v32, 4  ;;  %v999_v34 = vpop.f32.mrb[5].mxu1 }
 0x52e   :  { %v1011_v35 = vrot.slane %v999_v34, 4  ;;  %v1001_v36 = vpop.f32.mrb[6].mxu1 }
 0x52f   :  { %1018 = vst [vmem:[#allocation3 + $0x10] sm:$0xf0] %v1010_v33  ;;  %v1002_v39 = vpop.f32.mrb[7].mxu1 }
 0x530   :  { %1019 = vst [vmem:[#allocation3 + $0x18] sm:$0xf0] %v1011_v35 }
 0x531   :  { %v1020_v40 = vld [vmem:[#allocation3] sm:$0xff] }
 0x532   :  { %v1021_v23 = vld [vmem:[#allocation3 + $0x8] sm:$0xff]  ;;  %v1030_v41 = vmul.f32 %v1020_v40, %v1020_v40 }
 0x533   :  { %v1024_v42 = vadd.f32 %v1021_v23, %v1020_v40  ;;  %v1031_v43 = vmul.f32 %v1021_v23, %v1021_v23 }
 0x535   :  { %v1034_v44 = vadd.f32 %v1031_v43, %v1030_v41 }
 0x536   :  { %v1022_v45 = vld [vmem:[#allocation3 + $0x10] sm:$0xff] }
 0x537   :  { %v1023_v46 = vld [vmem:[#allocation3 + $0x18] sm:$0xff]  ;;  %v1025_v47 = vadd.f32 %v1024_v42, %v1022_v45  ;;  %v1032_v48 = vmul.f32 %v1022_v45, %v1022_v45 }
 0x538   :  { %v1033_v49 = vmul.f32 %v1023_v46, %v1023_v46 }
 0x539   :  { %v3588_v50 = vadd.f32 %v1025_v47, %v1023_v46  ;;  %v1035_v51 = vadd.f32 %v1034_v44, %v1032_v48 }
 0x53b   :  { %1027 = vadd.xlane.f32.xlu1 %v3588_v50  ;;  %v1036_v52 = vadd.f32 %v1035_v51, %v1033_v49 }
 0x53d   :  { %1037 = vadd.xlane.f32.xlu0 %v1036_v52 }
 0x5c8   :  { %v1028_v53 = vpop.xlane.xlu1 %1027 }
 0x5c9   :  { %v1029_v54 = vmul.f32 0.001953125, %v1028_v53 }
 0x5ca   :  { %v1038_v55 = vpop.xlane.xlu0 %1037 }
 0x5cb   :  { %v1040_v56 = vmul.f32 %v1029_v54, %v1029_v54  ;;  %v1039_v57 = vmul.f32 0.001953125, %v1038_v55 }
 0x5cd   :  { %v1041_v58 = vsub.f32 %v1039_v57, %v1040_v56 }
 0x5cf   :  { %v1042_v59 = vmax.f32 %v1041_v58, 0.0 }
 0x5d1   :  { %v1044_v60 = vadd.f32 1e-05, %v1042_v59 }
 0x5d3   :  { %2981 = vrsqrt.f32 %v1044_v60 }
 0x5dd   :  { %v2982_v0 = vpop.eup %2981 }
 0x5de   :  { %v1046_v3 = vmul.f32 %v2982_v0, %v1043_v61 }
 0x5e0   :  { %1052 = vperm.xlu0 %2969, %v1046_v3   ;;  %v1048_v5 = vmul.f32 %v1046_v3, %v1029_v54 }
 0x5e2   :  { %v1049_v6 = vsub.f32 %v1047_v4, %v1048_v5 }
 0x5e4   :  { %1061 = vperm.xlu1 %2968, %v1049_v6  }
 0x65f   :  { %v1053_v14 = vpop.permute.xlu0 %1052 }
 0x660   :  { %v1056_v11 = vmul.f32 %v1053_v14, %v1021_v23  ;;  %v1058_v13 = vmul.f32 %v1053_v14, %v1023_v46  ;;  %v1055_v62 = vmul.f32 %v1053_v14, %v1020_v40  ;;  %v1057_v1 = vmul.f32 %v1053_v14, %v1022_v45 }
 0x663   :  { %v1062_v9 = vpop.permute.xlu1 %1061 }
 0x664   :  { %v1065_v15 = vadd.f32 %v1062_v9, %v1056_v11  ;;  %v1067_v8 = vadd.f32 %v1062_v9, %v1058_v13  ;;  %v1064_v12 = vadd.f32 %v1062_v9, %v1055_v62  ;;  %v1066_v2 = vadd.f32 %v1062_v9, %v1057_v1 }
 0x666   :  { %v1069_v10 = vmax.f32 %v1065_v15, 0.0  ;;  %v1071_v17 = vmax.f32 %v1067_v8, 0.0  ;;  %v1068_v16 = vmax.f32 %v1064_v12, 0.0  ;;  %v1070_v18 = vmax.f32 %v1066_v2, 0.0  ;;  %v1224_v12 = vld [vmem:[%s4470_s11 + $0x8] sm:$0xff] }
 0x668   :  { %v1075_v7 = vpack.c.bf16 %v1069_v10, %v1069_v10  ;;  %v1077_v20 = vpack.c.bf16 %v1071_v17, %v1071_v17  ;;  %v1074_v24 = vpack.c.bf16 %v1068_v16, %v1068_v16  ;;  %v1076_v25 = vpack.c.bf16 %v1070_v18, %v1070_v18  ;;  %v1223_v10 = vld [vmem:[%s4470_s11] sm:$0xff] }
 0x66a   :  { %2927 = vmatprep.subr.msk.bf16.mxu0 %vm83_vm0, %v1075_v7  ;;  %2929 = vmatprep.subr.msk.bf16.mxu1 %vm83_vm0, %v1077_v20  ;;  %v1088_v27 = vsel %vm83_vm0, %v1074_v24, 0  ;;  %v1094_v28 = vsel %vm83_vm0, %v1076_v25, 0  ;;  %v1232_v20 = vld [vmem:[%s4471_s12 + $0x8] sm:$0xff]  ;;  %v1231_v24 = vld [vmem:[%s4471_s12] sm:$0xff] }
 0x66b   :  { %1100 = vmatpush1.bf16.msra.mxu0 %v1088_v27  ;;  %1143 = vmatpush1.bf16.msra.mxu1 %v1094_v28 }
 0x66e   :  { %2928 = vmatmul.mubr.msk.bf16.vlgmr.msra.gmra.mrb[8].mxu0 %vm1083_vm12, %v2973_v63  ;;  %2930 = vmatmul.mubr.msk.bf16.vlgmr.msra.gmra.mrb[8].mxu1 %vm1083_vm12, %v2973_v63 }
 0x741   :  { %v3604_v19 = vpop.f32.mrb[8].mxu0  ;;  %v3606_v30 = vpop.f32.mrb[8].mxu1 }
 0x742   :  { %v1197_v31 = vmul.f32 %v3604_v19, %v3604_v19  ;;  %v3610_v32 = vpop.f32.mrb[9].mxu0  ;;  %v3612_v33 = vpop.f32.mrb[9].mxu1  ;;  %v1199_v40 = vmul.f32 %v3606_v30, %v3606_v30 }
 0x743   :  { %v1185_v34 = vadd.f32 %v3610_v32, %v3604_v19  ;;  %v1198_v35 = vmul.f32 %v3610_v32, %v3610_v32  ;;  %v1137_v36 = vpop.f32.mrb[10].mxu0  ;;  %v3618_v39 = vpop.f32.mrb[10].mxu1  ;;  %v1200_v52 = vmul.f32 %v3612_v33, %v3612_v33 }
 0x744   :  { %v1201_v23 = vmul.f32 %v1137_v36, %v1137_v36  ;;  %v1139_v41 = vpop.f32.mrb[11].mxu0  ;;  %v3622_v42 = vpop.f32.mrb[11].mxu1  ;;  %v1203_v47 = vmul.f32 %v3618_v39, %v3618_v39 }
 0x745   :  { %v1190_v43 = vadd.f32 %v1139_v41, %v1137_v36  ;;  %v1202_v44 = vmul.f32 %v1139_v41, %v1139_v41  ;;  %v1186_v45 = vadd.f32 %v1185_v34, %v3606_v30  ;;  %v1205_v46 = vadd.f32 %v1198_v35, %v1197_v31 }
 0x746   :  { %v1204_v55 = vmul.f32 %v3622_v42, %v3622_v42 }
 0x747   :  { %v1187_v48 = vadd.f32 %v1186_v45, %v3612_v33  ;;  %v1191_v49 = vadd.f32 %v1190_v43, %v3618_v39  ;;  %v1210_v51 = vadd.f32 %v1202_v44, %v1201_v23  ;;  %v1206_v53 = vadd.f32 %v1205_v46, %v1199_v40 }
 0x749   :  { %1188 = vadd.xlane.f32.xlu1 %v1187_v48  ;;  %v1192_v54 = vadd.f32 %v1191_v49, %v3622_v42  ;;  %v1211_v56 = vadd.f32 %v1210_v51, %v1203_v47  ;;  %v1207_v57 = vadd.f32 %v1206_v53, %v1200_v52 }
 0x74b   :  { %1193 = vadd.xlane.f32.xlu0 %v1192_v54  ;;  %v1212_v58 = vadd.f32 %v1211_v56, %v1204_v55 }
 0x74d   :  { %1213 = vadd.xlane.f32.xlu1 %v1212_v58 }
 0x74f   :  { %1208 = vadd.xlane.f32.xlu0 %v1207_v57 }
 0x7d6   :  { %v1189_v59 = vpop.xlane.xlu1 %1188 }
 0x7d7   :  { %v1195_v61 = vmul.f32 0.001953125, %v1189_v59  ;;  %v1305_v59 = vld [vmem:[%s4491_s23] ss:$8 sm:$0xf] }
 0x7d8   :  { %v1194_v60 = vpop.xlane.xlu0 %1193 }
 0x7d9   :  { %v1196_v0 = vmul.f32 0.001953125, %v1194_v60  ;;  %v1217_v14 = vmul.f32 %v1195_v61, %v1195_v61 }
 0x7da   :  { %v1214_v3 = vpop.xlane.xlu1 %1213 }
 0x7db   :  { %v1218_v4 = vmul.f32 %v1196_v0, %v1196_v0  ;;  %v1216_v5 = vmul.f32 0.001953125, %v1214_v3  ;;  %v1314_v3 = vrot.slane %v1305_v59, %v3353_v22 }
 0x7dc   :  { %v1209_v6 = vpop.xlane.xlu0 %1208 }
 0x7dd   :  { %v1220_v11 = vsub.f32 %v1216_v5, %v1218_v4  ;;  %v1215_v13 = vmul.f32 0.001953125, %v1209_v6 }
 0x7df   :  { %v1222_v62 = vmax.f32 %v1220_v11, 0.0  ;;  %v1219_v1 = vsub.f32 %v1215_v13, %v1217_v14  ;;  %v1310_v13 = vrot.slane %v1305_v59, %v3367_v29 }
 0x7e1   :  { %v1226_v9 = vadd.f32 1e-05, %v1222_v62  ;;  %v1221_v15 = vmax.f32 %v1219_v1, 0.0 }
 0x7e3   :  { %2983 = vrsqrt.f32 %v1226_v9  ;;  %v1225_v8 = vadd.f32 1e-05, %v1221_v15 }
 0x7e5   :  { %2985 = vrsqrt.f32 %v1225_v8 }
 0x7ed   :  { %v2984_v2 = vpop.eup %2983 }
 0x7ee   :  { %v1230_v17 = vmul.f32 %v2984_v2, %v1224_v12 }
 0x7ef   :  { %v2986_v16 = vpop.eup %2985 }
 0x7f0   :  { %1244 = vperm.xlu1 %2968, %v1230_v17   ;;  %v1229_v18 = vmul.f32 %v2986_v16, %v1223_v10  ;;  %v1234_v7 = vmul.f32 %v1230_v17, %v1196_v0  ;;  %v1318_v10 = vrot.slane %v1305_v59, %v3384_v37  ;;  %v1322_v17 = vrot.slane %v1305_v59, %v3386_v38 }
 0x7f2   :  { %1239 = vperm.xlu0 %2969, %v1229_v18   ;;  %v1233_v25 = vmul.f32 %v1229_v18, %v1195_v61  ;;  %v1236_v27 = vsub.f32 %v1232_v20, %v1234_v7 }
 0x7f4   :  { %v1235_v28 = vsub.f32 %v1231_v24, %v1233_v25 }
 0x7f6   :  { %1262 = vperm.xlu0 %2969, %v1236_v27   ;;  %1257 = vperm.xlu1 %2968, %v1235_v28  }
 0x86f   :  { %v1245_v63 = vpop.permute.xlu1 %1244 }
 0x870   :  { %v1251_v34 = vmul.f32 %v1245_v63, %v1137_v36  ;;  %v1252_v43 = vmul.f32 %v1245_v63, %v1139_v41  ;;  %v1254_v52 = vmul.f32 %v1245_v63, %v3622_v42  ;;  %v1253_v54 = vmul.f32 %v1245_v63, %v3618_v39 }
 0x871   :  { %v1240_v31 = vpop.permute.xlu0 %1239 }
 0x872   :  { %v1247_v35 = vmul.f32 %v1240_v31, %v3604_v19  ;;  %v1248_v45 = vmul.f32 %v1240_v31, %v3610_v32  ;;  %v1250_v19 = vmul.f32 %v1240_v31, %v3612_v33  ;;  %v1249_v42 = vmul.f32 %v1240_v31, %v3606_v30  ;;  %v3785_v30 = vld.sshfl [vmem:[%s4472_s13] sm:$0x33 pattern:$0x76325410] }
 0x873   :  { %v1830_v60 = vcombine.high %v3785_v30, %v3785_v30 }
 0x875   :  { %v1263_v40 = vpop.permute.xlu0 %1262  ;;  %v1258_v23 = vpop.permute.xlu1 %1257  ;;  %2939 = vmatprep.mubr.msk.bf16.mxu0 %vm918_vm3, %v1830_v60  ;;  %2940 = vmatprep.mubr.msk.bf16.mxu1 %vm918_vm3, %v1830_v60 }
 0x876   :  { %v1269_v44 = vadd.f32 %v1263_v40, %v1251_v34  ;;  %v1265_v46 = vadd.f32 %v1258_v23, %v1247_v35  ;;  %v1270_v47 = vadd.f32 %v1263_v40, %v1252_v43  ;;  %v1266_v49 = vadd.f32 %v1258_v23, %v1248_v45 }
 0x877   :  { %v1272_v36 = vadd.f32 %v1263_v40, %v1254_v52  ;;  %v1268_v32 = vadd.f32 %v1258_v23, %v1250_v19  ;;  %v1271_v33 = vadd.f32 %v1263_v40, %v1253_v54  ;;  %v1267_v56 = vadd.f32 %v1258_v23, %v1249_v42  ;;  %v2931_v40 = vld [vmem:[%s4491_s23 + $0x1] ss:$8 sm:$0xf] }
 0x878   :  { %v3648_v48 = vmax.f32 %v1269_v44, 0.0  ;;  %v3650_v51 = vmax.f32 %v1265_v46, 0.0  ;;  %v3658_v41 = vmax.f32 %v1270_v47, 0.0  ;;  %v3660_v53 = vmax.f32 %v1266_v49, 0.0 }
 0x879   :  { %v3668_v55 = vmax.f32 %v1272_v36, 0.0  ;;  %v3670_v57 = vmax.f32 %v1268_v32, 0.0  ;;  %v3676_v39 = vmax.f32 %v1271_v33, 0.0  ;;  %v3678_v58 = vmax.f32 %v1267_v56, 0.0 }
 0x87a   :  { %1283 = vrot.lane.b32.xlu0 %v3648_v48, %s3024_s5  ;;  %1281 = vrot.lane.b32.xlu1 %v3650_v51, %s3024_s5  ;;  %v1376_v46 = vrot.slane %v2931_v40, %v3353_v22  ;;  %v1372_v32 = vrot.slane %v2931_v40, %v3367_v29 }
 0x87e   :  { %1287 = vrot.lane.b32.xlu0 %v3658_v41, %s3024_s5  ;;  %1285 = vrot.lane.b32.xlu1 %v3660_v53, %s3024_s5 }
 0x882   :  { %1295 = vrot.lane.b32.xlu0 %v3668_v55, %s3024_s5  ;;  %1293 = vrot.lane.b32.xlu1 %v3670_v57, %s3024_s5 }
 0x886   :  { %1291 = vrot.lane.b32.xlu0 %v3676_v39, %s3024_s5  ;;  %1289 = vrot.lane.b32.xlu1 %v3678_v58, %s3024_s5 }
 0x88a   :  { %1345 = vrot.lane.b32.xlu0 %v3648_v48, %s3025_s6  ;;  %1343 = vrot.lane.b32.xlu1 %v3650_v51, %s3025_s6 }
 0x88e   :  { %1349 = vrot.lane.b32.xlu0 %v3658_v41, %s3025_s6  ;;  %1347 = vrot.lane.b32.xlu1 %v3660_v53, %s3025_s6 }
 0x892   :  { %1357 = vrot.lane.b32.xlu0 %v3668_v55, %s3025_s6  ;;  %1355 = vrot.lane.b32.xlu1 %v3670_v57, %s3025_s6 }
 0x896   :  { %1353 = vrot.lane.b32.xlu0 %v3676_v39, %s3025_s6  ;;  %1351 = vrot.lane.b32.xlu1 %v3678_v58, %s3025_s6 }
 0x89a   :  { %1407 = vrot.lane.b32.xlu0 %v3648_v48, %s3026_s26  ;;  %1405 = vrot.lane.b32.xlu1 %v3650_v51, %s3026_s26 }
 0x89e   :  { %1411 = vrot.lane.b32.xlu0 %v3658_v41, %s3026_s26  ;;  %1409 = vrot.lane.b32.xlu1 %v3660_v53, %s3026_s26 }
 0x8a2   :  { %1419 = vrot.lane.b32.xlu0 %v3668_v55, %s3026_s26  ;;  %1417 = vrot.lane.b32.xlu1 %v3670_v57, %s3026_s26 }
 0x8a6   :  { %1415 = vrot.lane.b32.xlu0 %v3676_v39, %s3026_s26  ;;  %1413 = vrot.lane.b32.xlu1 %v3678_v58, %s3026_s26 }
 0x8aa   :  { %1469 = vrot.lane.b32.xlu0 %v3648_v48, %s3027_s27  ;;  %1467 = vrot.lane.b32.xlu1 %v3650_v51, %s3027_s27 }
 0x8ae   :  { %1473 = vrot.lane.b32.xlu0 %v3658_v41, %s3027_s27  ;;  %1471 = vrot.lane.b32.xlu1 %v3660_v53, %s3027_s27 }
 0x8b2   :  { %1481 = vrot.lane.b32.xlu0 %v3668_v55, %s3027_s27  ;;  %1479 = vrot.lane.b32.xlu1 %v3670_v57, %s3027_s27 }
 0x8b6   :  { %1477 = vrot.lane.b32.xlu0 %v3676_v39, %s3027_s27  ;;  %1475 = vrot.lane.b32.xlu1 %v3678_v58, %s3027_s27 }
 0x8ba   :  { %1543 = vrot.lane.b32.xlu0 %v3658_v41, %s3028_s28  ;;  %1541 = vrot.lane.b32.xlu1 %v3660_v53, %s3028_s28 }
 0x8be   :  { %1547 = vrot.lane.b32.xlu0 %v3676_v39, %s3028_s28  ;;  %1545 = vrot.lane.b32.xlu1 %v3678_v58, %s3028_s28 }
 0x8c2   :  { %1539 = vrot.lane.b32.xlu0 %v3648_v48, %s3028_s28  ;;  %1537 = vrot.lane.b32.xlu1 %v3650_v51, %s3028_s28 }
 0x8c6   :  { %1551 = vrot.lane.b32.xlu0 %v3668_v55, %s3028_s28  ;;  %1549 = vrot.lane.b32.xlu1 %v3670_v57, %s3028_s28 }
 0x8ca   :  { %1605 = vrot.lane.b32.xlu0 %v3658_v41, %s3029_s4  ;;  %1603 = vrot.lane.b32.xlu1 %v3660_v53, %s3029_s4 }
 0x8ce   :  { %1609 = vrot.lane.b32.xlu0 %v3676_v39, %s3029_s4  ;;  %1607 = vrot.lane.b32.xlu1 %v3678_v58, %s3029_s4 }
 0x8d2   :  { %1601 = vrot.lane.b32.xlu0 %v3648_v48, %s3029_s4  ;;  %1599 = vrot.lane.b32.xlu1 %v3650_v51, %s3029_s4 }
 0x8d6   :  { %1613 = vrot.lane.b32.xlu0 %v3668_v55, %s3029_s4  ;;  %1611 = vrot.lane.b32.xlu1 %v3670_v57, %s3029_s4 }
 0x8da   :  { %1667 = vrot.lane.b32.xlu0 %v3658_v41, %s3030_s29  ;;  %1665 = vrot.lane.b32.xlu1 %v3660_v53, %s3030_s29 }
 0x8de   :  { %1671 = vrot.lane.b32.xlu0 %v3676_v39, %s3030_s29  ;;  %1669 = vrot.lane.b32.xlu1 %v3678_v58, %s3030_s29 }
 0x8e2   :  { %1663 = vrot.lane.b32.xlu0 %v3648_v48, %s3030_s29  ;;  %1661 = vrot.lane.b32.xlu1 %v3650_v51, %s3030_s29 }
 0x8e6   :  { %1675 = vrot.lane.b32.xlu0 %v3668_v55, %s3030_s29  ;;  %1673 = vrot.lane.b32.xlu1 %v3670_v57, %s3030_s29 }
 0x8ea   :  { %1729 = vrot.lane.b32.xlu0 %v3658_v41, %s3031_s30  ;;  %1727 = vrot.lane.b32.xlu1 %v3660_v53, %s3031_s30 }
 0x8ec   :  { %v1284_v61 = vpop.permute.xlu0 %1283  ;;  %v1282_v0 = vpop.permute.xlu1 %1281 }
 0x8ee   :  { %1733 = vrot.lane.b32.xlu0 %v3676_v39, %s3031_s30  ;;  %1731 = vrot.lane.b32.xlu1 %v3678_v58, %s3031_s30 }
 0x8f0   :  { %v1288_v4 = vpop.permute.xlu0 %1287  ;;  %v1286_v6 = vpop.permute.xlu1 %1285 }
 0x8f1   :  { %v1302_v5 = vsel %vm368_vm4, %v1284_v61, %v1288_v4  ;;  %v1301_v11 = vsel %vm368_vm4, %v1282_v0, %v1286_v6 }
 0x8f2   :  { %v1332_v14 = vmul.f32 %v1314_v3, %v1302_v5  ;;  %1725 = vrot.lane.b32.xlu0 %v3648_v48, %s3031_s30  ;;  %v1328_v62 = vmul.f32 %v1314_v3, %v1301_v11  ;;  %1723 = vrot.lane.b32.xlu1 %v3650_v51, %s3031_s30  ;;  %v1384_v3 = vrot.slane %v2931_v40, %v3386_v38 }
 0x8f4   :  { %v1296_v1 = vpop.permute.xlu0 %1295  ;;  %v1294_v15 = vpop.permute.xlu1 %1293  ;;  %v1336_v8 = vpack.c.bf16 %v1332_v14, %v1328_v62 }
 0x8f5   :  { %v1304_v9 = vsel %vm368_vm4, %v1296_v1, %v1284_v61  ;;  %v1303_v2 = vsel %vm368_vm4, %v1294_v15, %v1282_v0  ;;  %v1380_v0 = vrot.slane %v2931_v40, %v3384_v37 }
 0x8f6   :  { %v1331_v12 = vmul.f32 %v1310_v13, %v1304_v9  ;;  %1737 = vrot.lane.b32.xlu0 %v3668_v55, %s3031_s30  ;;  %v1327_v16 = vmul.f32 %v1310_v13, %v1303_v2  ;;  %1735 = vrot.lane.b32.xlu1 %v3670_v57, %s3031_s30  ;;  %v2932_v2 = vld [vmem:[%s4491_s23 + $0x2] ss:$8 sm:$0xf] }
 0x8f7   :  { %1835 = vmatprep.subr.bf16.mxu0 %v1336_v8 }
 0x8f8   :  { %v1292_v18 = vpop.permute.xlu0 %1291  ;;  %v1335_v7 = vpack.c.bf16 %v1331_v12, %v1327_v16  ;;  %v1290_v25 = vpop.permute.xlu1 %1289 }
 0x8f9   :  { %v1298_v20 = vsel %vm368_vm4, %v1292_v18, %v1296_v1  ;;  %v1300_v24 = vsel %vm368_vm4, %v1288_v4, %v1292_v18  ;;  %v1297_v63 = vsel %vm368_vm4, %v1290_v25, %v1294_v15  ;;  %v1299_v31 = vsel %vm368_vm4, %v1286_v6, %v1290_v25 }
 0x8fa   :  { %v1333_v27 = vmul.f32 %v1318_v10, %v1300_v24  ;;  %v1334_v28 = vmul.f32 %v1322_v17, %v1298_v20  ;;  %v1329_v34 = vmul.f32 %v1318_v10, %v1299_v31  ;;  %v1330_v35 = vmul.f32 %v1322_v17, %v1297_v63  ;;  %1836 = vmatpush1.bf16.msra.mxu0 %v1335_v7 }
 0x8fb   :  { %v1438_v7 = vrot.slane %v2932_v2, %v3353_v22  ;;  %v1434_v63 = vrot.slane %v2932_v2, %v3367_v29 }
 0x8fc   :  { %v1346_v23 = vpop.permute.xlu0 %1345  ;;  %v1337_v43 = vpack.c.bf16 %v1333_v27, %v1329_v34  ;;  %v1344_v44 = vpop.permute.xlu1 %1343  ;;  %v1338_v45 = vpack.c.bf16 %v1334_v28, %v1330_v35 }
 0x8fe   :  { %1876 = vmatprep.subr.bf16.mxu1 %v1338_v45  ;;  %v1442_v45 = vrot.slane %v2932_v2, %v3384_v37 }
 0x8ff   :  { %1877 = vmatpush1.bf16.msra.mxu1 %v1337_v43 }
 0x900   :  { %v1350_v47 = vpop.permute.xlu0 %1349  ;;  %v1348_v52 = vpop.permute.xlu1 %1347 }
 0x901   :  { %v1364_v49 = vsel %vm431_vm5, %v1346_v23, %v1350_v47  ;;  %v1363_v36 = vsel %vm431_vm5, %v1344_v44, %v1348_v52 }
 0x902   :  { %v1394_v19 = vmul.f32 %v1376_v46, %v1364_v49  ;;  %v1390_v54 = vmul.f32 %v1376_v46, %v1363_v36  ;;  %v1446_v46 = vrot.slane %v2932_v2, %v3386_v38 }
 0x904   :  { %v1358_v42 = vpop.permute.xlu0 %1357  ;;  %v1356_v56 = vpop.permute.xlu1 %1355  ;;  %v1398_v59 = vpack.c.bf16 %v1394_v19, %v1390_v54 }
 0x905   :  { %v1366_v33 = vsel %vm431_vm5, %v1358_v42, %v1346_v23  ;;  %v1365_v61 = vsel %vm431_vm5, %v1356_v56, %v1344_v44 }
 0x906   :  { %v1393_v60 = vmul.f32 %v1372_v32, %v1366_v33  ;;  %v1389_v4 = vmul.f32 %v1372_v32, %v1365_v61  ;;  %1837 = vmatprep.subr.bf16.mxu0 %v1398_v59  ;;  %v2933_v61 = vld [vmem:[%s4491_s23 + $0x3] ss:$8 sm:$0xf] }
 0x908   :  { %v1354_v5 = vpop.permute.xlu0 %1353  ;;  %v1397_v6 = vpack.c.bf16 %v1393_v60, %v1389_v4  ;;  %v1352_v13 = vpop.permute.xlu1 %1351 }
 0x909   :  { %v1360_v14 = vsel %vm431_vm5, %v1354_v5, %v1358_v42  ;;  %v1362_v11 = vsel %vm431_vm5, %v1350_v47, %v1354_v5  ;;  %v1359_v9 = vsel %vm431_vm5, %v1352_v13, %v1356_v56  ;;  %v1361_v15 = vsel %vm431_vm5, %v1348_v52, %v1352_v13 }
 0x90a   :  { %v1395_v62 = vmul.f32 %v1380_v0, %v1362_v11  ;;  %v1396_v1 = vmul.f32 %v1384_v3, %v1360_v14  ;;  %v1391_v8 = vmul.f32 %v1380_v0, %v1361_v15  ;;  %v1392_v12 = vmul.f32 %v1384_v3, %v1359_v9  ;;  %1838 = vmatpush1.bf16.msra.mxu0 %v1397_v6 }
 0x90b   :  { %v1500_v6 = vrot.slane %v2933_v61, %v3353_v22 }
 0x90c   :  { %v1408_v10 = vpop.permute.xlu0 %1407  ;;  %v1399_v17 = vpack.c.bf16 %v1395_v62, %v1391_v8  ;;  %v1406_v16 = vpop.permute.xlu1 %1405  ;;  %v1400_v18 = vpack.c.bf16 %v1396_v1, %v1392_v12  ;;  %v1496_v1 = vrot.slane %v2933_v61, %v3367_v29 }
 0x90e   :  { %1878 = vmatprep.subr.bf16.mxu1 %v1400_v18  ;;  %v1508_v18 = vrot.slane %v2933_v61, %v3386_v38 }
 0x90f   :  { %1879 = vmatpush1.bf16.msra.mxu1 %v1399_v17 }
 0x910   :  { %v1412_v20 = vpop.permute.xlu0 %1411  ;;  %v1410_v25 = vpop.permute.xlu1 %1409 }
 0x911   :  { %v1426_v24 = vsel %vm495_vm6, %v1408_v10, %v1412_v20  ;;  %v1425_v28 = vsel %vm495_vm6, %v1406_v16, %v1410_v25 }
 0x912   :  { %v1456_v27 = vmul.f32 %v1438_v7, %v1426_v24  ;;  %v1452_v31 = vmul.f32 %v1438_v7, %v1425_v28 }
 0x914   :  { %v1420_v34 = vpop.permute.xlu0 %1419  ;;  %v1418_v40 = vpop.permute.xlu1 %1417  ;;  %v1460_v23 = vpack.c.bf16 %v1456_v27, %v1452_v31 }
 0x915   :  { %v1428_v35 = vsel %vm495_vm6, %v1420_v34, %v1408_v10  ;;  %v1427_v44 = vsel %vm495_vm6, %v1418_v40, %v1406_v16  ;;  %v1504_v16 = vrot.slane %v2933_v61, %v3384_v37 }
 0x916   :  { %v1455_v43 = vmul.f32 %v1434_v63, %v1428_v35  ;;  %v1451_v47 = vmul.f32 %v1434_v63, %v1427_v44  ;;  %1839 = vmatprep.subr.bf16.mxu0 %v1460_v23  ;;  %v1530_v63 = vpack.c.bf16 %v3658_v41, %v3660_v53  ;;  %v2934_v44 = vld [vmem:[%s4491_s23 + $0x5] ss:$8 sm:$0xf]  ;;  %v1529_v41 = vpack.c.bf16 %v3648_v48, %v3650_v51 }
 0x917   :  { %v1531_v48 = vpack.c.bf16 %v3676_v39, %v3678_v58  ;;  %v1566_v51 = vrot.slane %v2934_v44, %v3367_v29 }
 0x918   :  { %v1416_v49 = vpop.permute.xlu0 %1415  ;;  %v1459_v52 = vpack.c.bf16 %v1455_v43, %v1451_v47  ;;  %v1414_v32 = vpop.permute.xlu1 %1413 }
 0x919   :  { %v1422_v19 = vsel %vm495_vm6, %v1416_v49, %v1420_v34  ;;  %v1424_v36 = vsel %vm495_vm6, %v1412_v20, %v1416_v49  ;;  %v1421_v33 = vsel %vm495_vm6, %v1414_v32, %v1418_v40  ;;  %v1423_v56 = vsel %vm495_vm6, %v1410_v25, %v1414_v32 }
 0x91a   :  { %v1457_v54 = vmul.f32 %v1442_v45, %v1424_v36  ;;  %v1458_v42 = vmul.f32 %v1446_v46, %v1422_v19  ;;  %v1453_v59 = vmul.f32 %v1442_v45, %v1423_v56  ;;  %v1454_v60 = vmul.f32 %v1446_v46, %v1421_v33  ;;  %1932 = vadd.xlane.f32.xlu1 %v3588_v50 }
 0x91b   :  { %1840 = vmatpush1.bf16.msra.mxu0 %v1459_v52  ;;  %v1570_v49 = vrot.slane %v2934_v44, %v3353_v22  ;;  %v1532_v52 = vpack.c.bf16 %v3668_v55, %v3670_v57 }
 0x91c   :  { %v1470_v0 = vpop.permute.xlu0 %1469  ;;  %v1461_v3 = vpack.c.bf16 %v1457_v54, %v1453_v59  ;;  %v1468_v4 = vpop.permute.xlu1 %1467  ;;  %v1462_v5 = vpack.c.bf16 %v1458_v42, %v1454_v60 }
 0x91e   :  { %1880 = vmatprep.subr.bf16.mxu1 %v1462_v5 }
 0x91f   :  { %1881 = vmatpush1.bf16.msra.mxu1 %v1461_v3  ;;  %v1578_v3 = vrot.slane %v2934_v44, %v3386_v38 }
 0x920   :  { %v1474_v14 = vpop.permute.xlu0 %1473  ;;  %v1472_v13 = vpop.permute.xlu1 %1471 }
 0x921   :  { %v1488_v11 = vsel %vm559_vm7, %v1470_v0, %v1474_v14  ;;  %v1487_v50 = vsel %vm559_vm7, %v1468_v4, %v1472_v13 }
 0x922   :  { %v1518_v62 = vmul.f32 %v1500_v6, %v1488_v11  ;;  %v1514_v9 = vmul.f32 %v1500_v6, %v1487_v50 }
 0x924   :  { %v1482_v15 = vpop.permute.xlu0 %1481  ;;  %v1480_v12 = vpop.permute.xlu1 %1479  ;;  %v1522_v2 = vpack.c.bf16 %v1518_v62, %v1514_v9 }
 0x925   :  { %v1490_v8 = vsel %vm559_vm7, %v1482_v15, %v1470_v0  ;;  %v1489_v17 = vsel %vm559_vm7, %v1480_v12, %v1468_v4  ;;  %v1574_v0 = vrot.slane %v2934_v44, %v3384_v37 }
 0x926   :  { %v1517_v10 = vmul.f32 %v1496_v1, %v1490_v8  ;;  %v1513_v7 = vmul.f32 %v1496_v1, %v1489_v17  ;;  %1841 = vmatprep.subr.bf16.mxu0 %v1522_v2 }
 0x928   :  { %v1478_v20 = vpop.permute.xlu0 %1477  ;;  %v1521_v24 = vpack.c.bf16 %v1517_v10, %v1513_v7  ;;  %v1476_v28 = vpop.permute.xlu1 %1475 }
 0x929   :  { %v1484_v25 = vsel %vm559_vm7, %v1478_v20, %v1482_v15  ;;  %v1486_v27 = vsel %vm559_vm7, %v1474_v14, %v1478_v20  ;;  %v1483_v35 = vsel %vm559_vm7, %v1476_v28, %v1480_v12  ;;  %v1485_v40 = vsel %vm559_vm7, %v1472_v13, %v1476_v28  ;;  %v2935_v15 = vld [vmem:[%s4491_s23 + $0x6] ss:$8 sm:$0xf] }
 0x92a   :  { %v1519_v31 = vmul.f32 %v1504_v16, %v1486_v27  ;;  %v1520_v34 = vmul.f32 %v1508_v18, %v1484_v25  ;;  %v1515_v23 = vmul.f32 %v1504_v16, %v1485_v40  ;;  %v1516_v43 = vmul.f32 %v1508_v18, %v1483_v35  ;;  %1842 = vmatpush1.bf16.msra.mxu0 %v1521_v24 }
 0x92b   :  { %1843 = vmatprep.subr.bf16.mxu0 %v1530_v63  ;;  %v1632_v17 = vrot.slane %v2935_v15, %v3353_v22  ;;  %v1628_v25 = vrot.slane %v2935_v15, %v3367_v29 }
 0x92c   :  { %v1544_v45 = vpop.permute.xlu0 %1543  ;;  %v1523_v46 = vpack.c.bf16 %v1519_v31, %v1515_v23  ;;  %v1542_v47 = vpop.permute.xlu1 %1541  ;;  %v1524_v53 = vpack.c.bf16 %v1520_v34, %v1516_v43  ;;  %v1636_v23 = vrot.slane %v2935_v15, %v3384_v37  ;;  %v1640_v43 = vrot.slane %v2935_v15, %v3386_v38 }
 0x92e   :  { %1844 = vmatpush1.bf16.msra.mxu0 %v1529_v41  ;;  %1882 = vmatprep.subr.bf16.mxu1 %v1524_v53 }
 0x92f   :  { %1883 = vmatpush1.bf16.msra.mxu1 %v1523_v46 }
 0x930   :  { %v1548_v19 = vpop.permute.xlu0 %1547  ;;  %1884 = vmatprep.subr.bf16.mxu1 %v1532_v52  ;;  %v1546_v32 = vpop.permute.xlu1 %1545 }
 0x931   :  { %v1556_v36 = vsel %vm631_vm8, %v1544_v45, %v1548_v19  ;;  %v1555_v42 = vsel %vm631_vm8, %v1542_v47, %v1546_v32 }
 0x932   :  { %v1588_v54 = vmul.f32 %v1570_v49, %v1556_v36  ;;  %v1584_v33 = vmul.f32 %v1570_v49, %v1555_v42  ;;  %v2936_v42 = vld [vmem:[%s4491_s23 + $0x7] ss:$8 sm:$0xf] }
 0x933   :  { %1885 = vmatpush1.bf16.msra.mxu1 %v1531_v48 }
 0x934   :  { %v1540_v56 = vpop.permute.xlu0 %1539  ;;  %v1538_v57 = vpop.permute.xlu1 %1537  ;;  %v1592_v59 = vpack.c.bf16 %v1588_v54, %v1584_v33 }
 0x935   :  { %v1558_v55 = vsel %vm631_vm8, %v1540_v56, %v1544_v45  ;;  %v1557_v61 = vsel %vm631_vm8, %v1538_v57, %v1542_v47 }
 0x936   :  { %v1587_v60 = vmul.f32 %v1566_v51, %v1558_v55  ;;  %v1583_v4 = vmul.f32 %v1566_v51, %v1557_v61  ;;  %1845 = vmatprep.subr.bf16.mxu0 %v1592_v59  ;;  %v1694_v55 = vrot.slane %v2936_v42, %v3353_v22 }
 0x938   :  { %v1552_v39 = vpop.permute.xlu0 %1551  ;;  %v1591_v58 = vpack.c.bf16 %v1587_v60, %v1583_v4  ;;  %v1550_v14 = vpop.permute.xlu1 %1549 }
 0x939   :  { %v1554_v5 = vsel %vm631_vm8, %v1548_v19, %v1552_v39  ;;  %v1560_v6 = vsel %vm631_vm8, %v1552_v39, %v1540_v56  ;;  %v1553_v62 = vsel %vm631_vm8, %v1546_v32, %v1550_v14  ;;  %v1559_v50 = vsel %vm631_vm8, %v1550_v14, %v1538_v57 }
 0x93a   :  { %v1589_v11 = vmul.f32 %v1574_v0, %v1554_v5  ;;  %v1590_v13 = vmul.f32 %v1578_v3, %v1560_v6  ;;  %v1585_v1 = vmul.f32 %v1574_v0, %v1553_v62  ;;  %v1586_v9 = vmul.f32 %v1578_v3, %v1559_v50  ;;  %1846 = vmatpush1.bf16.msra.mxu0 %v1591_v58 }
 0x93b   :  { %v1690_v3 = vrot.slane %v2936_v42, %v3367_v29  ;;  %v1702_v62 = vrot.slane %v2936_v42, %v3386_v38 }
 0x93c   :  { %v1606_v8 = vpop.permute.xlu0 %1605  ;;  %v1593_v12 = vpack.c.bf16 %v1589_v11, %v1585_v1  ;;  %v1604_v2 = vpop.permute.xlu1 %1603  ;;  %v1594_v10 = vpack.c.bf16 %v1590_v13, %v1586_v9  ;;  %v1698_v13 = vrot.slane %v2936_v42, %v3384_v37 }
 0x93e   :  { %1886 = vmatprep.subr.bf16.mxu1 %v1594_v10 }
 0x93f   :  { %1887 = vmatpush1.bf16.msra.mxu1 %v1593_v12 }
 0x940   :  { %v1610_v16 = vpop.permute.xlu0 %1609  ;;  %v1608_v7 = vpop.permute.xlu1 %1607 }
 0x941   :  { %v1618_v18 = vsel %vm695_vm9, %v1606_v8, %v1610_v16  ;;  %v1617_v24 = vsel %vm695_vm9, %v1604_v2, %v1608_v7 }
 0x942   :  { %v1650_v20 = vmul.f32 %v1632_v17, %v1618_v18  ;;  %v1646_v27 = vmul.f32 %v1632_v17, %v1617_v24 }
 0x944   :  { %v1602_v28 = vpop.permute.xlu0 %1601  ;;  %v1600_v31 = vpop.permute.xlu1 %1599  ;;  %v1654_v34 = vpack.c.bf16 %v1650_v20, %v1646_v27  ;;  %v2937_v20 = vld [vmem:[%s4491_s23 + $0x20] ss:$8 sm:$0xf] }
 0x945   :  { %v1620_v63 = vsel %vm695_vm9, %v1602_v28, %v1606_v8  ;;  %v1619_v40 = vsel %vm695_vm9, %v1600_v31, %v1604_v2 }
 0x946   :  { %v1649_v35 = vmul.f32 %v1628_v25, %v1620_v63  ;;  %v1645_v44 = vmul.f32 %v1628_v25, %v1619_v40  ;;  %1847 = vmatprep.subr.bf16.mxu0 %v1654_v34  ;;  %v1756_v63 = vrot.slane %v2937_v20, %v3353_v22 }
 0x948   :  { %v1614_v45 = vpop.permute.xlu0 %1613  ;;  %v1653_v46 = vpack.c.bf16 %v1649_v35, %v1645_v44  ;;  %v1612_v53 = vpop.permute.xlu1 %1611 }
 0x949   :  { %v1616_v47 = vsel %vm695_vm9, %v1610_v16, %v1614_v45  ;;  %v1622_v41 = vsel %vm695_vm9, %v1614_v45, %v1602_v28  ;;  %v1615_v19 = vsel %vm695_vm9, %v1608_v7, %v1612_v53  ;;  %v1621_v36 = vsel %vm695_vm9, %v1612_v53, %v1600_v31 }
 0x94a   :  { %v1651_v49 = vmul.f32 %v1636_v23, %v1616_v47  ;;  %v1652_v52 = vmul.f32 %v1640_v43, %v1622_v41  ;;  %v1647_v32 = vmul.f32 %v1636_v23, %v1615_v19  ;;  %v1648_v54 = vmul.f32 %v1640_v43, %v1621_v36  ;;  %1848 = vmatpush1.bf16.msra.mxu0 %v1653_v46 }
 0x94b   :  { %v1752_v43 = vrot.slane %v2937_v20, %v3367_v29  ;;  %v1764_v19 = vrot.slane %v2937_v20, %v3386_v38 }
 0x94c   :  { %v1668_v48 = vpop.permute.xlu0 %1667  ;;  %v1655_v51 = vpack.c.bf16 %v1651_v49, %v1647_v32  ;;  %v1666_v33 = vpop.permute.xlu1 %1665  ;;  %v1656_v56 = vpack.c.bf16 %v1652_v52, %v1648_v54  ;;  %v1760_v52 = vrot.slane %v2937_v20, %v3384_v37 }
 0x94e   :  { %1888 = vmatprep.subr.bf16.mxu1 %v1656_v56 }
 0x94f   :  { %1889 = vmatpush1.bf16.msra.mxu1 %v1655_v51 }
 0x950   :  { %v1672_v57 = vpop.permute.xlu0 %1671  ;;  %v1670_v60 = vpop.permute.xlu1 %1669 }
 0x951   :  { %v1680_v59 = vsel %vm759_vm10, %v1668_v48, %v1672_v57  ;;  %v1679_v0 = vsel %vm759_vm10, %v1666_v33, %v1670_v60 }
 0x952   :  { %v1712_v61 = vmul.f32 %v1694_v55, %v1680_v59  ;;  %v1708_v4 = vmul.f32 %v1694_v55, %v1679_v0 }
 0x954   :  { %v1664_v39 = vpop.permute.xlu0 %1663  ;;  %v1662_v5 = vpop.permute.xlu1 %1661  ;;  %v1716_v6 = vpack.c.bf16 %v1712_v61, %v1708_v4 }
 0x955   :  { %v1682_v58 = vsel %vm759_vm10, %v1664_v39, %v1668_v48  ;;  %v1681_v11 = vsel %vm759_vm10, %v1662_v5, %v1666_v33 }
 0x956   :  { %v1711_v14 = vmul.f32 %v1690_v3, %v1682_v58  ;;  %v1707_v50 = vmul.f32 %v1690_v3, %v1681_v11  ;;  %1849 = vmatprep.subr.bf16.mxu0 %v1716_v6 }
 0x958   :  { %v1676_v1 = vpop.permute.xlu0 %1675  ;;  %v1715_v9 = vpack.c.bf16 %v1711_v14, %v1707_v50  ;;  %v1674_v12 = vpop.permute.xlu1 %1673  ;;  %v4010_v50 = vld [vmem:[#allocation3] sm:$0xff] }
 0x959   :  { %v1678_v15 = vsel %vm759_vm10, %v1672_v57, %v1676_v1  ;;  %v1684_v8 = vsel %vm759_vm10, %v1676_v1, %v1664_v39  ;;  %v1677_v17 = vsel %vm759_vm10, %v1670_v60, %v1674_v12  ;;  %v1683_v16 = vsel %vm759_vm10, %v1674_v12, %v1662_v5 }
 0x95a   :  { %v1713_v2 = vmul.f32 %v1698_v13, %v1678_v15  ;;  %v1714_v10 = vmul.f32 %v1702_v62, %v1684_v8  ;;  %v1709_v18 = vmul.f32 %v1698_v13, %v1677_v17  ;;  %v1710_v7 = vmul.f32 %v1702_v62, %v1683_v16  ;;  %1850 = vmatpush1.bf16.msra.mxu0 %v1715_v9  ;;  %v4014_v9 = vld [vmem:[#allocation3 + $0x8] sm:$0xff] }
 0x95b   :  { %v1945_v1 = vmul.f32 %v4010_v50, %v4010_v50  ;;  %v1946_v15 = vmul.f32 %v4014_v9, %v4014_v9 }
 0x95c   :  { %v1730_v24 = vpop.permute.xlu0 %1729  ;;  %v1717_v25 = vpack.c.bf16 %v1713_v2, %v1709_v18  ;;  %v1728_v27 = vpop.permute.xlu1 %1727  ;;  %v1718_v28 = vpack.c.bf16 %v1714_v10, %v1710_v7  ;;  %v4024_v7 = vld [vmem:[#allocation3 + $0x10] sm:$0xff] }
 0x95d   :  { %v1947_v20 = vmul.f32 %v4024_v7, %v4024_v7 }
 0x95e   :  { %1890 = vmatprep.subr.bf16.mxu1 %v1718_v28 }
 0x95f   :  { %1891 = vmatpush1.bf16.msra.mxu1 %v1717_v25 }
 0x960   :  { %v1734_v31 = vpop.permute.xlu0 %1733  ;;  %v1732_v35 = vpop.permute.xlu1 %1731 }
 0x961   :  { %v1742_v34 = vsel %vm823_vm11, %v1730_v24, %v1734_v31  ;;  %v1741_v23 = vsel %vm823_vm11, %v1728_v27, %v1732_v35 }
 0x962   :  { %v1774_v40 = vmul.f32 %v1756_v63, %v1742_v34  ;;  %v1770_v44 = vmul.f32 %v1756_v63, %v1741_v23 }
 0x964   :  { %v1726_v45 = vpop.permute.xlu0 %1725  ;;  %v1724_v47 = vpop.permute.xlu1 %1723  ;;  %v1778_v41 = vpack.c.bf16 %v1774_v40, %v1770_v44  ;;  %v2998_v40 = vld [vmem:[#allocation3 + $0x18] sm:$0xff] }
 0x965   :  { %v1744_v46 = vsel %vm823_vm11, %v1726_v45, %v1730_v24  ;;  %v1743_v49 = vsel %vm823_vm11, %v1724_v47, %v1728_v27  ;;  %v1953_v24 = vadd.f32 %v1946_v15, %v1945_v1  ;;  %v1948_v23 = vmul.f32 %v2998_v40, %v2998_v40 }
 0x966   :  { %v1773_v53 = vmul.f32 %v1752_v43, %v1744_v46  ;;  %v1769_v36 = vmul.f32 %v1752_v43, %v1743_v49  ;;  %1851 = vmatprep.subr.bf16.mxu0 %v1778_v41 }
 0x967   :  { %v1954_v46 = vadd.f32 %v1953_v24, %v1947_v20 }
 0x968   :  { %v1738_v32 = vpop.permute.xlu0 %1737  ;;  %v1777_v54 = vpack.c.bf16 %v1773_v53, %v1769_v36  ;;  %v1736_v51 = vpop.permute.xlu1 %1735 }
 0x969   :  { %v1740_v42 = vsel %vm823_vm11, %v1734_v31, %v1738_v32  ;;  %v1746_v48 = vsel %vm823_vm11, %v1738_v32, %v1726_v45  ;;  %v1739_v55 = vsel %vm823_vm11, %v1732_v35, %v1736_v51  ;;  %v1745_v57 = vsel %vm823_vm11, %v1736_v51, %v1724_v47 }
 0x96a   :  { %v1775_v33 = vmul.f32 %v1760_v52, %v1740_v42  ;;  %v1776_v56 = vmul.f32 %v1764_v19, %v1746_v48  ;;  %v1771_v59 = vmul.f32 %v1760_v52, %v1739_v55  ;;  %v1772_v60 = vmul.f32 %v1764_v19, %v1745_v57  ;;  %1852 = vmatpush1.bf16.msra.mxu0 %v1777_v54 }
 0x96b   :  { %v1955_v41 = vadd.f32 %v1954_v46, %v1948_v23 }
 0x96c   :  { %v1779_v61 = vpack.c.bf16 %v1775_v33, %v1771_v59  ;;  %v1780_v0 = vpack.c.bf16 %v1776_v56, %v1772_v60 }
 0x96d   :  { %1868 = vmatmul.mubr.bf16.vlgmr.msra.gmra.mrb[12].mxu0 %v3785_v30 }
 0x96e   :  { %1892 = vmatprep.subr.bf16.mxu1 %v1780_v0  ;;  %2093 = vmatprep.mubr.bf16.mxu0 %v3023_v26 }
 0x96f   :  { %1893 = vmatpush1.bf16.msra.mxu1 %v1779_v61  ;;  %v1976_v61 = vld [vmem:[%s4473_s14 + $0x8] sm:$0xf] }
 0x972   :  { %1909 = vmatmul.mubr.bf16.vlgmr.msra.gmra.mrb[12].mxu1 %v3785_v30 }
 0x973   :  { %2136 = vmatprep.mubr.bf16.mxu1 %v3023_v26 }
 0x9a7   :  { %v1933_v53 = vpop.xlane.xlu1 %1932 }
 0x9a8   :  { %v1943_v52 = vmul.f32 0.001953125, %v1933_v53 }
 0x9aa   :  { %v1969_v48 = vmul.f32 %v1943_v52, %v1943_v52 }
 0xa40   :  { %v1869_v3 = vpop.f32.mrb[12].mxu0 }
 0xa41   :  { %1917 = vst [vmem:[#allocation3 + $0x20] sm:$0xf] %v1869_v3  ;;  %v1871_v4 = vpop.f32.mrb[13].mxu0  ;;  %v1975_v3 = vld [vmem:[%s4473_s14] sm:$0xff] }
 0xa42   :  { %1918 = vst [vmem:[#allocation3 + $0x28] sm:$0xf] %v1871_v4  ;;  %v1873_v39 = vpop.f32.mrb[14].mxu0 }
 0xa43   :  { %v1874_v58 = vpop.f32.mrb[15].mxu0 }
 0xa45   :  { %v1910_v5 = vpop.f32.mrb[12].mxu1 }
 0xa46   :  { %1919 = vst [vmem:[#allocation3 + $0x30] sm:$0xf] %v1910_v5  ;;  %v1912_v6 = vpop.f32.mrb[13].mxu1 }
 0xa47   :  { %1920 = vst [vmem:[#allocation3 + $0x38] sm:$0xf] %v1912_v6  ;;  %v1914_v14 = vpop.f32.mrb[14].mxu1  ;;  %v1984_v6 = vld [vmem:[%s4474_s15 + $0x8] sm:$0xf] }
 0xa48   :  { %v1915_v11 = vpop.f32.mrb[15].mxu1  ;;  %v4002_v13 = vld [vmem:[#allocation3 + $0x20] sm:$0xf] }
 0xa49   :  { %v4004_v62 = vld [vmem:[#allocation3 + $0x28] sm:$0xf]  ;;  %v1934_v30 = vsel %vm83_vm0, %v4002_v13, 0.0  ;;  %v1949_v26 = vmul.f32 %v4002_v13, %v4002_v13  ;;  %v1983_v14 = vld [vmem:[%s4474_s15] sm:$0xff] }
 0xa4a   :  { %v1935_v8 = vsel %vm83_vm0, %v4004_v62, 0.0  ;;  %v1950_v12 = vmul.f32 %v4004_v62, %v4004_v62 }
 0xa4b   :  { %v1936_v2 = vadd.f32 %v1935_v8, %v1934_v30  ;;  %v1958_v10 = vsel %vm83_vm0, %v1949_v26, 0.0 }
 0xa4c   :  { %v1959_v17 = vsel %vm83_vm0, %v1950_v12, 0.0 }
 0xa4d   :  { %v1927_v16 = vld [vmem:[#allocation3 + $0x30] sm:$0xf]  ;;  %v1960_v18 = vadd.f32 %v1959_v17, %v1958_v10 }
 0xa4e   :  { %v1928_v25 = vld [vmem:[#allocation3 + $0x38] sm:$0xf]  ;;  %v1937_v27 = vsel %vm83_vm0, %v1927_v16, 0.0  ;;  %v1951_v28 = vmul.f32 %v1927_v16, %v1927_v16 }
 0xa4f   :  { %v1938_v63 = vadd.f32 %v1937_v27, %v1936_v2  ;;  %v1939_v31 = vsel %vm83_vm0, %v1928_v25, 0.0  ;;  %v1952_v34 = vmul.f32 %v1928_v25, %v1928_v25 }
 0xa50   :  { %v1961_v35 = vsel %vm83_vm0, %v1951_v28, 0.0 }
 0xa51   :  { %v1940_v43 = vadd.f32 %v1939_v31, %v1938_v63  ;;  %v1962_v44 = vadd.f32 %v1961_v35, %v1960_v18  ;;  %v1963_v45 = vsel %vm83_vm0, %v1952_v34, 0.0 }
 0xa53   :  { %1941 = vadd.xlane.f32.xlu0 %v1940_v43  ;;  %v1964_v47 = vadd.f32 %v1963_v45, %v1962_v44 }
 0xa55   :  { %1965 = vadd.xlane.f32.xlu1 %v1964_v47 }
 0xa57   :  { %1956 = vadd.xlane.f32.xlu0 %v1955_v41 }
 0xae0   :  { %v1942_v49 = vpop.xlane.xlu0 %1941 }
 0xae1   :  { %v1944_v19 = vmul.f32 0.001953125, %v1942_v49 }
 0xae2   :  { %v1966_v36 = vpop.xlane.xlu1 %1965 }
 0xae3   :  { %v1970_v32 = vmul.f32 %v1944_v19, %v1944_v19  ;;  %v1968_v54 = vmul.f32 0.001953125, %v1966_v36 }
 0xae4   :  { %v1957_v42 = vpop.xlane.xlu0 %1956 }
 0xae5   :  { %v1972_v51 = vsub.f32 %v1968_v54, %v1970_v32  ;;  %v1967_v33 = vmul.f32 0.001953125, %v1957_v42 }
 0xae7   :  { %v1974_v56 = vmax.f32 %v1972_v51, 0.0  ;;  %v1971_v55 = vsub.f32 %v1967_v33, %v1969_v48 }
 0xae9   :  { %v1978_v57 = vadd.f32 1e-05, %v1974_v56  ;;  %v1973_v59 = vmax.f32 %v1971_v55, 0.0 }
 0xaeb   :  { %2987 = vrsqrt.f32 %v1978_v57  ;;  %v1977_v60 = vadd.f32 1e-05, %v1973_v59 }
 0xaed   :  { %2989 = vrsqrt.f32 %v1977_v60 }
 0xaf5   :  { %v2988_v0 = vpop.eup %2987 }
 0xaf6   :  { %v1982_v4 = vmul.f32 %v2988_v0, %v1976_v61 }
 0xaf7   :  { %v2990_v39 = vpop.eup %2989 }
 0xaf8   :  { %1996 = vperm.xlu1 %2968, %v1982_v4   ;;  %v1981_v58 = vmul.f32 %v2990_v39, %v1975_v3  ;;  %v1986_v5 = vmul.f32 %v1982_v4, %v1944_v19  ;;  %v2974_v19 = vld [vmem:[%s4475_s16] sm:$0xff]  }
 0xafa   :  { %1991 = vperm.xlu0 %2969, %v1981_v58   ;;  %v1985_v11 = vmul.f32 %v1981_v58, %v1943_v52  ;;  %v1988_v30 = vsub.f32 %v1984_v6, %v1986_v5 }
 0xafc   :  { %v1987_v26 = vsub.f32 %v1983_v14, %v1985_v11 }
 0xafe   :  { %2014 = vperm.xlu0 %2969, %v1988_v30   ;;  %2009 = vperm.xlu1 %2968, %v1987_v26  }
 0xb77   :  { %v1997_v1 = vpop.permute.xlu1 %1996 }
 0xb78   :  { %v2003_v8 = vmul.f32 %v1997_v1, %v4002_v13  ;;  %v2004_v12 = vmul.f32 %v1997_v1, %v4004_v62  ;;  %v2005_v2 = vmul.f32 %v1997_v1, %v1927_v16  ;;  %v2006_v10 = vmul.f32 %v1997_v1, %v1928_v25 }
 0xb79   :  { %v1992_v15 = vpop.permute.xlu0 %1991 }
 0xb7a   :  { %v1999_v17 = vmul.f32 %v4010_v50, %v1992_v15  ;;  %v2000_v18 = vmul.f32 %v4014_v9, %v1992_v15  ;;  %v2001_v20 = vmul.f32 %v4024_v7, %v1992_v15  ;;  %v2002_v24 = vmul.f32 %v2998_v40, %v1992_v15 }
 0xb7d   :  { %v2015_v27 = vpop.permute.xlu0 %2014  ;;  %v2010_v28 = vpop.permute.xlu1 %2009 }
 0xb7e   :  { %v2021_v63 = vadd.f32 %v2015_v27, %v2003_v8  ;;  %v2022_v31 = vadd.f32 %v2015_v27, %v2004_v12  ;;  %v2023_v34 = vadd.f32 %v2015_v27, %v2005_v2  ;;  %v2024_v35 = vadd.f32 %v2015_v27, %v2006_v10 }
 0xb7f   :  { %v2017_v23 = vadd.f32 %v2010_v28, %v1999_v17  ;;  %v2018_v43 = vadd.f32 %v2010_v28, %v2000_v18  ;;  %v2019_v13 = vadd.f32 %v2010_v28, %v2001_v20  ;;  %v2020_v44 = vadd.f32 %v2010_v28, %v2002_v24 }
 0xb80   :  { %v2029_v62 = vmax.f32 %v2021_v63, 0.0  ;;  %v2030_v16 = vmax.f32 %v2022_v31, 0.0  ;;  %v2031_v25 = vmax.f32 %v2023_v34, 0.0  ;;  %v2032_v45 = vmax.f32 %v2024_v35, 0.0 }
 0xb81   :  { %v2025_v50 = vmax.f32 %v2017_v23, 0.0  ;;  %v2026_v46 = vmax.f32 %v2018_v43, 0.0  ;;  %v2027_v9 = vmax.f32 %v2019_v13, 0.0  ;;  %v2028_v47 = vmax.f32 %v2020_v44, 0.0 }
 0xb83   :  { %v2036_v7 = vpack.c.bf16 %v2030_v16, %v2026_v46  ;;  %v2038_v40 = vpack.c.bf16 %v2032_v45, %v2028_v47  ;;  %v2035_v41 = vpack.c.bf16 %v2029_v62, %v2025_v50  ;;  %v2037_v53 = vpack.c.bf16 %v2031_v25, %v2027_v9  ;;  %v2186_v62 = vld [vmem:[%s4476_s17 + $0x8] sm:$0xff]  ;;  %v2185_v25 = vld [vmem:[%s4476_s17] sm:$0xff] }
 0xb84   :  { %v2194_v47 = vld [vmem:[%s4477_s18 + $0x8] sm:$0xff] }
 0xb85   :  { %2942 = vmatprep.subr.msk.bf16.mxu0 %vm2048_vm13, %v2036_v7  ;;  %2944 = vmatprep.subr.msk.bf16.mxu1 %vm2048_vm13, %v2038_v40  ;;  %v2050_v49 = vsel %vm2048_vm13, %v2035_v41, 0  ;;  %v2056_v52 = vsel %vm2048_vm13, %v2037_v53, 0  ;;  %v2193_v7 = vld [vmem:[%s4477_s18] sm:$0xff] }
 0xb86   :  { %2062 = vmatpush1.bf16.msra.mxu0 %v2050_v49  ;;  %2105 = vmatpush1.bf16.msra.mxu1 %v2056_v52 }
 0xb89   :  { %2943 = vmatmul.mubr.msk.bf16.vlgmr.msra.gmra.mrb[16].mxu0 %vm2044_vm14, %v2974_v19  ;;  %2945 = vmatmul.mubr.msk.bf16.vlgmr.msra.gmra.mrb[16].mxu1 %vm2044_vm14, %v2974_v19 }
 0xc5c   :  { %v4052_v36 = vpop.f32.mrb[16].mxu0  ;;  %v4054_v32 = vpop.f32.mrb[16].mxu1 }
 0xc5d   :  { %v2159_v54 = vmul.f32 %v4052_v36, %v4052_v36  ;;  %v4058_v42 = vpop.f32.mrb[17].mxu0  ;;  %v4060_v48 = vpop.f32.mrb[17].mxu1  ;;  %v2161_v55 = vmul.f32 %v4054_v32, %v4054_v32 }
 0xc5e   :  { %v2147_v51 = vadd.f32 %v4058_v42, %v4052_v36  ;;  %v2160_v33 = vmul.f32 %v4058_v42, %v4058_v42  ;;  %v2099_v56 = vpop.f32.mrb[18].mxu0  ;;  %v4068_v57 = vpop.f32.mrb[18].mxu1  ;;  %v2162_v58 = vmul.f32 %v4060_v48, %v4060_v48 }
 0xc5f   :  { %v2163_v59 = vmul.f32 %v2099_v56, %v2099_v56  ;;  %v2101_v60 = vpop.f32.mrb[19].mxu0  ;;  %v4070_v61 = vpop.f32.mrb[19].mxu1  ;;  %v2165_v5 = vmul.f32 %v4068_v57, %v4068_v57 }
 0xc60   :  { %v2167_v0 = vadd.f32 %v2160_v33, %v2159_v54  ;;  %v2152_v3 = vadd.f32 %v2101_v60, %v2099_v56  ;;  %v2164_v4 = vmul.f32 %v2101_v60, %v2101_v60  ;;  %v2148_v39 = vadd.f32 %v2147_v51, %v4054_v32 }
 0xc61   :  { %v2166_v15 = vmul.f32 %v4070_v61, %v4070_v61 }
 0xc62   :  { %v2172_v6 = vadd.f32 %v2164_v4, %v2163_v59  ;;  %v2168_v14 = vadd.f32 %v2167_v0, %v2161_v55  ;;  %v2149_v11 = vadd.f32 %v2148_v39, %v4060_v48  ;;  %v2153_v30 = vadd.f32 %v2152_v3, %v4068_v57 }
 0xc64   :  { %v2173_v26 = vadd.f32 %v2172_v6, %v2165_v5  ;;  %v2154_v1 = vadd.f32 %v2153_v30, %v4070_v61  ;;  %2150 = vadd.xlane.f32.xlu1 %v2149_v11  ;;  %v2169_v8 = vadd.f32 %v2168_v14, %v2162_v58 }
 0xc66   :  { %2155 = vadd.xlane.f32.xlu0 %v2154_v1  ;;  %v2174_v12 = vadd.f32 %v2173_v26, %v2166_v15 }
 0xc68   :  { %2175 = vadd.xlane.f32.xlu1 %v2174_v12  ;;  %v4238_v12 = vld.sshfl [vmem:[%s4478_s19] sm:$0x33 pattern:$0x76325410] }
 0xc6a   :  { %2170 = vadd.xlane.f32.xlu0 %v2169_v8 }
 0xcf1   :  { %v2151_v2 = vpop.xlane.xlu1 %2150 }
 0xcf2   :  { %v2157_v17 = vmul.f32 0.001953125, %v2151_v2 }
 0xcf3   :  { %v2156_v10 = vpop.xlane.xlu0 %2155 }
 0xcf4   :  { %v2158_v18 = vmul.f32 0.001953125, %v2156_v10  ;;  %v2179_v63 = vmul.f32 %v2157_v17, %v2157_v17  ;;  %v2792_v10 = vcombine.high %v4238_v12, %v4238_v12 }
 0xcf5   :  { %v2176_v20 = vpop.xlane.xlu1 %2175 }
 0xcf6   :  { %v2180_v24 = vmul.f32 %v2158_v18, %v2158_v18  ;;  %v2178_v27 = vmul.f32 0.001953125, %v2176_v20  ;;  %2954 = vmatprep.mubr.msk.bf16.mxu0 %vm918_vm3, %v2792_v10  ;;  %2955 = vmatprep.mubr.msk.bf16.mxu1 %vm918_vm3, %v2792_v10 }
 0xcf7   :  { %v2171_v28 = vpop.xlane.xlu0 %2170 }
 0xcf8   :  { %v2182_v31 = vsub.f32 %v2178_v27, %v2180_v24  ;;  %v2177_v34 = vmul.f32 0.001953125, %v2171_v28 }
 0xcfa   :  { %v2184_v35 = vmax.f32 %v2182_v31, 0.0  ;;  %v2181_v23 = vsub.f32 %v2177_v34, %v2179_v63 }
 0xcfc   :  { %v2188_v43 = vadd.f32 1e-05, %v2184_v35  ;;  %v2183_v13 = vmax.f32 %v2181_v23, 0.0 }
 0xcfe   :  { %2991 = vrsqrt.f32 %v2188_v43  ;;  %v2187_v44 = vadd.f32 1e-05, %v2183_v13 }
 0xd00   :  { %2993 = vrsqrt.f32 %v2187_v44 }
 0xd08   :  { %v2992_v16 = vpop.eup %2991 }
 0xd09   :  { %v2192_v45 = vmul.f32 %v2992_v16, %v2186_v62 }
 0xd0a   :  { %v2994_v50 = vpop.eup %2993 }
 0xd0b   :  { %2206 = vperm.xlu1 %2968, %v2192_v45   ;;  %v2191_v46 = vmul.f32 %v2994_v50, %v2185_v25  ;;  %v2196_v9 = vmul.f32 %v2192_v45, %v2158_v18 }
 0xd0d   :  { %2201 = vperm.xlu0 %2969, %v2191_v46   ;;  %v2195_v40 = vmul.f32 %v2191_v46, %v2157_v17  ;;  %v2198_v41 = vsub.f32 %v2194_v47, %v2196_v9 }
 0xd0f   :  { %v2197_v53 = vsub.f32 %v2193_v7, %v2195_v40 }
 0xd11   :  { %2224 = vperm.xlu0 %2969, %v2198_v41   ;;  %2219 = vperm.xlu1 %2968, %v2197_v53  }
 0xd8a   :  { %v2207_v49 = vpop.permute.xlu1 %2206 }
 0xd8b   :  { %v2213_v19 = vmul.f32 %v2207_v49, %v2099_v56  ;;  %v2214_v55 = vmul.f32 %v2207_v49, %v2101_v60  ;;  %v2215_v6 = vmul.f32 %v2207_v49, %v4068_v57  ;;  %v2216_v11 = vmul.f32 %v2207_v49, %v4070_v61 }
 0xd8c   :  { %v2202_v52 = vpop.permute.xlu0 %2201 }
 0xd8d   :  { %v2209_v54 = vmul.f32 %v2202_v52, %v4052_v36  ;;  %v2210_v0 = vmul.f32 %v2202_v52, %v4058_v42  ;;  %v2211_v36 = vmul.f32 %v2202_v52, %v4054_v32  ;;  %v2212_v57 = vmul.f32 %v2202_v52, %v4060_v48  ;;  %v2267_v48 = vld [vmem:[%s4491_s23] ss:$8 sm:$0xf]  ;;  %v2946_v52 = vld [vmem:[%s4491_s23 + $0x1] ss:$8 sm:$0xf] }
 0xd8e   :  { %v2276_v17 = vrot.slane %v2267_v48, %v3353_v22  ;;  %v2280_v34 = vrot.slane %v2267_v48, %v3384_v37  ;;  %v2272_v44 = vrot.slane %v2267_v48, %v3367_v29  ;;  %v2284_v62 = vrot.slane %v2267_v48, %v3386_v38 }
 0xd8f   :  { %v2334_v48 = vrot.slane %v2946_v52, %v3367_v29 }
 0xd90   :  { %v2225_v51 = vpop.permute.xlu0 %2224  ;;  %v2220_v33 = vpop.permute.xlu1 %2219 }
 0xd91   :  { %v2231_v59 = vadd.f32 %v2225_v51, %v2213_v19  ;;  %v2227_v3 = vadd.f32 %v2220_v33, %v2209_v54  ;;  %v2232_v4 = vadd.f32 %v2225_v51, %v2214_v55  ;;  %v2228_v58 = vadd.f32 %v2220_v33, %v2210_v0 }
 0xd92   :  { %v2233_v56 = vadd.f32 %v2225_v51, %v2215_v6  ;;  %v2229_v42 = vadd.f32 %v2220_v33, %v2211_v36  ;;  %v2234_v32 = vadd.f32 %v2225_v51, %v2216_v11  ;;  %v2230_v26 = vadd.f32 %v2220_v33, %v2212_v57 }
 0xd93   :  { %v4096_v39 = vmax.f32 %v2231_v59, 0.0  ;;  %v4098_v5 = vmax.f32 %v2227_v3, 0.0  ;;  %v4106_v60 = vmax.f32 %v2232_v4, 0.0  ;;  %v4108_v14 = vmax.f32 %v2228_v58, 0.0 }
 0xd94   :  { %v4116_v30 = vmax.f32 %v2233_v56, 0.0  ;;  %v4118_v1 = vmax.f32 %v2229_v42, 0.0  ;;  %v4124_v61 = vmax.f32 %v2234_v32, 0.0  ;;  %v4126_v15 = vmax.f32 %v2230_v26, 0.0 }
 0xd95   :  { %2245 = vrot.lane.b32.xlu0 %v4096_v39, %s3024_s5  ;;  %2243 = vrot.lane.b32.xlu1 %v4098_v5, %s3024_s5  ;;  %v2338_v59 = vrot.slane %v2946_v52, %v3353_v22  ;;  %v2342_v42 = vrot.slane %v2946_v52, %v3384_v37 }
 0xd99   :  { %2249 = vrot.lane.b32.xlu0 %v4106_v60, %s3024_s5  ;;  %2247 = vrot.lane.b32.xlu1 %v4108_v14, %s3024_s5 }
 0xd9d   :  { %2253 = vrot.lane.b32.xlu0 %v4116_v30, %s3024_s5  ;;  %2251 = vrot.lane.b32.xlu1 %v4118_v1, %s3024_s5 }
 0xda1   :  { %2257 = vrot.lane.b32.xlu0 %v4124_v61, %s3024_s5  ;;  %2255 = vrot.lane.b32.xlu1 %v4126_v15, %s3024_s5 }
 0xda5   :  { %2307 = vrot.lane.b32.xlu0 %v4096_v39, %s3025_s6  ;;  %2305 = vrot.lane.b32.xlu1 %v4098_v5, %s3025_s6 }
 0xda9   :  { %2311 = vrot.lane.b32.xlu0 %v4106_v60, %s3025_s6  ;;  %2309 = vrot.lane.b32.xlu1 %v4108_v14, %s3025_s6 }
 0xdad   :  { %2315 = vrot.lane.b32.xlu0 %v4116_v30, %s3025_s6  ;;  %2313 = vrot.lane.b32.xlu1 %v4118_v1, %s3025_s6 }
 0xdb1   :  { %2319 = vrot.lane.b32.xlu0 %v4124_v61, %s3025_s6  ;;  %2317 = vrot.lane.b32.xlu1 %v4126_v15, %s3025_s6 }
 0xdb5   :  { %2369 = vrot.lane.b32.xlu0 %v4096_v39, %s3026_s26  ;;  %2367 = vrot.lane.b32.xlu1 %v4098_v5, %s3026_s26 }
 0xdb9   :  { %2373 = vrot.lane.b32.xlu0 %v4106_v60, %s3026_s26  ;;  %2371 = vrot.lane.b32.xlu1 %v4108_v14, %s3026_s26 }
 0xdbd   :  { %2377 = vrot.lane.b32.xlu0 %v4116_v30, %s3026_s26  ;;  %2375 = vrot.lane.b32.xlu1 %v4118_v1, %s3026_s26 }
 0xdc1   :  { %2381 = vrot.lane.b32.xlu0 %v4124_v61, %s3026_s26  ;;  %2379 = vrot.lane.b32.xlu1 %v4126_v15, %s3026_s26 }
 0xdc5   :  { %2431 = vrot.lane.b32.xlu0 %v4096_v39, %s3027_s27  ;;  %2429 = vrot.lane.b32.xlu1 %v4098_v5, %s3027_s27 }
 0xdc9   :  { %2435 = vrot.lane.b32.xlu0 %v4106_v60, %s3027_s27  ;;  %2433 = vrot.lane.b32.xlu1 %v4108_v14, %s3027_s27 }
 0xdcd   :  { %2439 = vrot.lane.b32.xlu0 %v4116_v30, %s3027_s27  ;;  %2437 = vrot.lane.b32.xlu1 %v4118_v1, %s3027_s27 }
 0xdd1   :  { %2443 = vrot.lane.b32.xlu0 %v4124_v61, %s3027_s27  ;;  %2441 = vrot.lane.b32.xlu1 %v4126_v15, %s3027_s27 }
 0xdd5   :  { %2501 = vrot.lane.b32.xlu0 %v4096_v39, %s3028_s28  ;;  %2499 = vrot.lane.b32.xlu1 %v4098_v5, %s3028_s28 }
 0xdd9   :  { %2505 = vrot.lane.b32.xlu0 %v4106_v60, %s3028_s28  ;;  %2503 = vrot.lane.b32.xlu1 %v4108_v14, %s3028_s28 }
 0xddd   :  { %2509 = vrot.lane.b32.xlu0 %v4116_v30, %s3028_s28  ;;  %2507 = vrot.lane.b32.xlu1 %v4118_v1, %s3028_s28 }
 0xde1   :  { %2513 = vrot.lane.b32.xlu0 %v4124_v61, %s3028_s28  ;;  %2511 = vrot.lane.b32.xlu1 %v4126_v15, %s3028_s28 }
 0xde5   :  { %2563 = vrot.lane.b32.xlu0 %v4096_v39, %s3029_s4  ;;  %2561 = vrot.lane.b32.xlu1 %v4098_v5, %s3029_s4 }
 0xde9   :  { %2567 = vrot.lane.b32.xlu0 %v4106_v60, %s3029_s4  ;;  %2565 = vrot.lane.b32.xlu1 %v4108_v14, %s3029_s4 }
 0xded   :  { %2571 = vrot.lane.b32.xlu0 %v4116_v30, %s3029_s4  ;;  %2569 = vrot.lane.b32.xlu1 %v4118_v1, %s3029_s4 }
 0xdf1   :  { %2575 = vrot.lane.b32.xlu0 %v4124_v61, %s3029_s4  ;;  %2573 = vrot.lane.b32.xlu1 %v4126_v15, %s3029_s4 }
 0xdf5   :  { %2625 = vrot.lane.b32.xlu0 %v4096_v39, %s3030_s29  ;;  %2623 = vrot.lane.b32.xlu1 %v4098_v5, %s3030_s29 }
 0xdf9   :  { %2629 = vrot.lane.b32.xlu0 %v4106_v60, %s3030_s29  ;;  %2627 = vrot.lane.b32.xlu1 %v4108_v14, %s3030_s29 }
 0xdfd   :  { %2633 = vrot.lane.b32.xlu0 %v4116_v30, %s3030_s29  ;;  %2631 = vrot.lane.b32.xlu1 %v4118_v1, %s3030_s29 }
 0xe01   :  { %2637 = vrot.lane.b32.xlu0 %v4124_v61, %s3030_s29  ;;  %2635 = vrot.lane.b32.xlu1 %v4126_v15, %s3030_s29 }
 0xe05   :  { %2687 = vrot.lane.b32.xlu0 %v4096_v39, %s3031_s30  ;;  %2685 = vrot.lane.b32.xlu1 %v4098_v5, %s3031_s30 }
 0xe07   :  { %v2246_v8 = vpop.permute.xlu0 %2245  ;;  %v2244_v2 = vpop.permute.xlu1 %2243 }
 0xe09   :  { %2691 = vrot.lane.b32.xlu0 %v4106_v60, %s3031_s30  ;;  %2689 = vrot.lane.b32.xlu1 %v4108_v14, %s3031_s30 }
 0xe0b   :  { %v2250_v18 = vpop.permute.xlu0 %2249  ;;  %v2248_v24 = vpop.permute.xlu1 %2247 }
 0xe0c   :  { %v2264_v20 = vsel %vm368_vm4, %v2246_v8, %v2250_v18  ;;  %v2263_v28 = vsel %vm368_vm4, %v2244_v2, %v2248_v24 }
 0xe0d   :  { %v2294_v27 = vmul.f32 %v2276_v17, %v2264_v20  ;;  %2695 = vrot.lane.b32.xlu0 %v4116_v30, %s3031_s30  ;;  %v2290_v63 = vmul.f32 %v2276_v17, %v2263_v28  ;;  %2693 = vrot.lane.b32.xlu1 %v4118_v1, %s3031_s30 }
 0xe0f   :  { %v2254_v31 = vpop.permute.xlu0 %2253  ;;  %v2252_v35 = vpop.permute.xlu1 %2251  ;;  %v2298_v23 = vpack.c.bf16 %v2294_v27, %v2290_v63 }
 0xe10   :  { %v2262_v43 = vsel %vm368_vm4, %v2250_v18, %v2254_v31  ;;  %v2261_v13 = vsel %vm368_vm4, %v2248_v24, %v2252_v35 }
 0xe11   :  { %2699 = vrot.lane.b32.xlu0 %v4124_v61, %s3031_s30  ;;  %2697 = vrot.lane.b32.xlu1 %v4126_v15, %s3031_s30  ;;  %v2295_v25 = vmul.f32 %v2280_v34, %v2262_v43  ;;  %v2291_v45 = vmul.f32 %v2280_v34, %v2261_v13 }
 0xe12   :  { %2797 = vmatprep.subr.bf16.mxu0 %v2298_v23  ;;  %v2947_v23 = vld [vmem:[%s4491_s23 + $0x2] ss:$8 sm:$0xf] }
 0xe13   :  { %v2258_v16 = vpop.permute.xlu0 %2257  ;;  %v2256_v9 = vpop.permute.xlu1 %2255  ;;  %v2299_v55 = vpack.c.bf16 %v2295_v25, %v2291_v45  ;;  %v2400_v25 = vrot.slane %v2947_v23, %v3353_v22 }
 0xe14   :  { %v2260_v50 = vsel %vm368_vm4, %v2254_v31, %v2258_v16  ;;  %v2266_v46 = vsel %vm368_vm4, %v2258_v16, %v2246_v8  ;;  %v2259_v40 = vsel %vm368_vm4, %v2252_v35, %v2256_v9  ;;  %v2265_v41 = vsel %vm368_vm4, %v2256_v9, %v2244_v2 }
 0xe15   :  { %v2293_v47 = vmul.f32 %v2272_v44, %v2266_v46  ;;  %v2296_v7 = vmul.f32 %v2284_v62, %v2260_v50  ;;  %v2289_v53 = vmul.f32 %v2272_v44, %v2265_v41  ;;  %v2292_v49 = vmul.f32 %v2284_v62, %v2259_v40 }
 0xe16   :  { %v2346_v8 = vrot.slane %v2946_v52, %v3386_v38  ;;  %v2404_v41 = vrot.slane %v2947_v23, %v3384_v37 }
 0xe17   :  { %v2308_v19 = vpop.permute.xlu0 %2307  ;;  %v2297_v54 = vpack.c.bf16 %v2293_v47, %v2289_v53  ;;  %v2306_v51 = vpop.permute.xlu1 %2305  ;;  %v2300_v33 = vpack.c.bf16 %v2296_v7, %v2292_v49 }
 0xe19   :  { %2798 = vmatpush1.bf16.msra.mxu0 %v2297_v54  ;;  %2838 = vmatprep.subr.bf16.mxu1 %v2300_v33  ;;  %v2396_v54 = vrot.slane %v2947_v23, %v3367_v29 }
 0xe1a   :  { %2839 = vmatpush1.bf16.msra.mxu1 %v2299_v55 }
 0xe1b   :  { %v2312_v0 = vpop.permute.xlu0 %2311  ;;  %v2310_v4 = vpop.permute.xlu1 %2309 }
 0xe1c   :  { %v2326_v3 = vsel %vm431_vm5, %v2308_v19, %v2312_v0  ;;  %v2325_v6 = vsel %vm431_vm5, %v2306_v51, %v2310_v4 }
 0xe1d   :  { %v2356_v58 = vmul.f32 %v2338_v59, %v2326_v3  ;;  %v2352_v36 = vmul.f32 %v2338_v59, %v2325_v6 }
 0xe1f   :  { %v2316_v56 = vpop.permute.xlu0 %2315  ;;  %v2314_v11 = vpop.permute.xlu1 %2313  ;;  %v2360_v57 = vpack.c.bf16 %v2356_v58, %v2352_v36 }
 0xe20   :  { %v2324_v32 = vsel %vm431_vm5, %v2312_v0, %v2316_v56  ;;  %v2323_v26 = vsel %vm431_vm5, %v2310_v4, %v2314_v11 }
 0xe21   :  { %2799 = vmatprep.subr.bf16.mxu0 %v2360_v57  ;;  %v2357_v10 = vmul.f32 %v2342_v42, %v2324_v32  ;;  %v2353_v17 = vmul.f32 %v2342_v42, %v2323_v26  ;;  %v2948_v57 = vld [vmem:[%s4491_s23 + $0x3] ss:$8 sm:$0xf] }
 0xe23   :  { %v2320_v2 = vpop.permute.xlu0 %2319  ;;  %v2318_v24 = vpop.permute.xlu1 %2317  ;;  %v2361_v16 = vpack.c.bf16 %v2357_v10, %v2353_v17  ;;  %v2462_v10 = vrot.slane %v2948_v57, %v3353_v22 }
 0xe24   :  { %v2322_v18 = vsel %vm431_vm5, %v2316_v56, %v2320_v2  ;;  %v2328_v20 = vsel %vm431_vm5, %v2320_v2, %v2308_v19  ;;  %v2321_v63 = vsel %vm431_vm5, %v2314_v11, %v2318_v24  ;;  %v2327_v31 = vsel %vm431_vm5, %v2318_v24, %v2306_v51 }
 0xe25   :  { %v2355_v27 = vmul.f32 %v2334_v48, %v2328_v20  ;;  %v2358_v28 = vmul.f32 %v2346_v8, %v2322_v18  ;;  %v2351_v34 = vmul.f32 %v2334_v48, %v2327_v31  ;;  %v2354_v35 = vmul.f32 %v2346_v8, %v2321_v63 }
 0xe26   :  { %v2408_v51 = vrot.slane %v2947_v23, %v3386_v38  ;;  %v2466_v31 = vrot.slane %v2948_v57, %v3384_v37 }
 0xe27   :  { %v2370_v43 = vpop.permute.xlu0 %2369  ;;  %v2359_v13 = vpack.c.bf16 %v2355_v27, %v2351_v34  ;;  %v2368_v44 = vpop.permute.xlu1 %2367  ;;  %v2362_v62 = vpack.c.bf16 %v2358_v28, %v2354_v35 }
 0xe29   :  { %2800 = vmatpush1.bf16.msra.mxu0 %v2359_v13  ;;  %2840 = vmatprep.subr.bf16.mxu1 %v2362_v62  ;;  %v2458_v13 = vrot.slane %v2948_v57, %v3367_v29 }
 0xe2a   :  { %2841 = vmatpush1.bf16.msra.mxu1 %v2361_v16 }
 0xe2b   :  { %v2374_v45 = vpop.permute.xlu0 %2373  ;;  %v2372_v46 = vpop.permute.xlu1 %2371 }
 0xe2c   :  { %v2388_v50 = vsel %vm495_vm6, %v2370_v43, %v2374_v45  ;;  %v2387_v47 = vsel %vm495_vm6, %v2368_v44, %v2372_v46 }
 0xe2d   :  { %v2418_v9 = vmul.f32 %v2400_v25, %v2388_v50  ;;  %v2414_v7 = vmul.f32 %v2400_v25, %v2387_v47 }
 0xe2f   :  { %v2378_v40 = vpop.permute.xlu0 %2377  ;;  %v2376_v53 = vpop.permute.xlu1 %2375  ;;  %v2422_v49 = vpack.c.bf16 %v2418_v9, %v2414_v7 }
 0xe30   :  { %v2386_v52 = vsel %vm495_vm6, %v2374_v45, %v2378_v40  ;;  %v2385_v19 = vsel %vm495_vm6, %v2372_v46, %v2376_v53 }
 0xe31   :  { %2801 = vmatprep.subr.bf16.mxu0 %v2422_v49  ;;  %v2419_v55 = vmul.f32 %v2404_v41, %v2386_v52  ;;  %v2415_v59 = vmul.f32 %v2404_v41, %v2385_v19 }
 0xe33   :  { %v2382_v33 = vpop.permute.xlu0 %2381  ;;  %v2380_v4 = vpop.permute.xlu1 %2379  ;;  %v2423_v2 = vpack.c.bf16 %v2419_v55, %v2415_v59  ;;  %v2949_v55 = vld [vmem:[%s4491_s23 + $0x5] ss:$8 sm:$0xf]  ;;  %v2494_v59 = vpack.c.bf16 %v4124_v61, %v4126_v15 }
 0xe34   :  { %v2384_v0 = vsel %vm495_vm6, %v2378_v40, %v2382_v33  ;;  %v2390_v3 = vsel %vm495_vm6, %v2382_v33, %v2370_v43  ;;  %v2383_v36 = vsel %vm495_vm6, %v2376_v53, %v2380_v4  ;;  %v2389_v56 = vsel %vm495_vm6, %v2380_v4, %v2368_v44 }
 0xe35   :  { %v2417_v58 = vmul.f32 %v2396_v54, %v2390_v3  ;;  %v2420_v6 = vmul.f32 %v2408_v51, %v2384_v0  ;;  %v2413_v42 = vmul.f32 %v2396_v54, %v2389_v56  ;;  %v2416_v11 = vmul.f32 %v2408_v51, %v2383_v36 }
 0xe36   :  { %v2470_v44 = vrot.slane %v2948_v57, %v3386_v38  ;;  %v2492_v33 = vpack.c.bf16 %v4106_v60, %v4108_v14  ;;  %v2528_v3 = vrot.slane %v2949_v55, %v3367_v29  ;;  %v2532_v61 = vrot.slane %v2949_v55, %v3353_v22 }
 0xe37   :  { %v2432_v32 = vpop.permute.xlu0 %2431  ;;  %v2421_v26 = vpack.c.bf16 %v2417_v58, %v2413_v42  ;;  %v2430_v48 = vpop.permute.xlu1 %2429  ;;  %v2424_v8 = vpack.c.bf16 %v2420_v6, %v2416_v11  ;;  %v2491_v58 = vpack.c.bf16 %v4096_v39, %v4098_v5  ;;  %v2493_v6 = vpack.c.bf16 %v4116_v30, %v4118_v1 }
 0xe38   :  { %v2536_v57 = vrot.slane %v2949_v55, %v3384_v37 }
 0xe39   :  { %2802 = vmatpush1.bf16.msra.mxu0 %v2421_v26  ;;  %2842 = vmatprep.subr.bf16.mxu1 %v2424_v8 }
 0xe3a   :  { %2843 = vmatpush1.bf16.msra.mxu1 %v2423_v2 }
 0xe3b   :  { %v2436_v17 = vpop.permute.xlu0 %2435  ;;  %v2434_v20 = vpop.permute.xlu1 %2433 }
 0xe3c   :  { %v2450_v18 = vsel %vm559_vm7, %v2432_v32, %v2436_v17  ;;  %v2449_v27 = vsel %vm559_vm7, %v2430_v48, %v2434_v20 }
 0xe3d   :  { %v2480_v24 = vmul.f32 %v2462_v10, %v2450_v18  ;;  %v2476_v28 = vmul.f32 %v2462_v10, %v2449_v27 }
 0xe3f   :  { %v2440_v63 = vpop.permute.xlu0 %2439  ;;  %v2438_v34 = vpop.permute.xlu1 %2437  ;;  %v2484_v35 = vpack.c.bf16 %v2480_v24, %v2476_v28 }
 0xe40   :  { %v2448_v23 = vsel %vm559_vm7, %v2436_v17, %v2440_v63  ;;  %v2447_v43 = vsel %vm559_vm7, %v2434_v20, %v2438_v34 }
 0xe41   :  { %2803 = vmatprep.subr.bf16.mxu0 %v2484_v35  ;;  %v2481_v16 = vmul.f32 %v2466_v31, %v2448_v23  ;;  %v2477_v25 = vmul.f32 %v2466_v31, %v2447_v43  ;;  %v2950_v23 = vld [vmem:[%s4491_s23 + $0x6] ss:$8 sm:$0xf] }
 0xe43   :  { %v2444_v62 = vpop.permute.xlu0 %2443  ;;  %v2442_v46 = vpop.permute.xlu1 %2441  ;;  %v2485_v51 = vpack.c.bf16 %v2481_v16, %v2477_v25  ;;  %v2594_v25 = vrot.slane %v2950_v23, %v3353_v22 }
 0xe44   :  { %v2446_v45 = vsel %vm559_vm7, %v2440_v63, %v2444_v62  ;;  %v2452_v50 = vsel %vm559_vm7, %v2444_v62, %v2432_v32  ;;  %v2445_v7 = vsel %vm559_vm7, %v2438_v34, %v2442_v46  ;;  %v2451_v40 = vsel %vm559_vm7, %v2442_v46, %v2430_v48 }
 0xe45   :  { %v2479_v9 = vmul.f32 %v2458_v13, %v2452_v50  ;;  %v2482_v47 = vmul.f32 %v2470_v44, %v2446_v45  ;;  %v2475_v41 = vmul.f32 %v2458_v13, %v2451_v40  ;;  %v2478_v53 = vmul.f32 %v2470_v44, %v2445_v7 }
 0xe46   :  { %v2540_v32 = vrot.slane %v2949_v55, %v3386_v38  ;;  %v2590_v13 = vrot.slane %v2950_v23, %v3367_v29 }
 0xe47   :  { %v2502_v49 = vpop.permute.xlu0 %2501  ;;  %v2483_v52 = vpack.c.bf16 %v2479_v9, %v2475_v41  ;;  %v2500_v19 = vpop.permute.xlu1 %2499  ;;  %v2486_v54 = vpack.c.bf16 %v2482_v47, %v2478_v53  ;;  %v2598_v41 = vrot.slane %v2950_v23, %v3384_v37  ;;  %v2602_v53 = vrot.slane %v2950_v23, %v3386_v38 }
 0xe49   :  { %2804 = vmatpush1.bf16.msra.mxu0 %v2483_v52  ;;  %2844 = vmatprep.subr.bf16.mxu1 %v2486_v54 }
 0xe4a   :  { %2805 = vmatprep.subr.bf16.mxu0 %v2492_v33  ;;  %2845 = vmatpush1.bf16.msra.mxu1 %v2485_v51 }
 0xe4b   :  { %v2506_v0 = vpop.permute.xlu0 %2505  ;;  %2846 = vmatprep.subr.bf16.mxu1 %v2494_v59  ;;  %v2504_v4 = vpop.permute.xlu1 %2503 }
 0xe4c   :  { %v2520_v60 = vsel %vm631_vm8, %v2502_v49, %v2506_v0  ;;  %v2519_v14 = vsel %vm631_vm8, %v2500_v19, %v2504_v4 }
 0xe4d   :  { %2806 = vmatpush1.bf16.msra.mxu0 %v2491_v58  ;;  %v2549_v36 = vmul.f32 %v2528_v3, %v2520_v60  ;;  %v2545_v56 = vmul.f32 %v2528_v3, %v2519_v14 }
 0xe4e   :  { %2847 = vmatpush1.bf16.msra.mxu1 %v2493_v6 }
 0xe4f   :  { %v2510_v15 = vpop.permute.xlu0 %2509  ;;  %v2508_v39 = vpop.permute.xlu1 %2507  ;;  %v2553_v26 = vpack.c.bf16 %v2549_v36, %v2545_v56  ;;  %v2951_v36 = vld [vmem:[%s4491_s23 + $0x7] ss:$8 sm:$0xf] }
 0xe50   :  { %v2518_v42 = vsel %vm631_vm8, %v2506_v0, %v2510_v15  ;;  %v2517_v11 = vsel %vm631_vm8, %v2504_v4, %v2508_v39 }
 0xe51   :  { %v2550_v5 = vmul.f32 %v2532_v61, %v2518_v42  ;;  %v2546_v30 = vmul.f32 %v2532_v61, %v2517_v11  ;;  %v2652_v42 = vrot.slane %v2951_v36, %v3367_v29 }
 0xe53   :  { %v2514_v1 = vpop.permute.xlu0 %2513  ;;  %v2512_v2 = vpop.permute.xlu1 %2511  ;;  %v2554_v10 = vpack.c.bf16 %v2550_v5, %v2546_v30 }
 0xe54   :  { %v2516_v48 = vsel %vm631_vm8, %v2510_v15, %v2514_v1  ;;  %v2522_v8 = vsel %vm631_vm8, %v2514_v1, %v2502_v49  ;;  %v2515_v20 = vsel %vm631_vm8, %v2508_v39, %v2512_v2  ;;  %v2521_v24 = vsel %vm631_vm8, %v2512_v2, %v2500_v19 }
 0xe55   :  { %v2551_v17 = vmul.f32 %v2536_v57, %v2516_v48  ;;  %v2552_v18 = vmul.f32 %v2540_v32, %v2522_v8  ;;  %v2547_v27 = vmul.f32 %v2536_v57, %v2515_v20  ;;  %v2548_v28 = vmul.f32 %v2540_v32, %v2521_v24  ;;  %2807 = vmatprep.subr.bf16.mxu0 %v2554_v10 }
 0xe56   :  { %2808 = vmatpush1.bf16.msra.mxu0 %v2553_v26  ;;  %v2656_v57 = vrot.slane %v2951_v36, %v3353_v22  ;;  %v2660_v10 = vrot.slane %v2951_v36, %v3384_v37 }
 0xe57   :  { %v2564_v63 = vpop.permute.xlu0 %2563  ;;  %v2555_v31 = vpack.c.bf16 %v2551_v17, %v2547_v27  ;;  %v2562_v34 = vpop.permute.xlu1 %2561  ;;  %v2556_v35 = vpack.c.bf16 %v2552_v18, %v2548_v28  ;;  %v2664_v17 = vrot.slane %v2951_v36, %v3386_v38 }
 0xe59   :  { %2848 = vmatprep.subr.bf16.mxu1 %v2556_v35 }
 0xe5a   :  { %2849 = vmatpush1.bf16.msra.mxu1 %v2555_v31 }
 0xe5b   :  { %v2568_v43 = vpop.permute.xlu0 %2567  ;;  %v2566_v44 = vpop.permute.xlu1 %2565 }
 0xe5c   :  { %v2582_v62 = vsel %vm695_vm9, %v2564_v63, %v2568_v43  ;;  %v2581_v16 = vsel %vm695_vm9, %v2562_v34, %v2566_v44 }
 0xe5d   :  { %v2611_v50 = vmul.f32 %v2590_v13, %v2582_v62  ;;  %v2607_v46 = vmul.f32 %v2590_v13, %v2581_v16 }
 0xe5f   :  { %v2572_v45 = vpop.permute.xlu0 %2571  ;;  %v2570_v47 = vpop.permute.xlu1 %2569  ;;  %v2615_v19 = vpack.c.bf16 %v2611_v50, %v2607_v46  ;;  %v2952_v50 = vld [vmem:[%s4491_s23 + $0x20] ss:$8 sm:$0xf]  ;;  %s3032_s23 = smov [#allocation3]  }
 0xe60   :  { %v2580_v9 = vsel %vm695_vm9, %v2568_v43, %v2572_v45  ;;  %v2579_v40 = vsel %vm695_vm9, %v2566_v44, %v2570_v47  ;;  %s2900_s2 = sshll.u32 %s3032_s23, 4  ;;  %s2901_s2 = int_to_ptr.vmem [resolvable:$true] %s2900_s2 }
 0xe61   :  { %v2612_v7 = vmul.f32 %v2594_v25, %v2580_v9  ;;  %v2608_v49 = vmul.f32 %v2594_v25, %v2579_v40  ;;  %v2714_v9 = vrot.slane %v2952_v50, %v3367_v29  ;;  %s2999_s14 = scalar_lea.vmem %s2901_s2, 1024  ;;  %p3004_p1 = scmp.lt.s32.totalorder %s2901_s2, %s2901_s2 }
 0xe62   :  { %p3000_p0 = scmp.ne.s32.totalorder %s2901_s2, %s2999_s14  ;;  %p3005_p2 = scmp.lt.s32.totalorder %s2999_s14, %s2999_s14 }
 0xe63   :  { %v2576_v52 = vpop.permute.xlu0 %2575  ;;  %v2574_v33 = vpop.permute.xlu1 %2573  ;;  %v2616_v55 = vpack.c.bf16 %v2612_v7, %v2608_v49 }
 0xe64   :  { %v2578_v54 = vsel %vm695_vm9, %v2572_v45, %v2576_v52  ;;  %v2584_v51 = vsel %vm695_vm9, %v2576_v52, %v2564_v63  ;;  %v2577_v3 = vsel %vm695_vm9, %v2570_v47, %v2574_v33  ;;  %v2583_v4 = vsel %vm695_vm9, %v2574_v33, %v2562_v34  ;;  %p3006_p3 = por %p3005_p2, %p3004_p1 }
 0xe65   :  { %v2613_v59 = vmul.f32 %v2598_v41, %v2578_v54  ;;  %v2614_v0 = vmul.f32 %v2602_v53, %v2584_v51  ;;  %v2609_v58 = vmul.f32 %v2598_v41, %v2577_v3  ;;  %v2610_v60 = vmul.f32 %v2602_v53, %v2583_v4  ;;  %2809 = vmatprep.subr.bf16.mxu0 %v2616_v55 }
 0xe66   :  { %2810 = vmatpush1.bf16.msra.mxu0 %v2615_v19  ;;  %v2718_v41 = vrot.slane %v2952_v50, %v3353_v22  ;;  %v2722_v33 = vrot.slane %v2952_v50, %v3384_v37  ;;  %v2726_v55 = vrot.slane %v2952_v50, %v3386_v38  ;;  %p3007_p4 = pnand %p3006_p3, %p3000_p0 }
 0xe67   :  { %v2626_v14 = vpop.permute.xlu0 %2625  ;;  %v2617_v6 = vpack.c.bf16 %v2613_v59, %v2609_v58  ;;  %v2624_v61 = vpop.permute.xlu1 %2623  ;;  %v2618_v15 = vpack.c.bf16 %v2614_v0, %v2610_v60 }
 0xe69   :  { %2850 = vmatprep.subr.bf16.mxu1 %v2618_v15 }
 0xe6a   :  { %2851 = vmatpush1.bf16.msra.mxu1 %v2617_v6 }
 0xe6b   :  { %v2630_v56 = vpop.permute.xlu0 %2629  ;;  %v2628_v39 = vpop.permute.xlu1 %2627 }
 0xe6c   :  { %v2644_v5 = vsel %vm759_vm10, %v2626_v14, %v2630_v56  ;;  %v2643_v11 = vsel %vm759_vm10, %v2624_v61, %v2628_v39 }
 0xe6d   :  { %v2673_v30 = vmul.f32 %v2652_v42, %v2644_v5  ;;  %v2669_v1 = vmul.f32 %v2652_v42, %v2643_v11 }
 0xe6f   :  { %v2634_v32 = vpop.permute.xlu0 %2633  ;;  %v2632_v48 = vpop.permute.xlu1 %2631  ;;  %v2677_v24 = vpack.c.bf16 %v2673_v30, %v2669_v1 }
 0xe70   :  { %v2642_v26 = vsel %vm759_vm10, %v2630_v56, %v2634_v32  ;;  %v2641_v2 = vsel %vm759_vm10, %v2628_v39, %v2632_v48 }
 0xe71   :  { %v2674_v8 = vmul.f32 %v2656_v57, %v2642_v26  ;;  %v2670_v18 = vmul.f32 %v2656_v57, %v2641_v2 }
 0xe73   :  { %v2638_v20 = vpop.permute.xlu0 %2637  ;;  %v2636_v63 = vpop.permute.xlu1 %2635  ;;  %v2678_v31 = vpack.c.bf16 %v2674_v8, %v2670_v18 }
 0xe74   :  { %v2640_v27 = vsel %vm759_vm10, %v2634_v32, %v2638_v20  ;;  %v2646_v28 = vsel %vm759_vm10, %v2638_v20, %v2626_v14  ;;  %v2639_v23 = vsel %vm759_vm10, %v2632_v48, %v2636_v63  ;;  %v2645_v43 = vsel %vm759_vm10, %v2636_v63, %v2624_v61 }
 0xe75   :  { %v2675_v34 = vmul.f32 %v2660_v10, %v2640_v27  ;;  %v2676_v35 = vmul.f32 %v2664_v17, %v2646_v28  ;;  %v2671_v13 = vmul.f32 %v2660_v10, %v2639_v23  ;;  %v2672_v44 = vmul.f32 %v2664_v17, %v2645_v43  ;;  %2811 = vmatprep.subr.bf16.mxu0 %v2678_v31 }
 0xe76   :  { %2812 = vmatpush1.bf16.msra.mxu0 %v2677_v24 }
 0xe77   :  { %v2688_v62 = vpop.permute.xlu0 %2687  ;;  %v2679_v16 = vpack.c.bf16 %v2675_v34, %v2671_v13  ;;  %v2686_v25 = vpop.permute.xlu1 %2685  ;;  %v2680_v45 = vpack.c.bf16 %v2676_v35, %v2672_v44 }
 0xe79   :  { %2852 = vmatprep.subr.bf16.mxu1 %v2680_v45 }
 0xe7a   :  { %2853 = vmatpush1.bf16.msra.mxu1 %v2679_v16 }
 0xe7b   :  { %v2692_v46 = vpop.permute.xlu0 %2691  ;;  %v2690_v47 = vpop.permute.xlu1 %2689 }
 0xe7c   :  { %v2706_v7 = vsel %vm823_vm11, %v2688_v62, %v2692_v46  ;;  %v2705_v40 = vsel %vm823_vm11, %v2686_v25, %v2690_v47 }
 0xe7d   :  { %v2735_v49 = vmul.f32 %v2714_v9, %v2706_v7  ;;  %v2731_v52 = vmul.f32 %v2714_v9, %v2705_v40 }
 0xe7f   :  { %v2696_v53 = vpop.permute.xlu0 %2695  ;;  %v2694_v54 = vpop.permute.xlu1 %2693  ;;  %v2739_v3 = vpack.c.bf16 %v2735_v49, %v2731_v52 }
 0xe80   :  { %v2704_v19 = vsel %vm823_vm11, %v2692_v46, %v2696_v53  ;;  %v2703_v29 = vsel %vm823_vm11, %v2690_v47, %v2694_v54 }
 0xe81   :  { %v2736_v51 = vmul.f32 %v2718_v41, %v2704_v19  ;;  %v2732_v59 = vmul.f32 %v2718_v41, %v2703_v29 }
 0xe83   :  { %v2700_v0 = vpop.permute.xlu0 %2699  ;;  %v2698_v58 = vpop.permute.xlu1 %2697  ;;  %v2740_v60 = vpack.c.bf16 %v2736_v51, %v2732_v59 }
 0xe84   :  { %v2702_v22 = vsel %vm823_vm11, %v2696_v53, %v2700_v0  ;;  %v2708_v4 = vsel %vm823_vm11, %v2700_v0, %v2688_v62  ;;  %v2701_v61 = vsel %vm823_vm11, %v2694_v54, %v2698_v58  ;;  %v2707_v37 = vsel %vm823_vm11, %v2698_v58, %v2686_v25 }
 0xe85   :  { %v2737_v14 = vmul.f32 %v2722_v33, %v2702_v22  ;;  %v2738_v6 = vmul.f32 %v2726_v55, %v2708_v4  ;;  %v2733_v38 = vmul.f32 %v2722_v33, %v2701_v61  ;;  %v2734_v15 = vmul.f32 %v2726_v55, %v2707_v37  ;;  %2813 = vmatprep.subr.bf16.mxu0 %v2740_v60 }
 0xe86   :  { %2814 = vmatpush1.bf16.msra.mxu0 %v2739_v3 }
 0xe87   :  { %v2741_v36 = vpack.c.bf16 %v2737_v14, %v2733_v38  ;;  %v2742_v56 = vpack.c.bf16 %v2738_v6, %v2734_v15 }
 0xe89   :  { %2854 = vmatprep.subr.bf16.mxu1 %v2742_v56  ;;  %2830 = vmatmul.mubr.bf16.vlgmr.msra.gmra.mrb[20].mxu0 %v4238_v12 }
 0xe8a   :  { %2855 = vmatpush1.bf16.msra.mxu1 %v2741_v36 }
 0xe8d   :  { %2871 = vmatmul.mubr.bf16.vlgmr.msra.gmra.mrb[20].mxu1 %v4238_v12 }
 0xf5c   :  { %v2831_v42 = vpop.f32.mrb[20].mxu0 }
 0xf5d   :  { %v2883_v39 = vrot.slane %v2831_v42, 4  ;;  %v2833_v5 = vpop.f32.mrb[21].mxu0 }
 0xf5e   :  { %v2884_v11 = vrot.slane %v2833_v5, 4  ;;  %v2835_v57 = vpop.f32.mrb[22].mxu0 }
 0xf5f   :  { %2891 = vst [vmem:[#allocation3 + $0x20] sm:$0xf0] %v2883_v39  ;;  %v2836_v21 = vpop.f32.mrb[23].mxu0 }
 0xf60   :  { %v2872_v32 = vpop.f32.mrb[20].mxu1  ;;  %2892 = vst [vmem:[#allocation3 + $0x28] sm:$0xf0] %v2884_v11 }
 0xf61   :  { %v2885_v30 = vrot.slane %v2872_v32, 4  ;;  %v2874_v1 = vpop.f32.mrb[21].mxu1 }
 0xf62   :  { %v2886_v26 = vrot.slane %v2874_v1, 4  ;;  %v2876_v48 = vpop.f32.mrb[22].mxu1 }
 0xf63   :  { %2893 = vst [vmem:[#allocation3 + $0x30] sm:$0xf0] %v2885_v30  ;;  %v2877_v8 = vpop.f32.mrb[23].mxu1 }
 0xf64   :  { %2894 = vst [vmem:[#allocation3 + $0x38] sm:$0xf0] %v2886_v26 }
 0xf65   :  { %3010 = shalt.err (!%p3007_p4)
}
 0xf66   :  { %s3011_s25 = scalar_lea.hbm %s4479_s20, 1024 }
 0xf67   :  { %p3012_p5 = scmp.ne.s32.totalorder %s4479_s20, %s3011_s25  ;;  %p3015_p6 = scmp.lt.u32.totalorder %s3011_s25, %s4479_s20 }
 0xf69   :  { %p3017_p7 = pnand %p3015_p6, %p3012_p5 }
 0xf6b   :  { %3020 = shalt.err (!%p3017_p7)
}
 0xf6c   :  { %s3033_s12 = smov 512   ;;  %s3034_s1 = smov 32  }
 0xf6d   :  { %2906 = dma.vmem_to_hbm [thread:$0]  %s2901_s2, 1024, %s4479_s20, [#allocation4], %s3033_s12, %s3033_s12, %s3034_s1  }
 0xf6e   :  { %3021 = dma.done.wait [#allocation4], 1024  }
 0xf6f   :  { %3022 = vsyncadd [#allocation4], 4294966272 }
 0xf70   :  { %2910 = vsyncpa [#allocation4], 1 }

</bundles_post_ra>
